<compile_context>
chip_gen: v6e
topology: v6e:2x2x1
jax: 0.10.0
libtpu: 0.0.40
codegen_flags: <defaults>
</compile_context>

<pallas_src>
import math
import functools

import jax
import jax.numpy as jnp
from jax import lax
from jax.experimental import pallas as pl
from jax.experimental.pallas import tpu as pltpu


_NEG_INF = -1000000000.0  # matches reference masked_fill value

_LAYER_KEYS = (
    "sa_wqkv", "sa_bqkv", "sa_wo3", "sa_bo", "ln1_g", "ln1_b",
    "ca_wq", "ca_bq", "ca_wkv", "ca_bkv", "ca_wo3", "ca_bo", "ln2_g", "ln2_b",
    "ff_w1", "ff_b1", "ff_w2", "ff_b2", "ln3_g", "ln3_b",
)


# ------------------------------ in-kernel helpers -----------------------------

def _ln(y, gamma, beta, eps=1e-5):
    mean = jnp.mean(y, axis=-1, keepdims=True)
    var = jnp.mean(jnp.square(y - mean), axis=-1, keepdims=True)
    return (y - mean) * lax.rsqrt(var + eps) * gamma + beta


def _mm(a, w):
    # bf16 MXU operands, f32 accumulation.
    return jnp.dot(a.astype(jnp.bfloat16), w, preferred_element_type=jnp.float32)


def _mha_core(q2, k2, v2, wo3_ref, bo, add_mask, n_heads, scale):
    """Multi-head attention + output projection.

    q2: (Sq, D) f32, k2/v2: (Sk, D) f32, wo3_ref: (H, dh, D) bf16 ref,
    bo: (1, D) f32, add_mask: (Sq, Sk) additive f32 or None.
    Returns (Sq, D) f32 = concat_h(softmax(q_h k_h^T / sqrt(dh)) v_h) @ W_O + b_O,
    with the concat folded into a per-head accumulated projection (no relayouts).
    """
    Sq, D = q2.shape
    dh = D // n_heads
    qb = q2.astype(jnp.bfloat16)
    kb = k2.astype(jnp.bfloat16)
    vb = v2.astype(jnp.bfloat16)
    proj = None
    for h in range(n_heads):
        sl = slice(h * dh, (h + 1) * dh)
        # q_h @ k_h^T without materializing the transpose (dot_general trans_b).
        s = lax.dot_general(qb[:, sl], kb[:, sl], (((1,), (1,)), ((), ())),
                            preferred_element_type=jnp.float32) * scale
        if add_mask is not None:
            s = s + add_mask                       # hoisted additive mask
        s = s - jnp.max(s, axis=-1, keepdims=True)
        e = jnp.exp(s)
        p = e / jnp.sum(e, axis=-1, keepdims=True)  # exact softmax (dropout=identity)
        oh = jnp.dot(p.astype(jnp.bfloat16), vb[:, sl],
                     preferred_element_type=jnp.float32)           # (Sq, dh)
        ph = jnp.dot(oh.astype(jnp.bfloat16), wo3_ref[h],
                     preferred_element_type=jnp.float32)           # (Sq, D)
        proj = ph if proj is None else proj + ph
    return proj + bo


# ------------------------------ fused layer kernel -----------------------------

def _decoder_layer_kernel(*refs, n_heads, scale, has_tgt_mask, tgt_causal,
                          has_src_mask, apply_final_ln):
    o_ref = refs[-1]
    it = iter(refs[:-1])
    x_ref = next(it)
    mem_ref = next(it)
    tgt_mask_ref = next(it) if has_tgt_mask else None
    src_mask_ref = next(it) if has_src_mask else None
    (sa_wqkv, sa_bqkv, sa_wo3, sa_bo, ln1_g, ln1_b,
     ca_wq, ca_bq, ca_wkv, ca_bkv, ca_wo3, ca_bo, ln2_g, ln2_b,
     ff_w1, ff_b1, ff_w2, ff_b2, ln3_g, ln3_b, fin_g, fin_b) = it

    x = x_ref[0]                                   # (S, D) f32
    mem = mem_ref[0]                               # (Sm, D) f32
    S, D = x.shape

    # ---- additive masks (computed once, shared across heads) ----
    if tgt_causal:
        r = lax.broadcasted_iota(jnp.int32, (S, S), 0)
        c = lax.broadcasted_iota(jnp.int32, (S, S), 1)
        tgt_add = jnp.where(r >= c, 0.0, _NEG_INF).astype(jnp.float32)
    elif has_tgt_mask:
        tgt_add = tgt_mask_ref[0]
    else:
        tgt_add = None
    src_add = src_mask_ref[0] if has_src_mask else None

    # ---- self-attention + residual + LN1 ----
    qkv = _mm(x, sa_wqkv[...]) + sa_bqkv[...]      # fused Q|K|V, (S, 3D)
    sa = _mha_core(qkv[:, :D], qkv[:, D:2 * D], qkv[:, 2 * D:],
                   sa_wo3, sa_bo[...], tgt_add, n_heads, scale)
    x = _ln(x + sa, ln1_g[...], ln1_b[...])

    # ---- cross-attention + residual + LN2 ----
    q = _mm(x, ca_wq[...]) + ca_bq[...]            # (S, D)
    kv = _mm(mem, ca_wkv[...]) + ca_bkv[...]       # fused K|V, (Sm, 2D)
    ca = _mha_core(q, kv[:, :D], kv[:, D:], ca_wo3, ca_bo[...],
                   src_add, n_heads, scale)
    x = _ln(x + ca, ln2_g[...], ln2_b[...])

    # ---- FFN + residual + LN3 (dropout = identity) ----
    h = jnp.maximum(_mm(x, ff_w1[...]) + ff_b1[...], 0.0)
    y = x + _mm(h, ff_w2[...]) + ff_b2[...]
    x = _ln(y, ln3_g[...], ln3_b[...])

    # ---- final LayerNorm fused into the last layer's call ----
    if apply_final_ln:
        x = _ln(x, fin_g[...], fin_b[...])

    o_ref[0] = x


def _final_ln_kernel(x_ref, g_ref, b_ref, o_ref):
    o_ref[0] = _ln(x_ref[0], g_ref[...], b_ref[...])


# ---------------------------------- wrappers -----------------------------------

def _compiler_params():
    return pltpu.CompilerParams(
        dimension_semantics=("parallel",),
        vmem_limit_bytes=64 * 1024 * 1024,
    )


def decoder_layer(lyr, x, memory, tgt_add, src_add, fin_g, fin_b, n_heads,
                  tgt_causal, apply_final_ln):
    B, S, D = x.shape
    Sm = memory.shape[1]
    assert D % n_heads == 0
    scale = 1.0 / math.sqrt(D // n_heads)
    has_tgt_mask = (tgt_add is not None) and (not tgt_causal)
    has_src_mask = src_add is not None

    batch3 = lambda b: (b, 0, 0)
    w2 = lambda b: (0, 0)
    w3 = lambda b: (0, 0, 0)

    inputs = [x, memory]
    in_specs = [pl.BlockSpec((1, S, D), batch3),
                pl.BlockSpec((1, Sm, D), batch3)]
    if has_tgt_mask:
        inputs.append(tgt_add)
        in_specs.append(pl.BlockSpec((1, S, S), batch3))
    if has_src_mask:
        inputs.append(src_add)
        in_specs.append(pl.BlockSpec((1, S, Sm), batch3))

    weights = [lyr[k] for k in _LAYER_KEYS] + [fin_g, fin_b]
    for w in weights:
        inputs.append(w)
        in_specs.append(pl.BlockSpec(w.shape, w2 if w.ndim == 2 else w3))

    kernel = functools.partial(
        _decoder_layer_kernel, n_heads=n_heads, scale=scale,
        has_tgt_mask=has_tgt_mask, tgt_causal=tgt_causal,
        has_src_mask=has_src_mask, apply_final_ln=apply_final_ln)

    return pl.pallas_call(
        kernel,
        out_shape=jax.ShapeDtypeStruct((B, S, D), jnp.float32),
        grid=(B,),
        in_specs=in_specs,
        out_specs=pl.BlockSpec((1, S, D), batch3),
        compiler_params=_compiler_params(),
    )(*inputs)


def final_layernorm(x, gamma, beta):
    B, S, D = x.shape
    return pl.pallas_call(
        _final_ln_kernel,
        out_shape=jax.ShapeDtypeStruct((B, S, D), jnp.float32),
        grid=(B,),
        in_specs=[pl.BlockSpec((1, S, D), lambda b: (b, 0, 0)),
                  pl.BlockSpec((1, D), lambda b: (0, 0)),
                  pl.BlockSpec((1, D), lambda b: (0, 0))],
        out_specs=pl.BlockSpec((1, S, D), lambda b: (b, 0, 0)),
        compiler_params=_compiler_params(),
    )(x, gamma, beta)


def decoder_forward(params, x, memory, src_mask, tgt_mask, n_heads):
    """masks: None (no masking) | 'causal' (tgt only, generated in-kernel) |
    f32/bool array of shape (B, Sq, Sk) where 0 means masked."""
    tgt_causal = isinstance(tgt_mask, str) and tgt_mask == "causal"
    tgt_add = None
    if (tgt_mask is not None) and not tgt_causal:
        tgt_add = jnp.where(tgt_mask == 0, _NEG_INF, 0.0).astype(jnp.float32)
    src_add = None
    if src_mask is not None:
        src_add = jnp.where(src_mask == 0, _NEG_INF, 0.0).astype(jnp.float32)

    layers = params["layers"]
    if not layers:
        return final_layernorm(x, params["final_g"], params["final_b"])

    n_layer = len(layers)
    for i, lyr in enumerate(layers):
        x = decoder_layer(lyr, x, memory, tgt_add, src_add,
                          params["final_g"], params["final_b"], n_heads,
                          tgt_causal=tgt_causal,
                          apply_final_ln=(i == n_layer - 1))
    return x


# ------------------------------ parameter init ---------------------------------

def _init_linear(key, din, dout, scale=0.05):
    kw, kb = jax.random.split(key)
    w = scale * jax.random.normal(kw, (din, dout), jnp.float32)   # stored (Din, Dout)
    b = scale * jax.random.normal(kb, (1, dout), jnp.float32)
    return w, b


def init_decoder_params(key, n_layer, d, hidden, n_heads):
    dh = d // n_heads
    bf = jnp.bfloat16
    layers = []
    for _ in range(n_layer):
        key, *ks = jax.random.split(key, 11)
        wq, bq = _init_linear(ks[0], d, d)
        wk, bk = _init_linear(ks[1], d, d)
        wv, bv = _init_linear(ks[2], d, d)
        wo, bo = _init_linear(ks[3], d, d)
        cwq, cbq = _init_linear(ks[4], d, d)
        cwk, cbk = _init_linear(ks[5], d, d)
        cwv, cbv = _init_linear(ks[6], d, d)
        cwo, cbo = _init_linear(ks[7], d, d)
        w1, b1 = _init_linear(ks[8], d, hidden)
        w2, b2 = _init_linear(ks[9], hidden, d)
        ones = jnp.ones((1, d), jnp.float32)
        zeros = jnp.zeros((1, d), jnp.float32)
        layers.append(dict(
            sa_wqkv=jnp.concatenate([wq, wk, wv], axis=1).astype(bf),
            sa_bqkv=jnp.concatenate([bq, bk, bv], axis=1),
            sa_wo3=wo.reshape(n_heads, dh, d).astype(bf),   # head-major W_O
            sa_bo=bo,
            ln1_g=ones, ln1_b=zeros,
            ca_wq=cwq.astype(bf), ca_bq=cbq,
            ca_wkv=jnp.concatenate([cwk, cwv], axis=1).astype(bf),
            ca_bkv=jnp.concatenate([cbk, cbv], axis=1),
            ca_wo3=cwo.reshape(n_heads, dh, d).astype(bf),
            ca_bo=cbo,
            ln2_g=ones, ln2_b=zeros,
            ff_w1=w1.astype(bf), ff_b1=b1,
            ff_w2=w2.astype(bf), ff_b2=b2,
            ln3_g=ones, ln3_b=zeros,
        ))
    return dict(
        layers=layers,
        final_g=jnp.ones((1, d), jnp.float32),
        final_b=jnp.zeros((1, d), jnp.float32),
    )


# ----------------------------------- main ---------------------------------------

if __name__ == "__main__":
    B, S, D = 2, 8, 32
    N_HEADS, HIDDEN, N_LAYER = 4, 64, 2

    key = jax.random.PRNGKey(0)
    key, kx, km, kp = jax.random.split(key, 4)

    x = jax.random.normal(kx, (B, S, D), jnp.float32)
    memory = jax.random.normal(km, (B, S, D), jnp.float32)

    params = init_decoder_params(kp, N_LAYER, D, HIDDEN, N_HEADS)

    # Causal tgt mask generated in-kernel (no HBM mask traffic); src unmasked.
    fwd = jax.jit(lambda p, xx, mm: decoder_forward(
        p, xx, mm, src_mask=None, tgt_mask="causal", n_heads=N_HEADS))

    out = fwd(params, x, memory)
    out = jax.block_until_ready(out)

    assert out.shape == (B, S, D)
    assert bool(jnp.all(jnp.isfinite(out)))
    print("KERNEL_OK")
</pallas_src>

<mosaic_0001>
module attributes {stable_mosaic.version = 11 : i64} {
  func.func @_decoder_layer_kernel(%arg0: i32, %arg1: memref<1x8x32xf32, #tpu.memory_space<vmem>>, %arg2: memref<1x8x32xf32, #tpu.memory_space<vmem>>, %arg3: memref<32x96xbf16, #tpu.memory_space<vmem>>, %arg4: memref<1x96xf32, #tpu.memory_space<vmem>>, %arg5: memref<4x8x32xbf16, #tpu.memory_space<vmem>>, %arg6: memref<1x32xf32, #tpu.memory_space<vmem>>, %arg7: memref<1x32xf32, #tpu.memory_space<vmem>>, %arg8: memref<1x32xf32, #tpu.memory_space<vmem>>, %arg9: memref<32x32xbf16, #tpu.memory_space<vmem>>, %arg10: memref<1x32xf32, #tpu.memory_space<vmem>>, %arg11: memref<32x64xbf16, #tpu.memory_space<vmem>>, %arg12: memref<1x64xf32, #tpu.memory_space<vmem>>, %arg13: memref<4x8x32xbf16, #tpu.memory_space<vmem>>, %arg14: memref<1x32xf32, #tpu.memory_space<vmem>>, %arg15: memref<1x32xf32, #tpu.memory_space<vmem>>, %arg16: memref<1x32xf32, #tpu.memory_space<vmem>>, %arg17: memref<32x64xbf16, #tpu.memory_space<vmem>>, %arg18: memref<1x64xf32, #tpu.memory_space<vmem>>, %arg19: memref<64x32xbf16, #tpu.memory_space<vmem>>, %arg20: memref<1x32xf32, #tpu.memory_space<vmem>>, %arg21: memref<1x32xf32, #tpu.memory_space<vmem>>, %arg22: memref<1x32xf32, #tpu.memory_space<vmem>>, %arg23: memref<1x32xf32, #tpu.memory_space<vmem>>, %arg24: memref<1x32xf32, #tpu.memory_space<vmem>>, %arg25: memref<1x8x32xf32, #tpu.memory_space<vmem>>) attributes {dimension_semantics = [#tpu.dimension_semantics<parallel>], iteration_bounds = array<i64: 2>, scalar_prefetch = 0 : i64, scratch_operands = 0 : i64, tpu.core_type = #tpu.core_type<tc>, window_params = [{transform_indices = @transform_0, window_bounds = array<i64: 1, 8, 32>}, {transform_indices = @transform_1, window_bounds = array<i64: 1, 8, 32>}, {pipeline_mode = #tpu.pipeline_mode<synchronous>, transform_indices = @transform_2, window_bounds = array<i64: 32, 96>}, {pipeline_mode = #tpu.pipeline_mode<synchronous>, transform_indices = @transform_3, window_bounds = array<i64: 1, 96>}, {pipeline_mode = #tpu.pipeline_mode<synchronous>, transform_indices = @transform_4, window_bounds = array<i64: 4, 8, 32>}, {pipeline_mode = #tpu.pipeline_mode<synchronous>, transform_indices = @transform_5, window_bounds = array<i64: 1, 32>}, {pipeline_mode = #tpu.pipeline_mode<synchronous>, transform_indices = @transform_6, window_bounds = array<i64: 1, 32>}, {pipeline_mode = #tpu.pipeline_mode<synchronous>, transform_indices = @transform_7, window_bounds = array<i64: 1, 32>}, {pipeline_mode = #tpu.pipeline_mode<synchronous>, transform_indices = @transform_8, window_bounds = array<i64: 32, 32>}, {pipeline_mode = #tpu.pipeline_mode<synchronous>, transform_indices = @transform_9, window_bounds = array<i64: 1, 32>}, {pipeline_mode = #tpu.pipeline_mode<synchronous>, transform_indices = @transform_10, window_bounds = array<i64: 32, 64>}, {pipeline_mode = #tpu.pipeline_mode<synchronous>, transform_indices = @transform_11, window_bounds = array<i64: 1, 64>}, {pipeline_mode = #tpu.pipeline_mode<synchronous>, transform_indices = @transform_12, window_bounds = array<i64: 4, 8, 32>}, {pipeline_mode = #tpu.pipeline_mode<synchronous>, transform_indices = @transform_13, window_bounds = array<i64: 1, 32>}, {pipeline_mode = #tpu.pipeline_mode<synchronous>, transform_indices = @transform_14, window_bounds = array<i64: 1, 32>}, {pipeline_mode = #tpu.pipeline_mode<synchronous>, transform_indices = @transform_15, window_bounds = array<i64: 1, 32>}, {pipeline_mode = #tpu.pipeline_mode<synchronous>, transform_indices = @transform_16, window_bounds = array<i64: 32, 64>}, {pipeline_mode = #tpu.pipeline_mode<synchronous>, transform_indices = @transform_17, window_bounds = array<i64: 1, 64>}, {pipeline_mode = #tpu.pipeline_mode<synchronous>, transform_indices = @transform_18, window_bounds = array<i64: 64, 32>}, {pipeline_mode = #tpu.pipeline_mode<synchronous>, transform_indices = @transform_19, window_bounds = array<i64: 1, 32>}, {pipeline_mode = #tpu.pipeline_mode<synchronous>, transform_indices = @transform_20, window_bounds = array<i64: 1, 32>}, {pipeline_mode = #tpu.pipeline_mode<synchronous>, transform_indices = @transform_21, window_bounds = array<i64: 1, 32>}, {pipeline_mode = #tpu.pipeline_mode<synchronous>, transform_indices = @transform_22, window_bounds = array<i64: 1, 32>}, {pipeline_mode = #tpu.pipeline_mode<synchronous>, transform_indices = @transform_23, window_bounds = array<i64: 1, 32>}, {transform_indices = @transform_24, window_bounds = array<i64: 1, 8, 32>}]} {
    %c0 = arith.constant 0 : index
    %c0_0 = arith.constant 0 : index
    %c0_1 = arith.constant 0 : index
    %0 = vector.load %arg1[%c0, %c0_0, %c0_1] : memref<1x8x32xf32, #tpu.memory_space<vmem>>, vector<1x8x32xf32>
    %1 = vector.shape_cast %0 : vector<1x8x32xf32> to vector<8x32xf32>
    %c0_2 = arith.constant 0 : index
    %c0_3 = arith.constant 0 : index
    %c0_4 = arith.constant 0 : index
    %2 = vector.load %arg2[%c0_2, %c0_3, %c0_4] : memref<1x8x32xf32, #tpu.memory_space<vmem>>, vector<1x8x32xf32>
    %3 = vector.shape_cast %2 : vector<1x8x32xf32> to vector<8x32xf32>
    %4 = tpu.iota {dimensions = array<i32: 0>} : vector<8x8xi32>
    %5 = tpu.iota {dimensions = array<i32: 1>} : vector<8x8xi32>
    %6 = arith.cmpi sge, %4, %5 : vector<8x8xi32>
    %cst = arith.constant 0.000000e+00 : f32
    %cst_5 = arith.constant -1.000000e+09 : f32
    %7 = vector.broadcast %cst : f32 to vector<8x8xf32>
    %8 = vector.broadcast %cst_5 : f32 to vector<8x8xf32>
    %9 = arith.select %6, %7, %8 : vector<8x8xi1>, vector<8x8xf32>
    %c0_6 = arith.constant 0 : index
    %c0_7 = arith.constant 0 : index
    %10 = vector.load %arg3[%c0_6, %c0_7] : memref<32x96xbf16, #tpu.memory_space<vmem>>, vector<32x96xbf16>
    %11 = arith.truncf %1 : vector<8x32xf32> to vector<8x32xbf16>
    %cst_8 = arith.constant dense<0.000000e+00> : vector<8x96xf32>
    %12 = tpu.matmul %11, %10, %cst_8 {dimension_numbers = #tpu.dot_dimension_numbers<[1], [0], [0], [1], [0, 0, 1, 1], [], []>} : vector<8x32xbf16>, vector<32x96xbf16>, vector<8x96xf32> -> vector<8x96xf32>
    %c0_9 = arith.constant 0 : index
    %c0_10 = arith.constant 0 : index
    %13 = vector.load %arg4[%c0_9, %c0_10] : memref<1x96xf32, #tpu.memory_space<vmem>>, vector<1x96xf32>
    %14 = vector.broadcast %13 : vector<1x96xf32> to vector<8x96xf32>
    %15 = arith.addf %12, %14 : vector<8x96xf32>
    %16 = vector.extract_strided_slice %15 {offsets = [0, 0], sizes = [8, 32], strides = [1, 1]} : vector<8x96xf32> to vector<8x32xf32>
    %17 = vector.extract_strided_slice %15 {offsets = [0, 32], sizes = [8, 32], strides = [1, 1]} : vector<8x96xf32> to vector<8x32xf32>
    %18 = vector.extract_strided_slice %15 {offsets = [0, 64], sizes = [8, 32], strides = [1, 1]} : vector<8x96xf32> to vector<8x32xf32>
    %c0_11 = arith.constant 0 : index
    %c0_12 = arith.constant 0 : index
    %19 = vector.load %arg6[%c0_11, %c0_12] : memref<1x32xf32, #tpu.memory_space<vmem>>, vector<1x32xf32>
    %20 = arith.truncf %16 : vector<8x32xf32> to vector<8x32xbf16>
    %21 = arith.truncf %17 : vector<8x32xf32> to vector<8x32xbf16>
    %22 = arith.truncf %18 : vector<8x32xf32> to vector<8x32xbf16>
    %23 = vector.extract_strided_slice %20 {offsets = [0, 0], sizes = [8, 8], strides = [1, 1]} : vector<8x32xbf16> to vector<8x8xbf16>
    %24 = vector.extract_strided_slice %21 {offsets = [0, 0], sizes = [8, 8], strides = [1, 1]} : vector<8x32xbf16> to vector<8x8xbf16>
    %cst_13 = arith.constant dense<0.000000e+00> : vector<8x8xf32>
    %25 = tpu.matmul %23, %24, %cst_13 {dimension_numbers = #tpu.dot_dimension_numbers<[1], [1], [0], [0], [0, 0, 1, 0], [], []>} : vector<8x8xbf16>, vector<8x8xbf16>, vector<8x8xf32> -> vector<8x8xf32>
    %cst_14 = arith.constant 0.353553385 : f32
    %26 = vector.broadcast %cst_14 : f32 to vector<8x8xf32>
    %27 = arith.mulf %25, %26 : vector<8x8xf32>
    %28 = arith.addf %27, %9 : vector<8x8xf32>
    %cst_15 = arith.constant dense<0xFF800000> : vector<8xf32>
    %29 = vector.multi_reduction <maximumf>, %28, %cst_15 [1] : vector<8x8xf32> to vector<8xf32>
    %30 = vector.shape_cast %29 : vector<8xf32> to vector<8x1xf32>
    %31 = vector.broadcast %30 : vector<8x1xf32> to vector<8x8xf32>
    %32 = arith.subf %28, %31 : vector<8x8xf32>
    %33 = math.exp %32 : vector<8x8xf32>
    %cst_16 = arith.constant dense<0.000000e+00> : vector<8xf32>
    %34 = vector.multi_reduction <add>, %33, %cst_16 [1] : vector<8x8xf32> to vector<8xf32>
    %35 = vector.shape_cast %34 : vector<8xf32> to vector<8x1xf32>
    %36 = vector.broadcast %35 : vector<8x1xf32> to vector<8x8xf32>
    %37 = arith.divf %33, %36 : vector<8x8xf32>
    %38 = arith.truncf %37 : vector<8x8xf32> to vector<8x8xbf16>
    %39 = vector.extract_strided_slice %22 {offsets = [0, 0], sizes = [8, 8], strides = [1, 1]} : vector<8x32xbf16> to vector<8x8xbf16>
    %cst_17 = arith.constant dense<0.000000e+00> : vector<8x8xf32>
    %40 = tpu.matmul %38, %39, %cst_17 {dimension_numbers = #tpu.dot_dimension_numbers<[1], [0], [0], [1], [0, 0, 1, 1], [], []>} : vector<8x8xbf16>, vector<8x8xbf16>, vector<8x8xf32> -> vector<8x8xf32>
    %41 = arith.truncf %40 : vector<8x8xf32> to vector<8x8xbf16>
    %c0_18 = arith.constant 0 : index
    %c0_19 = arith.constant 0 : index
    %c0_20 = arith.constant 0 : index
    %42 = vector.load %arg5[%c0_18, %c0_19, %c0_20] : memref<4x8x32xbf16, #tpu.memory_space<vmem>>, vector<1x8x32xbf16>
    %43 = vector.shape_cast %42 : vector<1x8x32xbf16> to vector<8x32xbf16>
    %cst_21 = arith.constant dense<0.000000e+00> : vector<8x32xf32>
    %44 = tpu.matmul %41, %43, %cst_21 {dimension_numbers = #tpu.dot_dimension_numbers<[1], [0], [0], [1], [0, 0, 1, 1], [], []>} : vector<8x8xbf16>, vector<8x32xbf16>, vector<8x32xf32> -> vector<8x32xf32>
    %45 = vector.extract_strided_slice %20 {offsets = [0, 8], sizes = [8, 8], strides = [1, 1]} : vector<8x32xbf16> to vector<8x8xbf16>
    %46 = vector.extract_strided_slice %21 {offsets = [0, 8], sizes = [8, 8], strides = [1, 1]} : vector<8x32xbf16> to vector<8x8xbf16>
    %cst_22 = arith.constant dense<0.000000e+00> : vector<8x8xf32>
    %47 = tpu.matmul %45, %46, %cst_22 {dimension_numbers = #tpu.dot_dimension_numbers<[1], [1], [0], [0], [0, 0, 1, 0], [], []>} : vector<8x8xbf16>, vector<8x8xbf16>, vector<8x8xf32> -> vector<8x8xf32>
    %cst_23 = arith.constant 0.353553385 : f32
    %48 = vector.broadcast %cst_23 : f32 to vector<8x8xf32>
    %49 = arith.mulf %47, %48 : vector<8x8xf32>
    %50 = arith.addf %49, %9 : vector<8x8xf32>
    %cst_24 = arith.constant dense<0xFF800000> : vector<8xf32>
    %51 = vector.multi_reduction <maximumf>, %50, %cst_24 [1] : vector<8x8xf32> to vector<8xf32>
    %52 = vector.shape_cast %51 : vector<8xf32> to vector<8x1xf32>
    %53 = vector.broadcast %52 : vector<8x1xf32> to vector<8x8xf32>
    %54 = arith.subf %50, %53 : vector<8x8xf32>
    %55 = math.exp %54 : vector<8x8xf32>
    %cst_25 = arith.constant dense<0.000000e+00> : vector<8xf32>
    %56 = vector.multi_reduction <add>, %55, %cst_25 [1] : vector<8x8xf32> to vector<8xf32>
    %57 = vector.shape_cast %56 : vector<8xf32> to vector<8x1xf32>
    %58 = vector.broadcast %57 : vector<8x1xf32> to vector<8x8xf32>
    %59 = arith.divf %55, %58 : vector<8x8xf32>
    %60 = arith.truncf %59 : vector<8x8xf32> to vector<8x8xbf16>
    %61 = vector.extract_strided_slice %22 {offsets = [0, 8], sizes = [8, 8], strides = [1, 1]} : vector<8x32xbf16> to vector<8x8xbf16>
    %cst_26 = arith.constant dense<0.000000e+00> : vector<8x8xf32>
    %62 = tpu.matmul %60, %61, %cst_26 {dimension_numbers = #tpu.dot_dimension_numbers<[1], [0], [0], [1], [0, 0, 1, 1], [], []>} : vector<8x8xbf16>, vector<8x8xbf16>, vector<8x8xf32> -> vector<8x8xf32>
    %63 = arith.truncf %62 : vector<8x8xf32> to vector<8x8xbf16>
    %c1 = arith.constant 1 : index
    %c0_27 = arith.constant 0 : index
    %c0_28 = arith.constant 0 : index
    %64 = vector.load %arg5[%c1, %c0_27, %c0_28] : memref<4x8x32xbf16, #tpu.memory_space<vmem>>, vector<1x8x32xbf16>
    %65 = vector.shape_cast %64 : vector<1x8x32xbf16> to vector<8x32xbf16>
    %cst_29 = arith.constant dense<0.000000e+00> : vector<8x32xf32>
    %66 = tpu.matmul %63, %65, %cst_29 {dimension_numbers = #tpu.dot_dimension_numbers<[1], [0], [0], [1], [0, 0, 1, 1], [], []>} : vector<8x8xbf16>, vector<8x32xbf16>, vector<8x32xf32> -> vector<8x32xf32>
    %67 = arith.addf %44, %66 : vector<8x32xf32>
    %68 = vector.extract_strided_slice %20 {offsets = [0, 16], sizes = [8, 8], strides = [1, 1]} : vector<8x32xbf16> to vector<8x8xbf16>
    %69 = vector.extract_strided_slice %21 {offsets = [0, 16], sizes = [8, 8], strides = [1, 1]} : vector<8x32xbf16> to vector<8x8xbf16>
    %cst_30 = arith.constant dense<0.000000e+00> : vector<8x8xf32>
    %70 = tpu.matmul %68, %69, %cst_30 {dimension_numbers = #tpu.dot_dimension_numbers<[1], [1], [0], [0], [0, 0, 1, 0], [], []>} : vector<8x8xbf16>, vector<8x8xbf16>, vector<8x8xf32> -> vector<8x8xf32>
    %cst_31 = arith.constant 0.353553385 : f32
    %71 = vector.broadcast %cst_31 : f32 to vector<8x8xf32>
    %72 = arith.mulf %70, %71 : vector<8x8xf32>
    %73 = arith.addf %72, %9 : vector<8x8xf32>
    %cst_32 = arith.constant dense<0xFF800000> : vector<8xf32>
    %74 = vector.multi_reduction <maximumf>, %73, %cst_32 [1] : vector<8x8xf32> to vector<8xf32>
    %75 = vector.shape_cast %74 : vector<8xf32> to vector<8x1xf32>
    %76 = vector.broadcast %75 : vector<8x1xf32> to vector<8x8xf32>
    %77 = arith.subf %73, %76 : vector<8x8xf32>
    %78 = math.exp %77 : vector<8x8xf32>
    %cst_33 = arith.constant dense<0.000000e+00> : vector<8xf32>
    %79 = vector.multi_reduction <add>, %78, %cst_33 [1] : vector<8x8xf32> to vector<8xf32>
    %80 = vector.shape_cast %79 : vector<8xf32> to vector<8x1xf32>
    %81 = vector.broadcast %80 : vector<8x1xf32> to vector<8x8xf32>
    %82 = arith.divf %78, %81 : vector<8x8xf32>
    %83 = arith.truncf %82 : vector<8x8xf32> to vector<8x8xbf16>
    %84 = vector.extract_strided_slice %22 {offsets = [0, 16], sizes = [8, 8], strides = [1, 1]} : vector<8x32xbf16> to vector<8x8xbf16>
    %cst_34 = arith.constant dense<0.000000e+00> : vector<8x8xf32>
    %85 = tpu.matmul %83, %84, %cst_34 {dimension_numbers = #tpu.dot_dimension_numbers<[1], [0], [0], [1], [0, 0, 1, 1], [], []>} : vector<8x8xbf16>, vector<8x8xbf16>, vector<8x8xf32> -> vector<8x8xf32>
    %86 = arith.truncf %85 : vector<8x8xf32> to vector<8x8xbf16>
    %c2 = arith.constant 2 : index
    %c0_35 = arith.constant 0 : index
    %c0_36 = arith.constant 0 : index
    %87 = vector.load %arg5[%c2, %c0_35, %c0_36] : memref<4x8x32xbf16, #tpu.memory_space<vmem>>, vector<1x8x32xbf16>
    %88 = vector.shape_cast %87 : vector<1x8x32xbf16> to vector<8x32xbf16>
    %cst_37 = arith.constant dense<0.000000e+00> : vector<8x32xf32>
    %89 = tpu.matmul %86, %88, %cst_37 {dimension_numbers = #tpu.dot_dimension_numbers<[1], [0], [0], [1], [0, 0, 1, 1], [], []>} : vector<8x8xbf16>, vector<8x32xbf16>, vector<8x32xf32> -> vector<8x32xf32>
    %90 = arith.addf %67, %89 : vector<8x32xf32>
    %91 = vector.extract_strided_slice %20 {offsets = [0, 24], sizes = [8, 8], strides = [1, 1]} : vector<8x32xbf16> to vector<8x8xbf16>
    %92 = vector.extract_strided_slice %21 {offsets = [0, 24], sizes = [8, 8], strides = [1, 1]} : vector<8x32xbf16> to vector<8x8xbf16>
    %cst_38 = arith.constant dense<0.000000e+00> : vector<8x8xf32>
    %93 = tpu.matmul %91, %92, %cst_38 {dimension_numbers = #tpu.dot_dimension_numbers<[1], [1], [0], [0], [0, 0, 1, 0], [], []>} : vector<8x8xbf16>, vector<8x8xbf16>, vector<8x8xf32> -> vector<8x8xf32>
    %cst_39 = arith.constant 0.353553385 : f32
    %94 = vector.broadcast %cst_39 : f32 to vector<8x8xf32>
    %95 = arith.mulf %93, %94 : vector<8x8xf32>
    %96 = arith.addf %95, %9 : vector<8x8xf32>
    %cst_40 = arith.constant dense<0xFF800000> : vector<8xf32>
    %97 = vector.multi_reduction <maximumf>, %96, %cst_40 [1] : vector<8x8xf32> to vector<8xf32>
    %98 = vector.shape_cast %97 : vector<8xf32> to vector<8x1xf32>
    %99 = vector.broadcast %98 : vector<8x1xf32> to vector<8x8xf32>
    %100 = arith.subf %96, %99 : vector<8x8xf32>
    %101 = math.exp %100 : vector<8x8xf32>
    %cst_41 = arith.constant dense<0.000000e+00> : vector<8xf32>
    %102 = vector.multi_reduction <add>, %101, %cst_41 [1] : vector<8x8xf32> to vector<8xf32>
    %103 = vector.shape_cast %102 : vector<8xf32> to vector<8x1xf32>
    %104 = vector.broadcast %103 : vector<8x1xf32> to vector<8x8xf32>
    %105 = arith.divf %101, %104 : vector<8x8xf32>
    %106 = arith.truncf %105 : vector<8x8xf32> to vector<8x8xbf16>
    %107 = vector.extract_strided_slice %22 {offsets = [0, 24], sizes = [8, 8], strides = [1, 1]} : vector<8x32xbf16> to vector<8x8xbf16>
    %cst_42 = arith.constant dense<0.000000e+00> : vector<8x8xf32>
    %108 = tpu.matmul %106, %107, %cst_42 {dimension_numbers = #tpu.dot_dimension_numbers<[1], [0], [0], [1], [0, 0, 1, 1], [], []>} : vector<8x8xbf16>, vector<8x8xbf16>, vector<8x8xf32> -> vector<8x8xf32>
    %109 = arith.truncf %108 : vector<8x8xf32> to vector<8x8xbf16>
    %c3 = arith.constant 3 : index
    %c0_43 = arith.constant 0 : index
    %c0_44 = arith.constant 0 : index
    %110 = vector.load %arg5[%c3, %c0_43, %c0_44] : memref<4x8x32xbf16, #tpu.memory_space<vmem>>, vector<1x8x32xbf16>
    %111 = vector.shape_cast %110 : vector<1x8x32xbf16> to vector<8x32xbf16>
    %cst_45 = arith.constant dense<0.000000e+00> : vector<8x32xf32>
    %112 = tpu.matmul %109, %111, %cst_45 {dimension_numbers = #tpu.dot_dimension_numbers<[1], [0], [0], [1], [0, 0, 1, 1], [], []>} : vector<8x8xbf16>, vector<8x32xbf16>, vector<8x32xf32> -> vector<8x32xf32>
    %113 = arith.addf %90, %112 : vector<8x32xf32>
    %114 = vector.broadcast %19 : vector<1x32xf32> to vector<8x32xf32>
    %115 = arith.addf %113, %114 : vector<8x32xf32>
    %116 = arith.addf %1, %115 : vector<8x32xf32>
    %c0_46 = arith.constant 0 : index
    %c0_47 = arith.constant 0 : index
    %117 = vector.load %arg7[%c0_46, %c0_47] : memref<1x32xf32, #tpu.memory_space<vmem>>, vector<1x32xf32>
    %c0_48 = arith.constant 0 : index
    %c0_49 = arith.constant 0 : index
    %118 = vector.load %arg8[%c0_48, %c0_49] : memref<1x32xf32, #tpu.memory_space<vmem>>, vector<1x32xf32>
    %cst_50 = arith.constant dense<0.000000e+00> : vector<8xf32>
    %119 = vector.multi_reduction <add>, %116, %cst_50 [1] : vector<8x32xf32> to vector<8xf32>
    %120 = vector.shape_cast %119 : vector<8xf32> to vector<8x1xf32>
    %cst_51 = arith.constant 3.200000e+01 : f32
    %121 = vector.broadcast %cst_51 : f32 to vector<8x1xf32>
    %122 = arith.divf %120, %121 : vector<8x1xf32>
    %123 = vector.broadcast %122 : vector<8x1xf32> to vector<8x32xf32>
    %124 = arith.subf %116, %123 : vector<8x32xf32>
    %125 = arith.mulf %124, %124 : vector<8x32xf32>
    %cst_52 = arith.constant dense<0.000000e+00> : vector<8xf32>
    %126 = vector.multi_reduction <add>, %125, %cst_52 [1] : vector<8x32xf32> to vector<8xf32>
    %127 = vector.shape_cast %126 : vector<8xf32> to vector<8x1xf32>
    %cst_53 = arith.constant 3.200000e+01 : f32
    %128 = vector.broadcast %cst_53 : f32 to vector<8x1xf32>
    %129 = arith.divf %127, %128 : vector<8x1xf32>
    %130 = vector.broadcast %122 : vector<8x1xf32> to vector<8x32xf32>
    %131 = arith.subf %116, %130 : vector<8x32xf32>
    %cst_54 = arith.constant 9.99999974E-6 : f32
    %132 = vector.broadcast %cst_54 : f32 to vector<8x1xf32>
    %133 = arith.addf %129, %132 : vector<8x1xf32>
    %134 = math.rsqrt %133 : vector<8x1xf32>
    %135 = vector.broadcast %134 : vector<8x1xf32> to vector<8x32xf32>
    %136 = arith.mulf %131, %135 : vector<8x32xf32>
    %137 = vector.broadcast %117 : vector<1x32xf32> to vector<8x32xf32>
    %138 = arith.mulf %136, %137 : vector<8x32xf32>
    %139 = vector.broadcast %118 : vector<1x32xf32> to vector<8x32xf32>
    %140 = arith.addf %138, %139 : vector<8x32xf32>
    %c0_55 = arith.constant 0 : index
    %c0_56 = arith.constant 0 : index
    %141 = vector.load %arg9[%c0_55, %c0_56] : memref<32x32xbf16, #tpu.memory_space<vmem>>, vector<32x32xbf16>
    %142 = arith.truncf %140 : vector<8x32xf32> to vector<8x32xbf16>
    %cst_57 = arith.constant dense<0.000000e+00> : vector<8x32xf32>
    %143 = tpu.matmul %142, %141, %cst_57 {dimension_numbers = #tpu.dot_dimension_numbers<[1], [0], [0], [1], [0, 0, 1, 1], [], []>} : vector<8x32xbf16>, vector<32x32xbf16>, vector<8x32xf32> -> vector<8x32xf32>
    %c0_58 = arith.constant 0 : index
    %c0_59 = arith.constant 0 : index
    %144 = vector.load %arg10[%c0_58, %c0_59] : memref<1x32xf32, #tpu.memory_space<vmem>>, vector<1x32xf32>
    %145 = vector.broadcast %144 : vector<1x32xf32> to vector<8x32xf32>
    %146 = arith.addf %143, %145 : vector<8x32xf32>
    %c0_60 = arith.constant 0 : index
    %c0_61 = arith.constant 0 : index
    %147 = vector.load %arg11[%c0_60, %c0_61] : memref<32x64xbf16, #tpu.memory_space<vmem>>, vector<32x64xbf16>
    %148 = arith.truncf %3 : vector<8x32xf32> to vector<8x32xbf16>
    %cst_62 = arith.constant dense<0.000000e+00> : vector<8x64xf32>
    %149 = tpu.matmul %148, %147, %cst_62 {dimension_numbers = #tpu.dot_dimension_numbers<[1], [0], [0], [1], [0, 0, 1, 1], [], []>} : vector<8x32xbf16>, vector<32x64xbf16>, vector<8x64xf32> -> vector<8x64xf32>
    %c0_63 = arith.constant 0 : index
    %c0_64 = arith.constant 0 : index
    %150 = vector.load %arg12[%c0_63, %c0_64] : memref<1x64xf32, #tpu.memory_space<vmem>>, vector<1x64xf32>
    %151 = vector.broadcast %150 : vector<1x64xf32> to vector<8x64xf32>
    %152 = arith.addf %149, %151 : vector<8x64xf32>
    %153 = vector.extract_strided_slice %152 {offsets = [0, 0], sizes = [8, 32], strides = [1, 1]} : vector<8x64xf32> to vector<8x32xf32>
    %154 = vector.extract_strided_slice %152 {offsets = [0, 32], sizes = [8, 32], strides = [1, 1]} : vector<8x64xf32> to vector<8x32xf32>
    %c0_65 = arith.constant 0 : index
    %c0_66 = arith.constant 0 : index
    %155 = vector.load %arg14[%c0_65, %c0_66] : memref<1x32xf32, #tpu.memory_space<vmem>>, vector<1x32xf32>
    %156 = arith.truncf %146 : vector<8x32xf32> to vector<8x32xbf16>
    %157 = arith.truncf %153 : vector<8x32xf32> to vector<8x32xbf16>
    %158 = arith.truncf %154 : vector<8x32xf32> to vector<8x32xbf16>
    %159 = vector.extract_strided_slice %156 {offsets = [0, 0], sizes = [8, 8], strides = [1, 1]} : vector<8x32xbf16> to vector<8x8xbf16>
    %160 = vector.extract_strided_slice %157 {offsets = [0, 0], sizes = [8, 8], strides = [1, 1]} : vector<8x32xbf16> to vector<8x8xbf16>
    %cst_67 = arith.constant dense<0.000000e+00> : vector<8x8xf32>
    %161 = tpu.matmul %159, %160, %cst_67 {dimension_numbers = #tpu.dot_dimension_numbers<[1], [1], [0], [0], [0, 0, 1, 0], [], []>} : vector<8x8xbf16>, vector<8x8xbf16>, vector<8x8xf32> -> vector<8x8xf32>
    %cst_68 = arith.constant 0.353553385 : f32
    %162 = vector.broadcast %cst_68 : f32 to vector<8x8xf32>
    %163 = arith.mulf %161, %162 : vector<8x8xf32>
    %cst_69 = arith.constant dense<0xFF800000> : vector<8xf32>
    %164 = vector.multi_reduction <maximumf>, %163, %cst_69 [1] : vector<8x8xf32> to vector<8xf32>
    %165 = vector.shape_cast %164 : vector<8xf32> to vector<8x1xf32>
    %166 = vector.broadcast %165 : vector<8x1xf32> to vector<8x8xf32>
    %167 = arith.subf %163, %166 : vector<8x8xf32>
    %168 = math.exp %167 : vector<8x8xf32>
    %cst_70 = arith.constant dense<0.000000e+00> : vector<8xf32>
    %169 = vector.multi_reduction <add>, %168, %cst_70 [1] : vector<8x8xf32> to vector<8xf32>
    %170 = vector.shape_cast %169 : vector<8xf32> to vector<8x1xf32>
    %171 = vector.broadcast %170 : vector<8x1xf32> to vector<8x8xf32>
    %172 = arith.divf %168, %171 : vector<8x8xf32>
    %173 = arith.truncf %172 : vector<8x8xf32> to vector<8x8xbf16>
    %174 = vector.extract_strided_slice %158 {offsets = [0, 0], sizes = [8, 8], strides = [1, 1]} : vector<8x32xbf16> to vector<8x8xbf16>
    %cst_71 = arith.constant dense<0.000000e+00> : vector<8x8xf32>
    %175 = tpu.matmul %173, %174, %cst_71 {dimension_numbers = #tpu.dot_dimension_numbers<[1], [0], [0], [1], [0, 0, 1, 1], [], []>} : vector<8x8xbf16>, vector<8x8xbf16>, vector<8x8xf32> -> vector<8x8xf32>
    %176 = arith.truncf %175 : vector<8x8xf32> to vector<8x8xbf16>
    %c0_72 = arith.constant 0 : index
    %c0_73 = arith.constant 0 : index
    %c0_74 = arith.constant 0 : index
    %177 = vector.load %arg13[%c0_72, %c0_73, %c0_74] : memref<4x8x32xbf16, #tpu.memory_space<vmem>>, vector<1x8x32xbf16>
    %178 = vector.shape_cast %177 : vector<1x8x32xbf16> to vector<8x32xbf16>
    %cst_75 = arith.constant dense<0.000000e+00> : vector<8x32xf32>
    %179 = tpu.matmul %176, %178, %cst_75 {dimension_numbers = #tpu.dot_dimension_numbers<[1], [0], [0], [1], [0, 0, 1, 1], [], []>} : vector<8x8xbf16>, vector<8x32xbf16>, vector<8x32xf32> -> vector<8x32xf32>
    %180 = vector.extract_strided_slice %156 {offsets = [0, 8], sizes = [8, 8], strides = [1, 1]} : vector<8x32xbf16> to vector<8x8xbf16>
    %181 = vector.extract_strided_slice %157 {offsets = [0, 8], sizes = [8, 8], strides = [1, 1]} : vector<8x32xbf16> to vector<8x8xbf16>
    %cst_76 = arith.constant dense<0.000000e+00> : vector<8x8xf32>
    %182 = tpu.matmul %180, %181, %cst_76 {dimension_numbers = #tpu.dot_dimension_numbers<[1], [1], [0], [0], [0, 0, 1, 0], [], []>} : vector<8x8xbf16>, vector<8x8xbf16>, vector<8x8xf32> -> vector<8x8xf32>
    %cst_77 = arith.constant 0.353553385 : f32
    %183 = vector.broadcast %cst_77 : f32 to vector<8x8xf32>
    %184 = arith.mulf %182, %183 : vector<8x8xf32>
    %cst_78 = arith.constant dense<0xFF800000> : vector<8xf32>
    %185 = vector.multi_reduction <maximumf>, %184, %cst_78 [1] : vector<8x8xf32> to vector<8xf32>
    %186 = vector.shape_cast %185 : vector<8xf32> to vector<8x1xf32>
    %187 = vector.broadcast %186 : vector<8x1xf32> to vector<8x8xf32>
    %188 = arith.subf %184, %187 : vector<8x8xf32>
    %189 = math.exp %188 : vector<8x8xf32>
    %cst_79 = arith.constant dense<0.000000e+00> : vector<8xf32>
    %190 = vector.multi_reduction <add>, %189, %cst_79 [1] : vector<8x8xf32> to vector<8xf32>
    %191 = vector.shape_cast %190 : vector<8xf32> to vector<8x1xf32>
    %192 = vector.broadcast %191 : vector<8x1xf32> to vector<8x8xf32>
    %193 = arith.divf %189, %192 : vector<8x8xf32>
    %194 = arith.truncf %193 : vector<8x8xf32> to vector<8x8xbf16>
    %195 = vector.extract_strided_slice %158 {offsets = [0, 8], sizes = [8, 8], strides = [1, 1]} : vector<8x32xbf16> to vector<8x8xbf16>
    %cst_80 = arith.constant dense<0.000000e+00> : vector<8x8xf32>
    %196 = tpu.matmul %194, %195, %cst_80 {dimension_numbers = #tpu.dot_dimension_numbers<[1], [0], [0], [1], [0, 0, 1, 1], [], []>} : vector<8x8xbf16>, vector<8x8xbf16>, vector<8x8xf32> -> vector<8x8xf32>
    %197 = arith.truncf %196 : vector<8x8xf32> to vector<8x8xbf16>
    %c1_81 = arith.constant 1 : index
    %c0_82 = arith.constant 0 : index
    %c0_83 = arith.constant 0 : index
    %198 = vector.load %arg13[%c1_81, %c0_82, %c0_83] : memref<4x8x32xbf16, #tpu.memory_space<vmem>>, vector<1x8x32xbf16>
    %199 = vector.shape_cast %198 : vector<1x8x32xbf16> to vector<8x32xbf16>
    %cst_84 = arith.constant dense<0.000000e+00> : vector<8x32xf32>
    %200 = tpu.matmul %197, %199, %cst_84 {dimension_numbers = #tpu.dot_dimension_numbers<[1], [0], [0], [1], [0, 0, 1, 1], [], []>} : vector<8x8xbf16>, vector<8x32xbf16>, vector<8x32xf32> -> vector<8x32xf32>
    %201 = arith.addf %179, %200 : vector<8x32xf32>
    %202 = vector.extract_strided_slice %156 {offsets = [0, 16], sizes = [8, 8], strides = [1, 1]} : vector<8x32xbf16> to vector<8x8xbf16>
    %203 = vector.extract_strided_slice %157 {offsets = [0, 16], sizes = [8, 8], strides = [1, 1]} : vector<8x32xbf16> to vector<8x8xbf16>
    %cst_85 = arith.constant dense<0.000000e+00> : vector<8x8xf32>
    %204 = tpu.matmul %202, %203, %cst_85 {dimension_numbers = #tpu.dot_dimension_numbers<[1], [1], [0], [0], [0, 0, 1, 0], [], []>} : vector<8x8xbf16>, vector<8x8xbf16>, vector<8x8xf32> -> vector<8x8xf32>
    %cst_86 = arith.constant 0.353553385 : f32
    %205 = vector.broadcast %cst_86 : f32 to vector<8x8xf32>
    %206 = arith.mulf %204, %205 : vector<8x8xf32>
    %cst_87 = arith.constant dense<0xFF800000> : vector<8xf32>
    %207 = vector.multi_reduction <maximumf>, %206, %cst_87 [1] : vector<8x8xf32> to vector<8xf32>
    %208 = vector.shape_cast %207 : vector<8xf32> to vector<8x1xf32>
    %209 = vector.broadcast %208 : vector<8x1xf32> to vector<8x8xf32>
    %210 = arith.subf %206, %209 : vector<8x8xf32>
    %211 = math.exp %210 : vector<8x8xf32>
    %cst_88 = arith.constant dense<0.000000e+00> : vector<8xf32>
    %212 = vector.multi_reduction <add>, %211, %cst_88 [1] : vector<8x8xf32> to vector<8xf32>
    %213 = vector.shape_cast %212 : vector<8xf32> to vector<8x1xf32>
    %214 = vector.broadcast %213 : vector<8x1xf32> to vector<8x8xf32>
    %215 = arith.divf %211, %214 : vector<8x8xf32>
    %216 = arith.truncf %215 : vector<8x8xf32> to vector<8x8xbf16>
    %217 = vector.extract_strided_slice %158 {offsets = [0, 16], sizes = [8, 8], strides = [1, 1]} : vector<8x32xbf16> to vector<8x8xbf16>
    %cst_89 = arith.constant dense<0.000000e+00> : vector<8x8xf32>
    %218 = tpu.matmul %216, %217, %cst_89 {dimension_numbers = #tpu.dot_dimension_numbers<[1], [0], [0], [1], [0, 0, 1, 1], [], []>} : vector<8x8xbf16>, vector<8x8xbf16>, vector<8x8xf32> -> vector<8x8xf32>
    %219 = arith.truncf %218 : vector<8x8xf32> to vector<8x8xbf16>
    %c2_90 = arith.constant 2 : index
    %c0_91 = arith.constant 0 : index
    %c0_92 = arith.constant 0 : index
    %220 = vector.load %arg13[%c2_90, %c0_91, %c0_92] : memref<4x8x32xbf16, #tpu.memory_space<vmem>>, vector<1x8x32xbf16>
    %221 = vector.shape_cast %220 : vector<1x8x32xbf16> to vector<8x32xbf16>
    %cst_93 = arith.constant dense<0.000000e+00> : vector<8x32xf32>
    %222 = tpu.matmul %219, %221, %cst_93 {dimension_numbers = #tpu.dot_dimension_numbers<[1], [0], [0], [1], [0, 0, 1, 1], [], []>} : vector<8x8xbf16>, vector<8x32xbf16>, vector<8x32xf32> -> vector<8x32xf32>
    %223 = arith.addf %201, %222 : vector<8x32xf32>
    %224 = vector.extract_strided_slice %156 {offsets = [0, 24], sizes = [8, 8], strides = [1, 1]} : vector<8x32xbf16> to vector<8x8xbf16>
    %225 = vector.extract_strided_slice %157 {offsets = [0, 24], sizes = [8, 8], strides = [1, 1]} : vector<8x32xbf16> to vector<8x8xbf16>
    %cst_94 = arith.constant dense<0.000000e+00> : vector<8x8xf32>
    %226 = tpu.matmul %224, %225, %cst_94 {dimension_numbers = #tpu.dot_dimension_numbers<[1], [1], [0], [0], [0, 0, 1, 0], [], []>} : vector<8x8xbf16>, vector<8x8xbf16>, vector<8x8xf32> -> vector<8x8xf32>
    %cst_95 = arith.constant 0.353553385 : f32
    %227 = vector.broadcast %cst_95 : f32 to vector<8x8xf32>
    %228 = arith.mulf %226, %227 : vector<8x8xf32>
    %cst_96 = arith.constant dense<0xFF800000> : vector<8xf32>
    %229 = vector.multi_reduction <maximumf>, %228, %cst_96 [1] : vector<8x8xf32> to vector<8xf32>
    %230 = vector.shape_cast %229 : vector<8xf32> to vector<8x1xf32>
    %231 = vector.broadcast %230 : vector<8x1xf32> to vector<8x8xf32>
    %232 = arith.subf %228, %231 : vector<8x8xf32>
    %233 = math.exp %232 : vector<8x8xf32>
    %cst_97 = arith.constant dense<0.000000e+00> : vector<8xf32>
    %234 = vector.multi_reduction <add>, %233, %cst_97 [1] : vector<8x8xf32> to vector<8xf32>
    %235 = vector.shape_cast %234 : vector<8xf32> to vector<8x1xf32>
    %236 = vector.broadcast %235 : vector<8x1xf32> to vector<8x8xf32>
    %237 = arith.divf %233, %236 : vector<8x8xf32>
    %238 = arith.truncf %237 : vector<8x8xf32> to vector<8x8xbf16>
    %239 = vector.extract_strided_slice %158 {offsets = [0, 24], sizes = [8, 8], strides = [1, 1]} : vector<8x32xbf16> to vector<8x8xbf16>
    %cst_98 = arith.constant dense<0.000000e+00> : vector<8x8xf32>
    %240 = tpu.matmul %238, %239, %cst_98 {dimension_numbers = #tpu.dot_dimension_numbers<[1], [0], [0], [1], [0, 0, 1, 1], [], []>} : vector<8x8xbf16>, vector<8x8xbf16>, vector<8x8xf32> -> vector<8x8xf32>
    %241 = arith.truncf %240 : vector<8x8xf32> to vector<8x8xbf16>
    %c3_99 = arith.constant 3 : index
    %c0_100 = arith.constant 0 : index
    %c0_101 = arith.constant 0 : index
    %242 = vector.load %arg13[%c3_99, %c0_100, %c0_101] : memref<4x8x32xbf16, #tpu.memory_space<vmem>>, vector<1x8x32xbf16>
    %243 = vector.shape_cast %242 : vector<1x8x32xbf16> to vector<8x32xbf16>
    %cst_102 = arith.constant dense<0.000000e+00> : vector<8x32xf32>
    %244 = tpu.matmul %241, %243, %cst_102 {dimension_numbers = #tpu.dot_dimension_numbers<[1], [0], [0], [1], [0, 0, 1, 1], [], []>} : vector<8x8xbf16>, vector<8x32xbf16>, vector<8x32xf32> -> vector<8x32xf32>
    %245 = arith.addf %223, %244 : vector<8x32xf32>
    %246 = vector.broadcast %155 : vector<1x32xf32> to vector<8x32xf32>
    %247 = arith.addf %245, %246 : vector<8x32xf32>
    %248 = arith.addf %140, %247 : vector<8x32xf32>
    %c0_103 = arith.constant 0 : index
    %c0_104 = arith.constant 0 : index
    %249 = vector.load %arg15[%c0_103, %c0_104] : memref<1x32xf32, #tpu.memory_space<vmem>>, vector<1x32xf32>
    %c0_105 = arith.constant 0 : index
    %c0_106 = arith.constant 0 : index
    %250 = vector.load %arg16[%c0_105, %c0_106] : memref<1x32xf32, #tpu.memory_space<vmem>>, vector<1x32xf32>
    %cst_107 = arith.constant dense<0.000000e+00> : vector<8xf32>
    %251 = vector.multi_reduction <add>, %248, %cst_107 [1] : vector<8x32xf32> to vector<8xf32>
    %252 = vector.shape_cast %251 : vector<8xf32> to vector<8x1xf32>
    %cst_108 = arith.constant 3.200000e+01 : f32
    %253 = vector.broadcast %cst_108 : f32 to vector<8x1xf32>
    %254 = arith.divf %252, %253 : vector<8x1xf32>
    %255 = vector.broadcast %254 : vector<8x1xf32> to vector<8x32xf32>
    %256 = arith.subf %248, %255 : vector<8x32xf32>
    %257 = arith.mulf %256, %256 : vector<8x32xf32>
    %cst_109 = arith.constant dense<0.000000e+00> : vector<8xf32>
    %258 = vector.multi_reduction <add>, %257, %cst_109 [1] : vector<8x32xf32> to vector<8xf32>
    %259 = vector.shape_cast %258 : vector<8xf32> to vector<8x1xf32>
    %cst_110 = arith.constant 3.200000e+01 : f32
    %260 = vector.broadcast %cst_110 : f32 to vector<8x1xf32>
    %261 = arith.divf %259, %260 : vector<8x1xf32>
    %262 = vector.broadcast %254 : vector<8x1xf32> to vector<8x32xf32>
    %263 = arith.subf %248, %262 : vector<8x32xf32>
    %cst_111 = arith.constant 9.99999974E-6 : f32
    %264 = vector.broadcast %cst_111 : f32 to vector<8x1xf32>
    %265 = arith.addf %261, %264 : vector<8x1xf32>
    %266 = math.rsqrt %265 : vector<8x1xf32>
    %267 = vector.broadcast %266 : vector<8x1xf32> to vector<8x32xf32>
    %268 = arith.mulf %263, %267 : vector<8x32xf32>
    %269 = vector.broadcast %249 : vector<1x32xf32> to vector<8x32xf32>
    %270 = arith.mulf %268, %269 : vector<8x32xf32>
    %271 = vector.broadcast %250 : vector<1x32xf32> to vector<8x32xf32>
    %272 = arith.addf %270, %271 : vector<8x32xf32>
    %c0_112 = arith.constant 0 : index
    %c0_113 = arith.constant 0 : index
    %273 = vector.load %arg17[%c0_112, %c0_113] : memref<32x64xbf16, #tpu.memory_space<vmem>>, vector<32x64xbf16>
    %274 = arith.truncf %272 : vector<8x32xf32> to vector<8x32xbf16>
    %cst_114 = arith.constant dense<0.000000e+00> : vector<8x64xf32>
    %275 = tpu.matmul %274, %273, %cst_114 {dimension_numbers = #tpu.dot_dimension_numbers<[1], [0], [0], [1], [0, 0, 1, 1], [], []>} : vector<8x32xbf16>, vector<32x64xbf16>, vector<8x64xf32> -> vector<8x64xf32>
    %c0_115 = arith.constant 0 : index
    %c0_116 = arith.constant 0 : index
    %276 = vector.load %arg18[%c0_115, %c0_116] : memref<1x64xf32, #tpu.memory_space<vmem>>, vector<1x64xf32>
    %277 = vector.broadcast %276 : vector<1x64xf32> to vector<8x64xf32>
    %278 = arith.addf %275, %277 : vector<8x64xf32>
    %cst_117 = arith.constant 0.000000e+00 : f32
    %279 = vector.broadcast %cst_117 : f32 to vector<8x64xf32>
    %280 = arith.maximumf %278, %279 : vector<8x64xf32>
    %c0_118 = arith.constant 0 : index
    %c0_119 = arith.constant 0 : index
    %281 = vector.load %arg19[%c0_118, %c0_119] : memref<64x32xbf16, #tpu.memory_space<vmem>>, vector<64x32xbf16>
    %282 = arith.truncf %280 : vector<8x64xf32> to vector<8x64xbf16>
    %cst_120 = arith.constant dense<0.000000e+00> : vector<8x32xf32>
    %283 = tpu.matmul %282, %281, %cst_120 {dimension_numbers = #tpu.dot_dimension_numbers<[1], [0], [0], [1], [0, 0, 1, 1], [], []>} : vector<8x64xbf16>, vector<64x32xbf16>, vector<8x32xf32> -> vector<8x32xf32>
    %284 = arith.addf %272, %283 : vector<8x32xf32>
    %c0_121 = arith.constant 0 : index
    %c0_122 = arith.constant 0 : index
    %285 = vector.load %arg20[%c0_121, %c0_122] : memref<1x32xf32, #tpu.memory_space<vmem>>, vector<1x32xf32>
    %286 = vector.broadcast %285 : vector<1x32xf32> to vector<8x32xf32>
    %287 = arith.addf %284, %286 : vector<8x32xf32>
    %c0_123 = arith.constant 0 : index
    %c0_124 = arith.constant 0 : index
    %288 = vector.load %arg21[%c0_123, %c0_124] : memref<1x32xf32, #tpu.memory_space<vmem>>, vector<1x32xf32>
    %c0_125 = arith.constant 0 : index
    %c0_126 = arith.constant 0 : index
    %289 = vector.load %arg22[%c0_125, %c0_126] : memref<1x32xf32, #tpu.memory_space<vmem>>, vector<1x32xf32>
    %cst_127 = arith.constant dense<0.000000e+00> : vector<8xf32>
    %290 = vector.multi_reduction <add>, %287, %cst_127 [1] : vector<8x32xf32> to vector<8xf32>
    %291 = vector.shape_cast %290 : vector<8xf32> to vector<8x1xf32>
    %cst_128 = arith.constant 3.200000e+01 : f32
    %292 = vector.broadcast %cst_128 : f32 to vector<8x1xf32>
    %293 = arith.divf %291, %292 : vector<8x1xf32>
    %294 = vector.broadcast %293 : vector<8x1xf32> to vector<8x32xf32>
    %295 = arith.subf %287, %294 : vector<8x32xf32>
    %296 = arith.mulf %295, %295 : vector<8x32xf32>
    %cst_129 = arith.constant dense<0.000000e+00> : vector<8xf32>
    %297 = vector.multi_reduction <add>, %296, %cst_129 [1] : vector<8x32xf32> to vector<8xf32>
    %298 = vector.shape_cast %297 : vector<8xf32> to vector<8x1xf32>
    %cst_130 = arith.constant 3.200000e+01 : f32
    %299 = vector.broadcast %cst_130 : f32 to vector<8x1xf32>
    %300 = arith.divf %298, %299 : vector<8x1xf32>
    %301 = vector.broadcast %293 : vector<8x1xf32> to vector<8x32xf32>
    %302 = arith.subf %287, %301 : vector<8x32xf32>
    %cst_131 = arith.constant 9.99999974E-6 : f32
    %303 = vector.broadcast %cst_131 : f32 to vector<8x1xf32>
    %304 = arith.addf %300, %303 : vector<8x1xf32>
    %305 = math.rsqrt %304 : vector<8x1xf32>
    %306 = vector.broadcast %305 : vector<8x1xf32> to vector<8x32xf32>
    %307 = arith.mulf %302, %306 : vector<8x32xf32>
    %308 = vector.broadcast %288 : vector<1x32xf32> to vector<8x32xf32>
    %309 = arith.mulf %307, %308 : vector<8x32xf32>
    %310 = vector.broadcast %289 : vector<1x32xf32> to vector<8x32xf32>
    %311 = arith.addf %309, %310 : vector<8x32xf32>
    %c0_132 = arith.constant 0 : index
    %c0_133 = arith.constant 0 : index
    %312 = vector.load %arg23[%c0_132, %c0_133] : memref<1x32xf32, #tpu.memory_space<vmem>>, vector<1x32xf32>
    %c0_134 = arith.constant 0 : index
    %c0_135 = arith.constant 0 : index
    %313 = vector.load %arg24[%c0_134, %c0_135] : memref<1x32xf32, #tpu.memory_space<vmem>>, vector<1x32xf32>
    %cst_136 = arith.constant dense<0.000000e+00> : vector<8xf32>
    %314 = vector.multi_reduction <add>, %311, %cst_136 [1] : vector<8x32xf32> to vector<8xf32>
    %315 = vector.shape_cast %314 : vector<8xf32> to vector<8x1xf32>
    %cst_137 = arith.constant 3.200000e+01 : f32
    %316 = vector.broadcast %cst_137 : f32 to vector<8x1xf32>
    %317 = arith.divf %315, %316 : vector<8x1xf32>
    %318 = vector.broadcast %317 : vector<8x1xf32> to vector<8x32xf32>
    %319 = arith.subf %311, %318 : vector<8x32xf32>
    %320 = arith.mulf %319, %319 : vector<8x32xf32>
    %cst_138 = arith.constant dense<0.000000e+00> : vector<8xf32>
    %321 = vector.multi_reduction <add>, %320, %cst_138 [1] : vector<8x32xf32> to vector<8xf32>
    %322 = vector.shape_cast %321 : vector<8xf32> to vector<8x1xf32>
    %cst_139 = arith.constant 3.200000e+01 : f32
    %323 = vector.broadcast %cst_139 : f32 to vector<8x1xf32>
    %324 = arith.divf %322, %323 : vector<8x1xf32>
    %325 = vector.broadcast %317 : vector<8x1xf32> to vector<8x32xf32>
    %326 = arith.subf %311, %325 : vector<8x32xf32>
    %cst_140 = arith.constant 9.99999974E-6 : f32
    %327 = vector.broadcast %cst_140 : f32 to vector<8x1xf32>
    %328 = arith.addf %324, %327 : vector<8x1xf32>
    %329 = math.rsqrt %328 : vector<8x1xf32>
    %330 = vector.broadcast %329 : vector<8x1xf32> to vector<8x32xf32>
    %331 = arith.mulf %326, %330 : vector<8x32xf32>
    %332 = vector.broadcast %312 : vector<1x32xf32> to vector<8x32xf32>
    %333 = arith.mulf %331, %332 : vector<8x32xf32>
    %334 = vector.broadcast %313 : vector<1x32xf32> to vector<8x32xf32>
    %335 = arith.addf %333, %334 : vector<8x32xf32>
    %c0_141 = arith.constant 0 : index
    %c0_142 = arith.constant 0 : index
    %c0_143 = arith.constant 0 : index
    %336 = vector.load %arg25[%c0_141, %c0_142, %c0_143] : memref<1x8x32xf32, #tpu.memory_space<vmem>>, vector<1x8x32xf32>
    %337 = vector.shape_cast %336 : vector<1x8x32xf32> to vector<8x32xf32>
    %338 = vector.shape_cast %335 : vector<8x32xf32> to vector<1x8x32xf32>
    tpu.vector_store %arg25[%c0_141, %c0_142, %c0_143], %338 {strides = array<i32>} : memref<1x8x32xf32, #tpu.memory_space<vmem>>, vector<1x8x32xf32>,
    return
  }
  func.func @transform_0(%arg0: i32) -> (i32, i32, i32) {
    %c0_i32 = arith.constant 0 : i32
    %c0_i32_0 = arith.constant 0 : i32
    %c0_i32_1 = arith.constant 0 : i32
    return %arg0, %c0_i32, %c0_i32_0 : i32, i32, i32
  }
  func.func @transform_1(%arg0: i32) -> (i32, i32, i32) {
    %c0_i32 = arith.constant 0 : i32
    %c0_i32_0 = arith.constant 0 : i32
    %c0_i32_1 = arith.constant 0 : i32
    return %arg0, %c0_i32, %c0_i32_0 : i32, i32, i32
  }
  func.func @transform_2(%arg0: i32) -> (i32, i32) {
    %c0_i32 = arith.constant 0 : i32
    %c0_i32_0 = arith.constant 0 : i32
    %c0_i32_1 = arith.constant 0 : i32
    return %c0_i32, %c0_i32_0 : i32, i32
  }
  func.func @transform_3(%arg0: i32) -> (i32, i32) {
    %c0_i32 = arith.constant 0 : i32
    %c0_i32_0 = arith.constant 0 : i32
    %c0_i32_1 = arith.constant 0 : i32
    return %c0_i32, %c0_i32_0 : i32, i32
  }
  func.func @transform_4(%arg0: i32) -> (i32, i32, i32) {
    %c0_i32 = arith.constant 0 : i32
    %c0_i32_0 = arith.constant 0 : i32
    %c0_i32_1 = arith.constant 0 : i32
    %c0_i32_2 = arith.constant 0 : i32
    return %c0_i32, %c0_i32_0, %c0_i32_1 : i32, i32, i32
  }
  func.func @transform_5(%arg0: i32) -> (i32, i32) {
    %c0_i32 = arith.constant 0 : i32
    %c0_i32_0 = arith.constant 0 : i32
    %c0_i32_1 = arith.constant 0 : i32
    return %c0_i32, %c0_i32_0 : i32, i32
  }
  func.func @transform_6(%arg0: i32) -> (i32, i32) {
    %c0_i32 = arith.constant 0 : i32
    %c0_i32_0 = arith.constant 0 : i32
    %c0_i32_1 = arith.constant 0 : i32
    return %c0_i32, %c0_i32_0 : i32, i32
  }
  func.func @transform_7(%arg0: i32) -> (i32, i32) {
    %c0_i32 = arith.constant 0 : i32
    %c0_i32_0 = arith.constant 0 : i32
    %c0_i32_1 = arith.constant 0 : i32
    return %c0_i32, %c0_i32_0 : i32, i32
  }
  func.func @transform_8(%arg0: i32) -> (i32, i32) {
    %c0_i32 = arith.constant 0 : i32
    %c0_i32_0 = arith.constant 0 : i32
    %c0_i32_1 = arith.constant 0 : i32
    return %c0_i32, %c0_i32_0 : i32, i32
  }
  func.func @transform_9(%arg0: i32) -> (i32, i32) {
    %c0_i32 = arith.constant 0 : i32
    %c0_i32_0 = arith.constant 0 : i32
    %c0_i32_1 = arith.constant 0 : i32
    return %c0_i32, %c0_i32_0 : i32, i32
  }
  func.func @transform_10(%arg0: i32) -> (i32, i32) {
    %c0_i32 = arith.constant 0 : i32
    %c0_i32_0 = arith.constant 0 : i32
    %c0_i32_1 = arith.constant 0 : i32
    return %c0_i32, %c0_i32_0 : i32, i32
  }
  func.func @transform_11(%arg0: i32) -> (i32, i32) {
    %c0_i32 = arith.constant 0 : i32
    %c0_i32_0 = arith.constant 0 : i32
    %c0_i32_1 = arith.constant 0 : i32
    return %c0_i32, %c0_i32_0 : i32, i32
  }
  func.func @transform_12(%arg0: i32) -> (i32, i32, i32) {
    %c0_i32 = arith.constant 0 : i32
    %c0_i32_0 = arith.constant 0 : i32
    %c0_i32_1 = arith.constant 0 : i32
    %c0_i32_2 = arith.constant 0 : i32
    return %c0_i32, %c0_i32_0, %c0_i32_1 : i32, i32, i32
  }
  func.func @transform_13(%arg0: i32) -> (i32, i32) {
    %c0_i32 = arith.constant 0 : i32
    %c0_i32_0 = arith.constant 0 : i32
    %c0_i32_1 = arith.constant 0 : i32
    return %c0_i32, %c0_i32_0 : i32, i32
  }
  func.func @transform_14(%arg0: i32) -> (i32, i32) {
    %c0_i32 = arith.constant 0 : i32
    %c0_i32_0 = arith.constant 0 : i32
    %c0_i32_1 = arith.constant 0 : i32
    return %c0_i32, %c0_i32_0 : i32, i32
  }
  func.func @transform_15(%arg0: i32) -> (i32, i32) {
    %c0_i32 = arith.constant 0 : i32
    %c0_i32_0 = arith.constant 0 : i32
    %c0_i32_1 = arith.constant 0 : i32
    return %c0_i32, %c0_i32_0 : i32, i32
  }
  func.func @transform_16(%arg0: i32) -> (i32, i32) {
    %c0_i32 = arith.constant 0 : i32
    %c0_i32_0 = arith.constant 0 : i32
    %c0_i32_1 = arith.constant 0 : i32
    return %c0_i32, %c0_i32_0 : i32, i32
  }
  func.func @transform_17(%arg0: i32) -> (i32, i32) {
    %c0_i32 = arith.constant 0 : i32
    %c0_i32_0 = arith.constant 0 : i32
    %c0_i32_1 = arith.constant 0 : i32
    return %c0_i32, %c0_i32_0 : i32, i32
  }
  func.func @transform_18(%arg0: i32) -> (i32, i32) {
    %c0_i32 = arith.constant 0 : i32
    %c0_i32_0 = arith.constant 0 : i32
    %c0_i32_1 = arith.constant 0 : i32
    return %c0_i32, %c0_i32_0 : i32, i32
  }
  func.func @transform_19(%arg0: i32) -> (i32, i32) {
    %c0_i32 = arith.constant 0 : i32
    %c0_i32_0 = arith.constant 0 : i32
    %c0_i32_1 = arith.constant 0 : i32
    return %c0_i32, %c0_i32_0 : i32, i32
  }
  func.func @transform_20(%arg0: i32) -> (i32, i32) {
    %c0_i32 = arith.constant 0 : i32
    %c0_i32_0 = arith.constant 0 : i32
    %c0_i32_1 = arith.constant 0 : i32
    return %c0_i32, %c0_i32_0 : i32, i32
  }
  func.func @transform_21(%arg0: i32) -> (i32, i32) {
    %c0_i32 = arith.constant 0 : i32
    %c0_i32_0 = arith.constant 0 : i32
    %c0_i32_1 = arith.constant 0 : i32
    return %c0_i32, %c0_i32_0 : i32, i32
  }
  func.func @transform_22(%arg0: i32) -> (i32, i32) {
    %c0_i32 = arith.constant 0 : i32
    %c0_i32_0 = arith.constant 0 : i32
    %c0_i32_1 = arith.constant 0 : i32
    return %c0_i32, %c0_i32_0 : i32, i32
  }
  func.func @transform_23(%arg0: i32) -> (i32, i32) {
    %c0_i32 = arith.constant 0 : i32
    %c0_i32_0 = arith.constant 0 : i32
    %c0_i32_1 = arith.constant 0 : i32
    return %c0_i32, %c0_i32_0 : i32, i32
  }
  func.func @transform_24(%arg0: i32) -> (i32, i32, i32) {
    %c0_i32 = arith.constant 0 : i32
    %c0_i32_0 = arith.constant 0 : i32
    %c0_i32_1 = arith.constant 0 : i32
    return %arg0, %c0_i32, %c0_i32_0 : i32, i32, i32
  }
}

module attributes {stable_mosaic.version = 11 : i64} {
  func.func @_decoder_layer_kernel(%arg0: i32, %arg1: memref<1x8x32xf32, #tpu.memory_space<vmem>>, %arg2: memref<1x8x32xf32, #tpu.memory_space<vmem>>, %arg3: memref<32x96xbf16, #tpu.memory_space<vmem>>, %arg4: memref<1x96xf32, #tpu.memory_space<vmem>>, %arg5: memref<4x8x32xbf16, #tpu.memory_space<vmem>>, %arg6: memref<1x32xf32, #tpu.memory_space<vmem>>, %arg7: memref<1x32xf32, #tpu.memory_space<vmem>>, %arg8: memref<1x32xf32, #tpu.memory_space<vmem>>, %arg9: memref<32x32xbf16, #tpu.memory_space<vmem>>, %arg10: memref<1x32xf32, #tpu.memory_space<vmem>>, %arg11: memref<32x64xbf16, #tpu.memory_space<vmem>>, %arg12: memref<1x64xf32, #tpu.memory_space<vmem>>, %arg13: memref<4x8x32xbf16, #tpu.memory_space<vmem>>, %arg14: memref<1x32xf32, #tpu.memory_space<vmem>>, %arg15: memref<1x32xf32, #tpu.memory_space<vmem>>, %arg16: memref<1x32xf32, #tpu.memory_space<vmem>>, %arg17: memref<32x64xbf16, #tpu.memory_space<vmem>>, %arg18: memref<1x64xf32, #tpu.memory_space<vmem>>, %arg19: memref<64x32xbf16, #tpu.memory_space<vmem>>, %arg20: memref<1x32xf32, #tpu.memory_space<vmem>>, %arg21: memref<1x32xf32, #tpu.memory_space<vmem>>, %arg22: memref<1x32xf32, #tpu.memory_space<vmem>>, %arg23: memref<1x32xf32, #tpu.memory_space<vmem>>, %arg24: memref<1x32xf32, #tpu.memory_space<vmem>>, %arg25: memref<1x8x32xf32, #tpu.memory_space<vmem>>) attributes {dimension_semantics = [#tpu.dimension_semantics<parallel>], iteration_bounds = array<i64: 2>, scalar_prefetch = 0 : i64, scratch_operands = 0 : i64, tpu.core_type = #tpu.core_type<tc>, window_params = [{transform_indices = @transform_0, window_bounds = array<i64: 1, 8, 32>}, {transform_indices = @transform_1, window_bounds = array<i64: 1, 8, 32>}, {pipeline_mode = #tpu.pipeline_mode<synchronous>, transform_indices = @transform_2, window_bounds = array<i64: 32, 96>}, {pipeline_mode = #tpu.pipeline_mode<synchronous>, transform_indices = @transform_3, window_bounds = array<i64: 1, 96>}, {pipeline_mode = #tpu.pipeline_mode<synchronous>, transform_indices = @transform_4, window_bounds = array<i64: 4, 8, 32>}, {pipeline_mode = #tpu.pipeline_mode<synchronous>, transform_indices = @transform_5, window_bounds = array<i64: 1, 32>}, {pipeline_mode = #tpu.pipeline_mode<synchronous>, transform_indices = @transform_6, window_bounds = array<i64: 1, 32>}, {pipeline_mode = #tpu.pipeline_mode<synchronous>, transform_indices = @transform_7, window_bounds = array<i64: 1, 32>}, {pipeline_mode = #tpu.pipeline_mode<synchronous>, transform_indices = @transform_8, window_bounds = array<i64: 32, 32>}, {pipeline_mode = #tpu.pipeline_mode<synchronous>, transform_indices = @transform_9, window_bounds = array<i64: 1, 32>}, {pipeline_mode = #tpu.pipeline_mode<synchronous>, transform_indices = @transform_10, window_bounds = array<i64: 32, 64>}, {pipeline_mode = #tpu.pipeline_mode<synchronous>, transform_indices = @transform_11, window_bounds = array<i64: 1, 64>}, {pipeline_mode = #tpu.pipeline_mode<synchronous>, transform_indices = @transform_12, window_bounds = array<i64: 4, 8, 32>}, {pipeline_mode = #tpu.pipeline_mode<synchronous>, transform_indices = @transform_13, window_bounds = array<i64: 1, 32>}, {pipeline_mode = #tpu.pipeline_mode<synchronous>, transform_indices = @transform_14, window_bounds = array<i64: 1, 32>}, {pipeline_mode = #tpu.pipeline_mode<synchronous>, transform_indices = @transform_15, window_bounds = array<i64: 1, 32>}, {pipeline_mode = #tpu.pipeline_mode<synchronous>, transform_indices = @transform_16, window_bounds = array<i64: 32, 64>}, {pipeline_mode = #tpu.pipeline_mode<synchronous>, transform_indices = @transform_17, window_bounds = array<i64: 1, 64>}, {pipeline_mode = #tpu.pipeline_mode<synchronous>, transform_indices = @transform_18, window_bounds = array<i64: 64, 32>}, {pipeline_mode = #tpu.pipeline_mode<synchronous>, transform_indices = @transform_19, window_bounds = array<i64: 1, 32>}, {pipeline_mode = #tpu.pipeline_mode<synchronous>, transform_indices = @transform_20, window_bounds = array<i64: 1, 32>}, {pipeline_mode = #tpu.pipeline_mode<synchronous>, transform_indices = @transform_21, window_bounds = array<i64: 1, 32>}, {pipeline_mode = #tpu.pipeline_mode<synchronous>, transform_indices = @transform_22, window_bounds = array<i64: 1, 32>}, {pipeline_mode = #tpu.pipeline_mode<synchronous>, transform_indices = @transform_23, window_bounds = array<i64: 1, 32>}, {transform_indices = @transform_24, window_bounds = array<i64: 1, 8, 32>}]} {
    %c0 = arith.constant 0 : index
    %c0_0 = arith.constant 0 : index
    %c0_1 = arith.constant 0 : index
    %0 = vector.load %arg1[%c0, %c0_0, %c0_1] : memref<1x8x32xf32, #tpu.memory_space<vmem>>, vector<1x8x32xf32>
    %1 = vector.shape_cast %0 : vector<1x8x32xf32> to vector<8x32xf32>
    %c0_2 = arith.constant 0 : index
    %c0_3 = arith.constant 0 : index
    %c0_4 = arith.constant 0 : index
    %2 = vector.load %arg2[%c0_2, %c0_3, %c0_4] : memref<1x8x32xf32, #tpu.memory_space<vmem>>, vector<1x8x32xf32>
    %3 = vector.shape_cast %2 : vector<1x8x32xf32> to vector<8x32xf32>
    %4 = tpu.iota {dimensions = array<i32: 0>} : vector<8x8xi32>
    %5 = tpu.iota {dimensions = array<i32: 1>} : vector<8x8xi32>
    %6 = arith.cmpi sge, %4, %5 : vector<8x8xi32>
    %cst = arith.constant 0.000000e+00 : f32
    %cst_5 = arith.constant -1.000000e+09 : f32
    %7 = vector.broadcast %cst : f32 to vector<8x8xf32>
    %8 = vector.broadcast %cst_5 : f32 to vector<8x8xf32>
    %9 = arith.select %6, %7, %8 : vector<8x8xi1>, vector<8x8xf32>
    %c0_6 = arith.constant 0 : index
    %c0_7 = arith.constant 0 : index
    %10 = vector.load %arg3[%c0_6, %c0_7] : memref<32x96xbf16, #tpu.memory_space<vmem>>, vector<32x96xbf16>
    %11 = arith.truncf %1 : vector<8x32xf32> to vector<8x32xbf16>
    %cst_8 = arith.constant dense<0.000000e+00> : vector<8x96xf32>
    %12 = tpu.matmul %11, %10, %cst_8 {dimension_numbers = #tpu.dot_dimension_numbers<[1], [0], [0], [1], [0, 0, 1, 1], [], []>} : vector<8x32xbf16>, vector<32x96xbf16>, vector<8x96xf32> -> vector<8x96xf32>
    %c0_9 = arith.constant 0 : index
    %c0_10 = arith.constant 0 : index
    %13 = vector.load %arg4[%c0_9, %c0_10] : memref<1x96xf32, #tpu.memory_space<vmem>>, vector<1x96xf32>
    %14 = vector.broadcast %13 : vector<1x96xf32> to vector<8x96xf32>
    %15 = arith.addf %12, %14 : vector<8x96xf32>
    %16 = vector.extract_strided_slice %15 {offsets = [0, 0], sizes = [8, 32], strides = [1, 1]} : vector<8x96xf32> to vector<8x32xf32>
    %17 = vector.extract_strided_slice %15 {offsets = [0, 32], sizes = [8, 32], strides = [1, 1]} : vector<8x96xf32> to vector<8x32xf32>
    %18 = vector.extract_strided_slice %15 {offsets = [0, 64], sizes = [8, 32], strides = [1, 1]} : vector<8x96xf32> to vector<8x32xf32>
    %c0_11 = arith.constant 0 : index
    %c0_12 = arith.constant 0 : index
    %19 = vector.load %arg6[%c0_11, %c0_12] : memref<1x32xf32, #tpu.memory_space<vmem>>, vector<1x32xf32>
    %20 = arith.truncf %16 : vector<8x32xf32> to vector<8x32xbf16>
    %21 = arith.truncf %17 : vector<8x32xf32> to vector<8x32xbf16>
    %22 = arith.truncf %18 : vector<8x32xf32> to vector<8x32xbf16>
    %23 = vector.extract_strided_slice %20 {offsets = [0, 0], sizes = [8, 8], strides = [1, 1]} : vector<8x32xbf16> to vector<8x8xbf16>
    %24 = vector.extract_strided_slice %21 {offsets = [0, 0], sizes = [8, 8], strides = [1, 1]} : vector<8x32xbf16> to vector<8x8xbf16>
    %cst_13 = arith.constant dense<0.000000e+00> : vector<8x8xf32>
    %25 = tpu.matmul %23, %24, %cst_13 {dimension_numbers = #tpu.dot_dimension_numbers<[1], [1], [0], [0], [0, 0, 1, 0], [], []>} : vector<8x8xbf16>, vector<8x8xbf16>, vector<8x8xf32> -> vector<8x8xf32>
    %cst_14 = arith.constant 0.353553385 : f32
    %26 = vector.broadcast %cst_14 : f32 to vector<8x8xf32>
    %27 = arith.mulf %25, %26 : vector<8x8xf32>
    %28 = arith.addf %27, %9 : vector<8x8xf32>
    %cst_15 = arith.constant dense<0xFF800000> : vector<8xf32>
    %29 = vector.multi_reduction <maximumf>, %28, %cst_15 [1] : vector<8x8xf32> to vector<8xf32>
    %30 = vector.shape_cast %29 : vector<8xf32> to vector<8x1xf32>
    %31 = vector.broadcast %30 : vector<8x1xf32> to vector<8x8xf32>
    %32 = arith.subf %28, %31 : vector<8x8xf32>
    %33 = math.exp %32 : vector<8x8xf32>
    %cst_16 = arith.constant dense<0.000000e+00> : vector<8xf32>
    %34 = vector.multi_reduction <add>, %33, %cst_16 [1] : vector<8x8xf32> to vector<8xf32>
    %35 = vector.shape_cast %34 : vector<8xf32> to vector<8x1xf32>
    %36 = vector.broadcast %35 : vector<8x1xf32> to vector<8x8xf32>
    %37 = arith.divf %33, %36 : vector<8x8xf32>
    %38 = arith.truncf %37 : vector<8x8xf32> to vector<8x8xbf16>
    %39 = vector.extract_strided_slice %22 {offsets = [0, 0], sizes = [8, 8], strides = [1, 1]} : vector<8x32xbf16> to vector<8x8xbf16>
    %cst_17 = arith.constant dense<0.000000e+00> : vector<8x8xf32>
    %40 = tpu.matmul %38, %39, %cst_17 {dimension_numbers = #tpu.dot_dimension_numbers<[1], [0], [0], [1], [0, 0, 1, 1], [], []>} : vector<8x8xbf16>, vector<8x8xbf16>, vector<8x8xf32> -> vector<8x8xf32>
    %41 = arith.truncf %40 : vector<8x8xf32> to vector<8x8xbf16>
    %c0_18 = arith.constant 0 : index
    %c0_19 = arith.constant 0 : index
    %c0_20 = arith.constant 0 : index
    %42 = vector.load %arg5[%c0_18, %c0_19, %c0_20] : memref<4x8x32xbf16, #tpu.memory_space<vmem>>, vector<1x8x32xbf16>
    %43 = vector.shape_cast %42 : vector<1x8x32xbf16> to vector<8x32xbf16>
    %cst_21 = arith.constant dense<0.000000e+00> : vector<8x32xf32>
    %44 = tpu.matmul %41, %43, %cst_21 {dimension_numbers = #tpu.dot_dimension_numbers<[1], [0], [0], [1], [0, 0, 1, 1], [], []>} : vector<8x8xbf16>, vector<8x32xbf16>, vector<8x32xf32> -> vector<8x32xf32>
    %45 = vector.extract_strided_slice %20 {offsets = [0, 8], sizes = [8, 8], strides = [1, 1]} : vector<8x32xbf16> to vector<8x8xbf16>
    %46 = vector.extract_strided_slice %21 {offsets = [0, 8], sizes = [8, 8], strides = [1, 1]} : vector<8x32xbf16> to vector<8x8xbf16>
    %cst_22 = arith.constant dense<0.000000e+00> : vector<8x8xf32>
    %47 = tpu.matmul %45, %46, %cst_22 {dimension_numbers = #tpu.dot_dimension_numbers<[1], [1], [0], [0], [0, 0, 1, 0], [], []>} : vector<8x8xbf16>, vector<8x8xbf16>, vector<8x8xf32> -> vector<8x8xf32>
    %cst_23 = arith.constant 0.353553385 : f32
    %48 = vector.broadcast %cst_23 : f32 to vector<8x8xf32>
    %49 = arith.mulf %47, %48 : vector<8x8xf32>
    %50 = arith.addf %49, %9 : vector<8x8xf32>
    %cst_24 = arith.constant dense<0xFF800000> : vector<8xf32>
    %51 = vector.multi_reduction <maximumf>, %50, %cst_24 [1] : vector<8x8xf32> to vector<8xf32>
    %52 = vector.shape_cast %51 : vector<8xf32> to vector<8x1xf32>
    %53 = vector.broadcast %52 : vector<8x1xf32> to vector<8x8xf32>
    %54 = arith.subf %50, %53 : vector<8x8xf32>
    %55 = math.exp %54 : vector<8x8xf32>
    %cst_25 = arith.constant dense<0.000000e+00> : vector<8xf32>
    %56 = vector.multi_reduction <add>, %55, %cst_25 [1] : vector<8x8xf32> to vector<8xf32>
    %57 = vector.shape_cast %56 : vector<8xf32> to vector<8x1xf32>
    %58 = vector.broadcast %57 : vector<8x1xf32> to vector<8x8xf32>
    %59 = arith.divf %55, %58 : vector<8x8xf32>
    %60 = arith.truncf %59 : vector<8x8xf32> to vector<8x8xbf16>
    %61 = vector.extract_strided_slice %22 {offsets = [0, 8], sizes = [8, 8], strides = [1, 1]} : vector<8x32xbf16> to vector<8x8xbf16>
    %cst_26 = arith.constant dense<0.000000e+00> : vector<8x8xf32>
    %62 = tpu.matmul %60, %61, %cst_26 {dimension_numbers = #tpu.dot_dimension_numbers<[1], [0], [0], [1], [0, 0, 1, 1], [], []>} : vector<8x8xbf16>, vector<8x8xbf16>, vector<8x8xf32> -> vector<8x8xf32>
    %63 = arith.truncf %62 : vector<8x8xf32> to vector<8x8xbf16>
    %c1 = arith.constant 1 : index
    %c0_27 = arith.constant 0 : index
    %c0_28 = arith.constant 0 : index
    %64 = vector.load %arg5[%c1, %c0_27, %c0_28] : memref<4x8x32xbf16, #tpu.memory_space<vmem>>, vector<1x8x32xbf16>
    %65 = vector.shape_cast %64 : vector<1x8x32xbf16> to vector<8x32xbf16>
    %cst_29 = arith.constant dense<0.000000e+00> : vector<8x32xf32>
    %66 = tpu.matmul %63, %65, %cst_29 {dimension_numbers = #tpu.dot_dimension_numbers<[1], [0], [0], [1], [0, 0, 1, 1], [], []>} : vector<8x8xbf16>, vector<8x32xbf16>, vector<8x32xf32> -> vector<8x32xf32>
    %67 = arith.addf %44, %66 : vector<8x32xf32>
    %68 = vector.extract_strided_slice %20 {offsets = [0, 16], sizes = [8, 8], strides = [1, 1]} : vector<8x32xbf16> to vector<8x8xbf16>
    %69 = vector.extract_strided_slice %21 {offsets = [0, 16], sizes = [8, 8], strides = [1, 1]} : vector<8x32xbf16> to vector<8x8xbf16>
    %cst_30 = arith.constant dense<0.000000e+00> : vector<8x8xf32>
    %70 = tpu.matmul %68, %69, %cst_30 {dimension_numbers = #tpu.dot_dimension_numbers<[1], [1], [0], [0], [0, 0, 1, 0], [], []>} : vector<8x8xbf16>, vector<8x8xbf16>, vector<8x8xf32> -> vector<8x8xf32>
    %cst_31 = arith.constant 0.353553385 : f32
    %71 = vector.broadcast %cst_31 : f32 to vector<8x8xf32>
    %72 = arith.mulf %70, %71 : vector<8x8xf32>
    %73 = arith.addf %72, %9 : vector<8x8xf32>
    %cst_32 = arith.constant dense<0xFF800000> : vector<8xf32>
    %74 = vector.multi_reduction <maximumf>, %73, %cst_32 [1] : vector<8x8xf32> to vector<8xf32>
    %75 = vector.shape_cast %74 : vector<8xf32> to vector<8x1xf32>
    %76 = vector.broadcast %75 : vector<8x1xf32> to vector<8x8xf32>
    %77 = arith.subf %73, %76 : vector<8x8xf32>
    %78 = math.exp %77 : vector<8x8xf32>
    %cst_33 = arith.constant dense<0.000000e+00> : vector<8xf32>
    %79 = vector.multi_reduction <add>, %78, %cst_33 [1] : vector<8x8xf32> to vector<8xf32>
    %80 = vector.shape_cast %79 : vector<8xf32> to vector<8x1xf32>
    %81 = vector.broadcast %80 : vector<8x1xf32> to vector<8x8xf32>
    %82 = arith.divf %78, %81 : vector<8x8xf32>
    %83 = arith.truncf %82 : vector<8x8xf32> to vector<8x8xbf16>
    %84 = vector.extract_strided_slice %22 {offsets = [0, 16], sizes = [8, 8], strides = [1, 1]} : vector<8x32xbf16> to vector<8x8xbf16>
    %cst_34 = arith.constant dense<0.000000e+00> : vector<8x8xf32>
    %85 = tpu.matmul %83, %84, %cst_34 {dimension_numbers = #tpu.dot_dimension_numbers<[1], [0], [0], [1], [0, 0, 1, 1], [], []>} : vector<8x8xbf16>, vector<8x8xbf16>, vector<8x8xf32> -> vector<8x8xf32>
    %86 = arith.truncf %85 : vector<8x8xf32> to vector<8x8xbf16>
    %c2 = arith.constant 2 : index
    %c0_35 = arith.constant 0 : index
    %c0_36 = arith.constant 0 : index
    %87 = vector.load %arg5[%c2, %c0_35, %c0_36] : memref<4x8x32xbf16, #tpu.memory_space<vmem>>, vector<1x8x32xbf16>
    %88 = vector.shape_cast %87 : vector<1x8x32xbf16> to vector<8x32xbf16>
    %cst_37 = arith.constant dense<0.000000e+00> : vector<8x32xf32>
    %89 = tpu.matmul %86, %88, %cst_37 {dimension_numbers = #tpu.dot_dimension_numbers<[1], [0], [0], [1], [0, 0, 1, 1], [], []>} : vector<8x8xbf16>, vector<8x32xbf16>, vector<8x32xf32> -> vector<8x32xf32>
    %90 = arith.addf %67, %89 : vector<8x32xf32>
    %91 = vector.extract_strided_slice %20 {offsets = [0, 24], sizes = [8, 8], strides = [1, 1]} : vector<8x32xbf16> to vector<8x8xbf16>
    %92 = vector.extract_strided_slice %21 {offsets = [0, 24], sizes = [8, 8], strides = [1, 1]} : vector<8x32xbf16> to vector<8x8xbf16>
    %cst_38 = arith.constant dense<0.000000e+00> : vector<8x8xf32>
    %93 = tpu.matmul %91, %92, %cst_38 {dimension_numbers = #tpu.dot_dimension_numbers<[1], [1], [0], [0], [0, 0, 1, 0], [], []>} : vector<8x8xbf16>, vector<8x8xbf16>, vector<8x8xf32> -> vector<8x8xf32>
    %cst_39 = arith.constant 0.353553385 : f32
    %94 = vector.broadcast %cst_39 : f32 to vector<8x8xf32>
    %95 = arith.mulf %93, %94 : vector<8x8xf32>
    %96 = arith.addf %95, %9 : vector<8x8xf32>
    %cst_40 = arith.constant dense<0xFF800000> : vector<8xf32>
    %97 = vector.multi_reduction <maximumf>, %96, %cst_40 [1] : vector<8x8xf32> to vector<8xf32>
    %98 = vector.shape_cast %97 : vector<8xf32> to vector<8x1xf32>
    %99 = vector.broadcast %98 : vector<8x1xf32> to vector<8x8xf32>
    %100 = arith.subf %96, %99 : vector<8x8xf32>
    %101 = math.exp %100 : vector<8x8xf32>
    %cst_41 = arith.constant dense<0.000000e+00> : vector<8xf32>
    %102 = vector.multi_reduction <add>, %101, %cst_41 [1] : vector<8x8xf32> to vector<8xf32>
    %103 = vector.shape_cast %102 : vector<8xf32> to vector<8x1xf32>
    %104 = vector.broadcast %103 : vector<8x1xf32> to vector<8x8xf32>
    %105 = arith.divf %101, %104 : vector<8x8xf32>
    %106 = arith.truncf %105 : vector<8x8xf32> to vector<8x8xbf16>
    %107 = vector.extract_strided_slice %22 {offsets = [0, 24], sizes = [8, 8], strides = [1, 1]} : vector<8x32xbf16> to vector<8x8xbf16>
    %cst_42 = arith.constant dense<0.000000e+00> : vector<8x8xf32>
    %108 = tpu.matmul %106, %107, %cst_42 {dimension_numbers = #tpu.dot_dimension_numbers<[1], [0], [0], [1], [0, 0, 1, 1], [], []>} : vector<8x8xbf16>, vector<8x8xbf16>, vector<8x8xf32> -> vector<8x8xf32>
    %109 = arith.truncf %108 : vector<8x8xf32> to vector<8x8xbf16>
    %c3 = arith.constant 3 : index
    %c0_43 = arith.constant 0 : index
    %c0_44 = arith.constant 0 : index
    %110 = vector.load %arg5[%c3, %c0_43, %c0_44] : memref<4x8x32xbf16, #tpu.memory_space<vmem>>, vector<1x8x32xbf16>
    %111 = vector.shape_cast %110 : vector<1x8x32xbf16> to vector<8x32xbf16>
    %cst_45 = arith.constant dense<0.000000e+00> : vector<8x32xf32>
    %112 = tpu.matmul %109, %111, %cst_45 {dimension_numbers = #tpu.dot_dimension_numbers<[1], [0], [0], [1], [0, 0, 1, 1], [], []>} : vector<8x8xbf16>, vector<8x32xbf16>, vector<8x32xf32> -> vector<8x32xf32>
    %113 = arith.addf %90, %112 : vector<8x32xf32>
    %114 = vector.broadcast %19 : vector<1x32xf32> to vector<8x32xf32>
    %115 = arith.addf %113, %114 : vector<8x32xf32>
    %116 = arith.addf %1, %115 : vector<8x32xf32>
    %c0_46 = arith.constant 0 : index
    %c0_47 = arith.constant 0 : index
    %117 = vector.load %arg7[%c0_46, %c0_47] : memref<1x32xf32, #tpu.memory_space<vmem>>, vector<1x32xf32>
    %c0_48 = arith.constant 0 : index
    %c0_49 = arith.constant 0 : index
    %118 = vector.load %arg8[%c0_48, %c0_49] : memref<1x32xf32, #tpu.memory_space<vmem>>, vector<1x32xf32>
    %cst_50 = arith.constant dense<0.000000e+00> : vector<8xf32>
    %119 = vector.multi_reduction <add>, %116, %cst_50 [1] : vector<8x32xf32> to vector<8xf32>
    %120 = vector.shape_cast %119 : vector<8xf32> to vector<8x1xf32>
    %cst_51 = arith.constant 3.200000e+01 : f32
    %121 = vector.broadcast %cst_51 : f32 to vector<8x1xf32>
    %122 = arith.divf %120, %121 : vector<8x1xf32>
    %123 = vector.broadcast %122 : vector<8x1xf32> to vector<8x32xf32>
    %124 = arith.subf %116, %123 : vector<8x32xf32>
    %125 = arith.mulf %124, %124 : vector<8x32xf32>
    %cst_52 = arith.constant dense<0.000000e+00> : vector<8xf32>
    %126 = vector.multi_reduction <add>, %125, %cst_52 [1] : vector<8x32xf32> to vector<8xf32>
    %127 = vector.shape_cast %126 : vector<8xf32> to vector<8x1xf32>
    %cst_53 = arith.constant 3.200000e+01 : f32
    %128 = vector.broadcast %cst_53 : f32 to vector<8x1xf32>
    %129 = arith.divf %127, %128 : vector<8x1xf32>
    %130 = vector.broadcast %122 : vector<8x1xf32> to vector<8x32xf32>
    %131 = arith.subf %116, %130 : vector<8x32xf32>
    %cst_54 = arith.constant 9.99999974E-6 : f32
    %132 = vector.broadcast %cst_54 : f32 to vector<8x1xf32>
    %133 = arith.addf %129, %132 : vector<8x1xf32>
    %134 = math.rsqrt %133 : vector<8x1xf32>
    %135 = vector.broadcast %134 : vector<8x1xf32> to vector<8x32xf32>
    %136 = arith.mulf %131, %135 : vector<8x32xf32>
    %137 = vector.broadcast %117 : vector<1x32xf32> to vector<8x32xf32>
    %138 = arith.mulf %136, %137 : vector<8x32xf32>
    %139 = vector.broadcast %118 : vector<1x32xf32> to vector<8x32xf32>
    %140 = arith.addf %138, %139 : vector<8x32xf32>
    %c0_55 = arith.constant 0 : index
    %c0_56 = arith.constant 0 : index
    %141 = vector.load %arg9[%c0_55, %c0_56] : memref<32x32xbf16, #tpu.memory_space<vmem>>, vector<32x32xbf16>
    %142 = arith.truncf %140 : vector<8x32xf32> to vector<8x32xbf16>
    %cst_57 = arith.constant dense<0.000000e+00> : vector<8x32xf32>
    %143 = tpu.matmul %142, %141, %cst_57 {dimension_numbers = #tpu.dot_dimension_numbers<[1], [0], [0], [1], [0, 0, 1, 1], [], []>} : vector<8x32xbf16>, vector<32x32xbf16>, vector<8x32xf32> -> vector<8x32xf32>
    %c0_58 = arith.constant 0 : index
    %c0_59 = arith.constant 0 : index
    %144 = vector.load %arg10[%c0_58, %c0_59] : memref<1x32xf32, #tpu.memory_space<vmem>>, vector<1x32xf32>
    %145 = vector.broadcast %144 : vector<1x32xf32> to vector<8x32xf32>
    %146 = arith.addf %143, %145 : vector<8x32xf32>
    %c0_60 = arith.constant 0 : index
    %c0_61 = arith.constant 0 : index
    %147 = vector.load %arg11[%c0_60, %c0_61] : memref<32x64xbf16, #tpu.memory_space<vmem>>, vector<32x64xbf16>
    %148 = arith.truncf %3 : vector<8x32xf32> to vector<8x32xbf16>
    %cst_62 = arith.constant dense<0.000000e+00> : vector<8x64xf32>
    %149 = tpu.matmul %148, %147, %cst_62 {dimension_numbers = #tpu.dot_dimension_numbers<[1], [0], [0], [1], [0, 0, 1, 1], [], []>} : vector<8x32xbf16>, vector<32x64xbf16>, vector<8x64xf32> -> vector<8x64xf32>
    %c0_63 = arith.constant 0 : index
    %c0_64 = arith.constant 0 : index
    %150 = vector.load %arg12[%c0_63, %c0_64] : memref<1x64xf32, #tpu.memory_space<vmem>>, vector<1x64xf32>
    %151 = vector.broadcast %150 : vector<1x64xf32> to vector<8x64xf32>
    %152 = arith.addf %149, %151 : vector<8x64xf32>
    %153 = vector.extract_strided_slice %152 {offsets = [0, 0], sizes = [8, 32], strides = [1, 1]} : vector<8x64xf32> to vector<8x32xf32>
    %154 = vector.extract_strided_slice %152 {offsets = [0, 32], sizes = [8, 32], strides = [1, 1]} : vector<8x64xf32> to vector<8x32xf32>
    %c0_65 = arith.constant 0 : index
    %c0_66 = arith.constant 0 : index
    %155 = vector.load %arg14[%c0_65, %c0_66] : memref<1x32xf32, #tpu.memory_space<vmem>>, vector<1x32xf32>
    %156 = arith.truncf %146 : vector<8x32xf32> to vector<8x32xbf16>
    %157 = arith.truncf %153 : vector<8x32xf32> to vector<8x32xbf16>
    %158 = arith.truncf %154 : vector<8x32xf32> to vector<8x32xbf16>
    %159 = vector.extract_strided_slice %156 {offsets = [0, 0], sizes = [8, 8], strides = [1, 1]} : vector<8x32xbf16> to vector<8x8xbf16>
    %160 = vector.extract_strided_slice %157 {offsets = [0, 0], sizes = [8, 8], strides = [1, 1]} : vector<8x32xbf16> to vector<8x8xbf16>
    %cst_67 = arith.constant dense<0.000000e+00> : vector<8x8xf32>
    %161 = tpu.matmul %159, %160, %cst_67 {dimension_numbers = #tpu.dot_dimension_numbers<[1], [1], [0], [0], [0, 0, 1, 0], [], []>} : vector<8x8xbf16>, vector<8x8xbf16>, vector<8x8xf32> -> vector<8x8xf32>
    %cst_68 = arith.constant 0.353553385 : f32
    %162 = vector.broadcast %cst_68 : f32 to vector<8x8xf32>
    %163 = arith.mulf %161, %162 : vector<8x8xf32>
    %cst_69 = arith.constant dense<0xFF800000> : vector<8xf32>
    %164 = vector.multi_reduction <maximumf>, %163, %cst_69 [1] : vector<8x8xf32> to vector<8xf32>
    %165 = vector.shape_cast %164 : vector<8xf32> to vector<8x1xf32>
    %166 = vector.broadcast %165 : vector<8x1xf32> to vector<8x8xf32>
    %167 = arith.subf %163, %166 : vector<8x8xf32>
    %168 = math.exp %167 : vector<8x8xf32>
    %cst_70 = arith.constant dense<0.000000e+00> : vector<8xf32>
    %169 = vector.multi_reduction <add>, %168, %cst_70 [1] : vector<8x8xf32> to vector<8xf32>
    %170 = vector.shape_cast %169 : vector<8xf32> to vector<8x1xf32>
    %171 = vector.broadcast %170 : vector<8x1xf32> to vector<8x8xf32>
    %172 = arith.divf %168, %171 : vector<8x8xf32>
    %173 = arith.truncf %172 : vector<8x8xf32> to vector<8x8xbf16>
    %174 = vector.extract_strided_slice %158 {offsets = [0, 0], sizes = [8, 8], strides = [1, 1]} : vector<8x32xbf16> to vector<8x8xbf16>
    %cst_71 = arith.constant dense<0.000000e+00> : vector<8x8xf32>
    %175 = tpu.matmul %173, %174, %cst_71 {dimension_numbers = #tpu.dot_dimension_numbers<[1], [0], [0], [1], [0, 0, 1, 1], [], []>} : vector<8x8xbf16>, vector<8x8xbf16>, vector<8x8xf32> -> vector<8x8xf32>
    %176 = arith.truncf %175 : vector<8x8xf32> to vector<8x8xbf16>
    %c0_72 = arith.constant 0 : index
    %c0_73 = arith.constant 0 : index
    %c0_74 = arith.constant 0 : index
    %177 = vector.load %arg13[%c0_72, %c0_73, %c0_74] : memref<4x8x32xbf16, #tpu.memory_space<vmem>>, vector<1x8x32xbf16>
    %178 = vector.shape_cast %177 : vector<1x8x32xbf16> to vector<8x32xbf16>
    %cst_75 = arith.constant dense<0.000000e+00> : vector<8x32xf32>
    %179 = tpu.matmul %176, %178, %cst_75 {dimension_numbers = #tpu.dot_dimension_numbers<[1], [0], [0], [1], [0, 0, 1, 1], [], []>} : vector<8x8xbf16>, vector<8x32xbf16>, vector<8x32xf32> -> vector<8x32xf32>
    %180 = vector.extract_strided_slice %156 {offsets = [0, 8], sizes = [8, 8], strides = [1, 1]} : vector<8x32xbf16> to vector<8x8xbf16>
    %181 = vector.extract_strided_slice %157 {offsets = [0, 8], sizes = [8, 8], strides = [1, 1]} : vector<8x32xbf16> to vector<8x8xbf16>
    %cst_76 = arith.constant dense<0.000000e+00> : vector<8x8xf32>
    %182 = tpu.matmul %180, %181, %cst_76 {dimension_numbers = #tpu.dot_dimension_numbers<[1], [1], [0], [0], [0, 0, 1, 0], [], []>} : vector<8x8xbf16>, vector<8x8xbf16>, vector<8x8xf32> -> vector<8x8xf32>
    %cst_77 = arith.constant 0.353553385 : f32
    %183 = vector.broadcast %cst_77 : f32 to vector<8x8xf32>
    %184 = arith.mulf %182, %183 : vector<8x8xf32>
    %cst_78 = arith.constant dense<0xFF800000> : vector<8xf32>
    %185 = vector.multi_reduction <maximumf>, %184, %cst_78 [1] : vector<8x8xf32> to vector<8xf32>
    %186 = vector.shape_cast %185 : vector<8xf32> to vector<8x1xf32>
    %187 = vector.broadcast %186 : vector<8x1xf32> to vector<8x8xf32>
    %188 = arith.subf %184, %187 : vector<8x8xf32>
    %189 = math.exp %188 : vector<8x8xf32>
    %cst_79 = arith.constant dense<0.000000e+00> : vector<8xf32>
    %190 = vector.multi_reduction <add>, %189, %cst_79 [1] : vector<8x8xf32> to vector<8xf32>
    %191 = vector.shape_cast %190 : vector<8xf32> to vector<8x1xf32>
    %192 = vector.broadcast %191 : vector<8x1xf32> to vector<8x8xf32>
    %193 = arith.divf %189, %192 : vector<8x8xf32>
    %194 = arith.truncf %193 : vector<8x8xf32> to vector<8x8xbf16>
    %195 = vector.extract_strided_slice %158 {offsets = [0, 8], sizes = [8, 8], strides = [1, 1]} : vector<8x32xbf16> to vector<8x8xbf16>
    %cst_80 = arith.constant dense<0.000000e+00> : vector<8x8xf32>
    %196 = tpu.matmul %194, %195, %cst_80 {dimension_numbers = #tpu.dot_dimension_numbers<[1], [0], [0], [1], [0, 0, 1, 1], [], []>} : vector<8x8xbf16>, vector<8x8xbf16>, vector<8x8xf32> -> vector<8x8xf32>
    %197 = arith.truncf %196 : vector<8x8xf32> to vector<8x8xbf16>
    %c1_81 = arith.constant 1 : index
    %c0_82 = arith.constant 0 : index
    %c0_83 = arith.constant 0 : index
    %198 = vector.load %arg13[%c1_81, %c0_82, %c0_83] : memref<4x8x32xbf16, #tpu.memory_space<vmem>>, vector<1x8x32xbf16>
    %199 = vector.shape_cast %198 : vector<1x8x32xbf16> to vector<8x32xbf16>
    %cst_84 = arith.constant dense<0.000000e+00> : vector<8x32xf32>
    %200 = tpu.matmul %197, %199, %cst_84 {dimension_numbers = #tpu.dot_dimension_numbers<[1], [0], [0], [1], [0, 0, 1, 1], [], []>} : vector<8x8xbf16>, vector<8x32xbf16>, vector<8x32xf32> -> vector<8x32xf32>
    %201 = arith.addf %179, %200 : vector<8x32xf32>
    %202 = vector.extract_strided_slice %156 {offsets = [0, 16], sizes = [8, 8], strides = [1, 1]} : vector<8x32xbf16> to vector<8x8xbf16>
    %203 = vector.extract_strided_slice %157 {offsets = [0, 16], sizes = [8, 8], strides = [1, 1]} : vector<8x32xbf16> to vector<8x8xbf16>
    %cst_85 = arith.constant dense<0.000000e+00> : vector<8x8xf32>
    %204 = tpu.matmul %202, %203, %cst_85 {dimension_numbers = #tpu.dot_dimension_numbers<[1], [1], [0], [0], [0, 0, 1, 0], [], []>} : vector<8x8xbf16>, vector<8x8xbf16>, vector<8x8xf32> -> vector<8x8xf32>
    %cst_86 = arith.constant 0.353553385 : f32
    %205 = vector.broadcast %cst_86 : f32 to vector<8x8xf32>
    %206 = arith.mulf %204, %205 : vector<8x8xf32>
    %cst_87 = arith.constant dense<0xFF800000> : vector<8xf32>
    %207 = vector.multi_reduction <maximumf>, %206, %cst_87 [1] : vector<8x8xf32> to vector<8xf32>
    %208 = vector.shape_cast %207 : vector<8xf32> to vector<8x1xf32>
    %209 = vector.broadcast %208 : vector<8x1xf32> to vector<8x8xf32>
    %210 = arith.subf %206, %209 : vector<8x8xf32>
    %211 = math.exp %210 : vector<8x8xf32>
    %cst_88 = arith.constant dense<0.000000e+00> : vector<8xf32>
    %212 = vector.multi_reduction <add>, %211, %cst_88 [1] : vector<8x8xf32> to vector<8xf32>
    %213 = vector.shape_cast %212 : vector<8xf32> to vector<8x1xf32>
    %214 = vector.broadcast %213 : vector<8x1xf32> to vector<8x8xf32>
    %215 = arith.divf %211, %214 : vector<8x8xf32>
    %216 = arith.truncf %215 : vector<8x8xf32> to vector<8x8xbf16>
    %217 = vector.extract_strided_slice %158 {offsets = [0, 16], sizes = [8, 8], strides = [1, 1]} : vector<8x32xbf16> to vector<8x8xbf16>
    %cst_89 = arith.constant dense<0.000000e+00> : vector<8x8xf32>
    %218 = tpu.matmul %216, %217, %cst_89 {dimension_numbers = #tpu.dot_dimension_numbers<[1], [0], [0], [1], [0, 0, 1, 1], [], []>} : vector<8x8xbf16>, vector<8x8xbf16>, vector<8x8xf32> -> vector<8x8xf32>
    %219 = arith.truncf %218 : vector<8x8xf32> to vector<8x8xbf16>
    %c2_90 = arith.constant 2 : index
    %c0_91 = arith.constant 0 : index
    %c0_92 = arith.constant 0 : index
    %220 = vector.load %arg13[%c2_90, %c0_91, %c0_92] : memref<4x8x32xbf16, #tpu.memory_space<vmem>>, vector<1x8x32xbf16>
    %221 = vector.shape_cast %220 : vector<1x8x32xbf16> to vector<8x32xbf16>
    %cst_93 = arith.constant dense<0.000000e+00> : vector<8x32xf32>
    %222 = tpu.matmul %219, %221, %cst_93 {dimension_numbers = #tpu.dot_dimension_numbers<[1], [0], [0], [1], [0, 0, 1, 1], [], []>} : vector<8x8xbf16>, vector<8x32xbf16>, vector<8x32xf32> -> vector<8x32xf32>
    %223 = arith.addf %201, %222 : vector<8x32xf32>
    %224 = vector.extract_strided_slice %156 {offsets = [0, 24], sizes = [8, 8], strides = [1, 1]} : vector<8x32xbf16> to vector<8x8xbf16>
    %225 = vector.extract_strided_slice %157 {offsets = [0, 24], sizes = [8, 8], strides = [1, 1]} : vector<8x32xbf16> to vector<8x8xbf16>
    %cst_94 = arith.constant dense<0.000000e+00> : vector<8x8xf32>
    %226 = tpu.matmul %224, %225, %cst_94 {dimension_numbers = #tpu.dot_dimension_numbers<[1], [1], [0], [0], [0, 0, 1, 0], [], []>} : vector<8x8xbf16>, vector<8x8xbf16>, vector<8x8xf32> -> vector<8x8xf32>
    %cst_95 = arith.constant 0.353553385 : f32
    %227 = vector.broadcast %cst_95 : f32 to vector<8x8xf32>
    %228 = arith.mulf %226, %227 : vector<8x8xf32>
    %cst_96 = arith.constant dense<0xFF800000> : vector<8xf32>
    %229 = vector.multi_reduction <maximumf>, %228, %cst_96 [1] : vector<8x8xf32> to vector<8xf32>
    %230 = vector.shape_cast %229 : vector<8xf32> to vector<8x1xf32>
    %231 = vector.broadcast %230 : vector<8x1xf32> to vector<8x8xf32>
    %232 = arith.subf %228, %231 : vector<8x8xf32>
    %233 = math.exp %232 : vector<8x8xf32>
    %cst_97 = arith.constant dense<0.000000e+00> : vector<8xf32>
    %234 = vector.multi_reduction <add>, %233, %cst_97 [1] : vector<8x8xf32> to vector<8xf32>
    %235 = vector.shape_cast %234 : vector<8xf32> to vector<8x1xf32>
    %236 = vector.broadcast %235 : vector<8x1xf32> to vector<8x8xf32>
    %237 = arith.divf %233, %236 : vector<8x8xf32>
    %238 = arith.truncf %237 : vector<8x8xf32> to vector<8x8xbf16>
    %239 = vector.extract_strided_slice %158 {offsets = [0, 24], sizes = [8, 8], strides = [1, 1]} : vector<8x32xbf16> to vector<8x8xbf16>
    %cst_98 = arith.constant dense<0.000000e+00> : vector<8x8xf32>
    %240 = tpu.matmul %238, %239, %cst_98 {dimension_numbers = #tpu.dot_dimension_numbers<[1], [0], [0], [1], [0, 0, 1, 1], [], []>} : vector<8x8xbf16>, vector<8x8xbf16>, vector<8x8xf32> -> vector<8x8xf32>
    %241 = arith.truncf %240 : vector<8x8xf32> to vector<8x8xbf16>
    %c3_99 = arith.constant 3 : index
    %c0_100 = arith.constant 0 : index
    %c0_101 = arith.constant 0 : index
    %242 = vector.load %arg13[%c3_99, %c0_100, %c0_101] : memref<4x8x32xbf16, #tpu.memory_space<vmem>>, vector<1x8x32xbf16>
    %243 = vector.shape_cast %242 : vector<1x8x32xbf16> to vector<8x32xbf16>
    %cst_102 = arith.constant dense<0.000000e+00> : vector<8x32xf32>
    %244 = tpu.matmul %241, %243, %cst_102 {dimension_numbers = #tpu.dot_dimension_numbers<[1], [0], [0], [1], [0, 0, 1, 1], [], []>} : vector<8x8xbf16>, vector<8x32xbf16>, vector<8x32xf32> -> vector<8x32xf32>
    %245 = arith.addf %223, %244 : vector<8x32xf32>
    %246 = vector.broadcast %155 : vector<1x32xf32> to vector<8x32xf32>
    %247 = arith.addf %245, %246 : vector<8x32xf32>
    %248 = arith.addf %140, %247 : vector<8x32xf32>
    %c0_103 = arith.constant 0 : index
    %c0_104 = arith.constant 0 : index
    %249 = vector.load %arg15[%c0_103, %c0_104] : memref<1x32xf32, #tpu.memory_space<vmem>>, vector<1x32xf32>
    %c0_105 = arith.constant 0 : index
    %c0_106 = arith.constant 0 : index
    %250 = vector.load %arg16[%c0_105, %c0_106] : memref<1x32xf32, #tpu.memory_space<vmem>>, vector<1x32xf32>
    %cst_107 = arith.constant dense<0.000000e+00> : vector<8xf32>
    %251 = vector.multi_reduction <add>, %248, %cst_107 [1] : vector<8x32xf32> to vector<8xf32>
    %252 = vector.shape_cast %251 : vector<8xf32> to vector<8x1xf32>
    %cst_108 = arith.constant 3.200000e+01 : f32
    %253 = vector.broadcast %cst_108 : f32 to vector<8x1xf32>
    %254 = arith.divf %252, %253 : vector<8x1xf32>
    %255 = vector.broadcast %254 : vector<8x1xf32> to vector<8x32xf32>
    %256 = arith.subf %248, %255 : vector<8x32xf32>
    %257 = arith.mulf %256, %256 : vector<8x32xf32>
    %cst_109 = arith.constant dense<0.000000e+00> : vector<8xf32>
    %258 = vector.multi_reduction <add>, %257, %cst_109 [1] : vector<8x32xf32> to vector<8xf32>
    %259 = vector.shape_cast %258 : vector<8xf32> to vector<8x1xf32>
    %cst_110 = arith.constant 3.200000e+01 : f32
    %260 = vector.broadcast %cst_110 : f32 to vector<8x1xf32>
    %261 = arith.divf %259, %260 : vector<8x1xf32>
    %262 = vector.broadcast %254 : vector<8x1xf32> to vector<8x32xf32>
    %263 = arith.subf %248, %262 : vector<8x32xf32>
    %cst_111 = arith.constant 9.99999974E-6 : f32
    %264 = vector.broadcast %cst_111 : f32 to vector<8x1xf32>
    %265 = arith.addf %261, %264 : vector<8x1xf32>
    %266 = math.rsqrt %265 : vector<8x1xf32>
    %267 = vector.broadcast %266 : vector<8x1xf32> to vector<8x32xf32>
    %268 = arith.mulf %263, %267 : vector<8x32xf32>
    %269 = vector.broadcast %249 : vector<1x32xf32> to vector<8x32xf32>
    %270 = arith.mulf %268, %269 : vector<8x32xf32>
    %271 = vector.broadcast %250 : vector<1x32xf32> to vector<8x32xf32>
    %272 = arith.addf %270, %271 : vector<8x32xf32>
    %c0_112 = arith.constant 0 : index
    %c0_113 = arith.constant 0 : index
    %273 = vector.load %arg17[%c0_112, %c0_113] : memref<32x64xbf16, #tpu.memory_space<vmem>>, vector<32x64xbf16>
    %274 = arith.truncf %272 : vector<8x32xf32> to vector<8x32xbf16>
    %cst_114 = arith.constant dense<0.000000e+00> : vector<8x64xf32>
    %275 = tpu.matmul %274, %273, %cst_114 {dimension_numbers = #tpu.dot_dimension_numbers<[1], [0], [0], [1], [0, 0, 1, 1], [], []>} : vector<8x32xbf16>, vector<32x64xbf16>, vector<8x64xf32> -> vector<8x64xf32>
    %c0_115 = arith.constant 0 : index
    %c0_116 = arith.constant 0 : index
    %276 = vector.load %arg18[%c0_115, %c0_116] : memref<1x64xf32, #tpu.memory_space<vmem>>, vector<1x64xf32>
    %277 = vector.broadcast %276 : vector<1x64xf32> to vector<8x64xf32>
    %278 = arith.addf %275, %277 : vector<8x64xf32>
    %cst_117 = arith.constant 0.000000e+00 : f32
    %279 = vector.broadcast %cst_117 : f32 to vector<8x64xf32>
    %280 = arith.maximumf %278, %279 : vector<8x64xf32>
    %c0_118 = arith.constant 0 : index
    %c0_119 = arith.constant 0 : index
    %281 = vector.load %arg19[%c0_118, %c0_119] : memref<64x32xbf16, #tpu.memory_space<vmem>>, vector<64x32xbf16>
    %282 = arith.truncf %280 : vector<8x64xf32> to vector<8x64xbf16>
    %cst_120 = arith.constant dense<0.000000e+00> : vector<8x32xf32>
    %283 = tpu.matmul %282, %281, %cst_120 {dimension_numbers = #tpu.dot_dimension_numbers<[1], [0], [0], [1], [0, 0, 1, 1], [], []>} : vector<8x64xbf16>, vector<64x32xbf16>, vector<8x32xf32> -> vector<8x32xf32>
    %284 = arith.addf %272, %283 : vector<8x32xf32>
    %c0_121 = arith.constant 0 : index
    %c0_122 = arith.constant 0 : index
    %285 = vector.load %arg20[%c0_121, %c0_122] : memref<1x32xf32, #tpu.memory_space<vmem>>, vector<1x32xf32>
    %286 = vector.broadcast %285 : vector<1x32xf32> to vector<8x32xf32>
    %287 = arith.addf %284, %286 : vector<8x32xf32>
    %c0_123 = arith.constant 0 : index
    %c0_124 = arith.constant 0 : index
    %288 = vector.load %arg21[%c0_123, %c0_124] : memref<1x32xf32, #tpu.memory_space<vmem>>, vector<1x32xf32>
    %c0_125 = arith.constant 0 : index
    %c0_126 = arith.constant 0 : index
    %289 = vector.load %arg22[%c0_125, %c0_126] : memref<1x32xf32, #tpu.memory_space<vmem>>, vector<1x32xf32>
    %cst_127 = arith.constant dense<0.000000e+00> : vector<8xf32>
    %290 = vector.multi_reduction <add>, %287, %cst_127 [1] : vector<8x32xf32> to vector<8xf32>
    %291 = vector.shape_cast %290 : vector<8xf32> to vector<8x1xf32>
    %cst_128 = arith.constant 3.200000e+01 : f32
    %292 = vector.broadcast %cst_128 : f32 to vector<8x1xf32>
    %293 = arith.divf %291, %292 : vector<8x1xf32>
    %294 = vector.broadcast %293 : vector<8x1xf32> to vector<8x32xf32>
    %295 = arith.subf %287, %294 : vector<8x32xf32>
    %296 = arith.mulf %295, %295 : vector<8x32xf32>
    %cst_129 = arith.constant dense<0.000000e+00> : vector<8xf32>
    %297 = vector.multi_reduction <add>, %296, %cst_129 [1] : vector<8x32xf32> to vector<8xf32>
    %298 = vector.shape_cast %297 : vector<8xf32> to vector<8x1xf32>
    %cst_130 = arith.constant 3.200000e+01 : f32
    %299 = vector.broadcast %cst_130 : f32 to vector<8x1xf32>
    %300 = arith.divf %298, %299 : vector<8x1xf32>
    %301 = vector.broadcast %293 : vector<8x1xf32> to vector<8x32xf32>
    %302 = arith.subf %287, %301 : vector<8x32xf32>
    %cst_131 = arith.constant 9.99999974E-6 : f32
    %303 = vector.broadcast %cst_131 : f32 to vector<8x1xf32>
    %304 = arith.addf %300, %303 : vector<8x1xf32>
    %305 = math.rsqrt %304 : vector<8x1xf32>
    %306 = vector.broadcast %305 : vector<8x1xf32> to vector<8x32xf32>
    %307 = arith.mulf %302, %306 : vector<8x32xf32>
    %308 = vector.broadcast %288 : vector<1x32xf32> to vector<8x32xf32>
    %309 = arith.mulf %307, %308 : vector<8x32xf32>
    %310 = vector.broadcast %289 : vector<1x32xf32> to vector<8x32xf32>
    %311 = arith.addf %309, %310 : vector<8x32xf32>
    %c0_132 = arith.constant 0 : index
    %c0_133 = arith.constant 0 : index
    %c0_134 = arith.constant 0 : index
    %312 = vector.load %arg25[%c0_132, %c0_133, %c0_134] : memref<1x8x32xf32, #tpu.memory_space<vmem>>, vector<1x8x32xf32>
    %313 = vector.shape_cast %312 : vector<1x8x32xf32> to vector<8x32xf32>
    %314 = vector.shape_cast %311 : vector<8x32xf32> to vector<1x8x32xf32>
    tpu.vector_store %arg25[%c0_132, %c0_133, %c0_134], %314 {strides = array<i32>} : memref<1x8x32xf32, #tpu.memory_space<vmem>>, vector<1x8x32xf32>,
    return
  }
  func.func @transform_0(%arg0: i32) -> (i32, i32, i32) {
    %c0_i32 = arith.constant 0 : i32
    %c0_i32_0 = arith.constant 0 : i32
    %c0_i32_1 = arith.constant 0 : i32
    return %arg0, %c0_i32, %c0_i32_0 : i32, i32, i32
  }
  func.func @transform_1(%arg0: i32) -> (i32, i32, i32) {
    %c0_i32 = arith.constant 0 : i32
    %c0_i32_0 = arith.constant 0 : i32
    %c0_i32_1 = arith.constant 0 : i32
    return %arg0, %c0_i32, %c0_i32_0 : i32, i32, i32
  }
  func.func @transform_2(%arg0: i32) -> (i32, i32) {
    %c0_i32 = arith.constant 0 : i32
    %c0_i32_0 = arith.constant 0 : i32
    %c0_i32_1 = arith.constant 0 : i32
    return %c0_i32, %c0_i32_0 : i32, i32
  }
  func.func @transform_3(%arg0: i32) -> (i32, i32) {
    %c0_i32 = arith.constant 0 : i32
    %c0_i32_0 = arith.constant 0 : i32
    %c0_i32_1 = arith.constant 0 : i32
    return %c0_i32, %c0_i32_0 : i32, i32
  }
  func.func @transform_4(%arg0: i32) -> (i32, i32, i32) {
    %c0_i32 = arith.constant 0 : i32
    %c0_i32_0 = arith.constant 0 : i32
    %c0_i32_1 = arith.constant 0 : i32
    %c0_i32_2 = arith.constant 0 : i32
    return %c0_i32, %c0_i32_0, %c0_i32_1 : i32, i32, i32
  }
  func.func @transform_5(%arg0: i32) -> (i32, i32) {
    %c0_i32 = arith.constant 0 : i32
    %c0_i32_0 = arith.constant 0 : i32
    %c0_i32_1 = arith.constant 0 : i32
    return %c0_i32, %c0_i32_0 : i32, i32
  }
  func.func @transform_6(%arg0: i32) -> (i32, i32) {
    %c0_i32 = arith.constant 0 : i32
    %c0_i32_0 = arith.constant 0 : i32
    %c0_i32_1 = arith.constant 0 : i32
    return %c0_i32, %c0_i32_0 : i32, i32
  }
  func.func @transform_7(%arg0: i32) -> (i32, i32) {
    %c0_i32 = arith.constant 0 : i32
    %c0_i32_0 = arith.constant 0 : i32
    %c0_i32_1 = arith.constant 0 : i32
    return %c0_i32, %c0_i32_0 : i32, i32
  }
  func.func @transform_8(%arg0: i32) -> (i32, i32) {
    %c0_i32 = arith.constant 0 : i32
    %c0_i32_0 = arith.constant 0 : i32
    %c0_i32_1 = arith.constant 0 : i32
    return %c0_i32, %c0_i32_0 : i32, i32
  }
  func.func @transform_9(%arg0: i32) -> (i32, i32) {
    %c0_i32 = arith.constant 0 : i32
    %c0_i32_0 = arith.constant 0 : i32
    %c0_i32_1 = arith.constant 0 : i32
    return %c0_i32, %c0_i32_0 : i32, i32
  }
  func.func @transform_10(%arg0: i32) -> (i32, i32) {
    %c0_i32 = arith.constant 0 : i32
    %c0_i32_0 = arith.constant 0 : i32
    %c0_i32_1 = arith.constant 0 : i32
    return %c0_i32, %c0_i32_0 : i32, i32
  }
  func.func @transform_11(%arg0: i32) -> (i32, i32) {
    %c0_i32 = arith.constant 0 : i32
    %c0_i32_0 = arith.constant 0 : i32
    %c0_i32_1 = arith.constant 0 : i32
    return %c0_i32, %c0_i32_0 : i32, i32
  }
  func.func @transform_12(%arg0: i32) -> (i32, i32, i32) {
    %c0_i32 = arith.constant 0 : i32
    %c0_i32_0 = arith.constant 0 : i32
    %c0_i32_1 = arith.constant 0 : i32
    %c0_i32_2 = arith.constant 0 : i32
    return %c0_i32, %c0_i32_0, %c0_i32_1 : i32, i32, i32
  }
  func.func @transform_13(%arg0: i32) -> (i32, i32) {
    %c0_i32 = arith.constant 0 : i32
    %c0_i32_0 = arith.constant 0 : i32
    %c0_i32_1 = arith.constant 0 : i32
    return %c0_i32, %c0_i32_0 : i32, i32
  }
  func.func @transform_14(%arg0: i32) -> (i32, i32) {
    %c0_i32 = arith.constant 0 : i32
    %c0_i32_0 = arith.constant 0 : i32
    %c0_i32_1 = arith.constant 0 : i32
    return %c0_i32, %c0_i32_0 : i32, i32
  }
  func.func @transform_15(%arg0: i32) -> (i32, i32) {
    %c0_i32 = arith.constant 0 : i32
    %c0_i32_0 = arith.constant 0 : i32
    %c0_i32_1 = arith.constant 0 : i32
    return %c0_i32, %c0_i32_0 : i32, i32
  }
  func.func @transform_16(%arg0: i32) -> (i32, i32) {
    %c0_i32 = arith.constant 0 : i32
    %c0_i32_0 = arith.constant 0 : i32
    %c0_i32_1 = arith.constant 0 : i32
    return %c0_i32, %c0_i32_0 : i32, i32
  }
  func.func @transform_17(%arg0: i32) -> (i32, i32) {
    %c0_i32 = arith.constant 0 : i32
    %c0_i32_0 = arith.constant 0 : i32
    %c0_i32_1 = arith.constant 0 : i32
    return %c0_i32, %c0_i32_0 : i32, i32
  }
  func.func @transform_18(%arg0: i32) -> (i32, i32) {
    %c0_i32 = arith.constant 0 : i32
    %c0_i32_0 = arith.constant 0 : i32
    %c0_i32_1 = arith.constant 0 : i32
    return %c0_i32, %c0_i32_0 : i32, i32
  }
  func.func @transform_19(%arg0: i32) -> (i32, i32) {
    %c0_i32 = arith.constant 0 : i32
    %c0_i32_0 = arith.constant 0 : i32
    %c0_i32_1 = arith.constant 0 : i32
    return %c0_i32, %c0_i32_0 : i32, i32
  }
  func.func @transform_20(%arg0: i32) -> (i32, i32) {
    %c0_i32 = arith.constant 0 : i32
    %c0_i32_0 = arith.constant 0 : i32
    %c0_i32_1 = arith.constant 0 : i32
    return %c0_i32, %c0_i32_0 : i32, i32
  }
  func.func @transform_21(%arg0: i32) -> (i32, i32) {
    %c0_i32 = arith.constant 0 : i32
    %c0_i32_0 = arith.constant 0 : i32
    %c0_i32_1 = arith.constant 0 : i32
    return %c0_i32, %c0_i32_0 : i32, i32
  }
  func.func @transform_22(%arg0: i32) -> (i32, i32) {
    %c0_i32 = arith.constant 0 : i32
    %c0_i32_0 = arith.constant 0 : i32
    %c0_i32_1 = arith.constant 0 : i32
    return %c0_i32, %c0_i32_0 : i32, i32
  }
  func.func @transform_23(%arg0: i32) -> (i32, i32) {
    %c0_i32 = arith.constant 0 : i32
    %c0_i32_0 = arith.constant 0 : i32
    %c0_i32_1 = arith.constant 0 : i32
    return %c0_i32, %c0_i32_0 : i32, i32
  }
  func.func @transform_24(%arg0: i32) -> (i32, i32, i32) {
    %c0_i32 = arith.constant 0 : i32
    %c0_i32_0 = arith.constant 0 : i32
    %c0_i32_1 = arith.constant 0 : i32
    return %arg0, %c0_i32, %c0_i32_0 : i32, i32, i32
  }
}

</mosaic_0001>

<bundles_post_ra>
// kernel: _lambda_.2
= control target key start
LH: loop header
LB: loop body
LE: loop exit
PB: predicated region body
PF: predicated region fallthrough
CT: control target
= control target key end

     0   :  { %s4712_s0 = inlined_call_operand.vmem [shape: f32[2,8,32], index: 0, kind: input, shape index: {}]   ;;  %s4713_s1 = inlined_call_operand.vmem [shape: f32[2,8,32], index: 1, kind: input, shape index: {}]   ;;  %s4714_s2 = inlined_call_operand.vmem [shape: bf16[32,96], index: 2, kind: input, shape index: {}]   ;;  %s4715_s3 = inlined_call_operand.hbm [shape: f32[1,96], index: 3, kind: input, shape index: {}]   ;;  %s4716_s4 = inlined_call_operand.vmem [shape: bf16[4,8,32], index: 4, kind: input, shape index: {}]   ;;  %s4717_s5 = inlined_call_operand.hbm [shape: f32[1,32], index: 5, kind: input, shape index: {}]   ;;  %s4718_s6 = inlined_call_operand.hbm [shape: f32[1,32], index: 6, kind: input, shape index: {}]   ;;  %s4719_s7 = inlined_call_operand.hbm [shape: f32[1,32], index: 7, kind: input, shape index: {}]   ;;  %s4720_s8 = inlined_call_operand.hbm [shape: bf16[32,32], index: 8, kind: input, shape index: {}]   ;;  %s4721_s9 = inlined_call_operand.hbm [shape: f32[1,32], index: 9, kind: input, shape index: {}]   ;;  %s4722_s10 = inlined_call_operand.hbm [shape: bf16[32,64], index: 10, kind: input, shape index: {}]   ;;  %s4723_s11 = inlined_call_operand.hbm [shape: f32[1,64], index: 11, kind: input, shape index: {}]   ;;  %s4724_s12 = inlined_call_operand.hbm [shape: bf16[4,8,32], index: 12, kind: input, shape index: {}]   ;;  %s4725_s13 = inlined_call_operand.hbm [shape: f32[1,32], index: 13, kind: input, shape index: {}]   ;;  %s4726_s14 = inlined_call_operand.hbm [shape: f32[1,32], index: 14, kind: input, shape index: {}]   ;;  %s4727_s15 = inlined_call_operand.hbm [shape: f32[1,32], index: 15, kind: input, shape index: {}]   ;;  %s4728_s16 = inlined_call_operand.hbm [shape: bf16[32,64], index: 16, kind: input, shape index: {}]   ;;  %s4729_s17 = inlined_call_operand.hbm [shape: f32[1,64], index: 17, kind: input, shape index: {}]   ;;  %s4730_s18 = inlined_call_operand.vmem [shape: bf16[64,32], index: 18, kind: input, shape index: {}]   ;;  %s4731_s19 = inlined_call_operand.hbm [shape: f32[1,32], index: 19, kind: input, shape index: {}]   ;;  %s4732_s20 = inlined_call_operand.hbm [shape: f32[1,32], index: 20, kind: input, shape index: {}]   ;;  %s4733_s21 = inlined_call_operand.hbm [shape: f32[1,32], index: 21, kind: input, shape index: {}]   ;;  %s4734_s22 = inlined_call_operand.vmem [shape: f32[1,32], index: 22, kind: input, shape index: {}]   ;;  %s4735_s23 = inlined_call_operand.vmem [shape: f32[1,32], index: 23, kind: input, shape index: {}]   ;;  %s4736_s24 = inlined_call_operand.vmem [shape: f32[2,8,32], index: 24, kind: output, shape index: {}]  }
   0x1   :  { %4741 = sst [smem:[#allocation37_spill]] %s4712_s0 }
   0x2   :  { %4742 = sst [smem:[#allocation38_spill]] %s4713_s1 }
   0x3   :  { %4743 = sst [smem:[#allocation39_spill]] %s4714_s2 }
   0x4   :  { %4744 = sst [smem:[#allocation40_spill]] %s4715_s3 }
   0x5   :  { %4745 = sst [smem:[#allocation41_spill]] %s4716_s4 }
   0x6   :  { %4746 = sst [smem:[#allocation42_spill]] %s4717_s5 }
   0x7   :  { %4747 = sst [smem:[#allocation43_spill]] %s4718_s6 }
   0x8   :  { %4748 = sst [smem:[#allocation44_spill]] %s4719_s7 }
   0x9   :  { %4749 = sst [smem:[#allocation45_spill]] %s4720_s8 }
   0xa   :  { %29 = vsyncpa [#allocation3], 0 }
   0xb   :  { %30 = vsyncpa [#allocation5], 0 }
   0xc   :  { %31 = vsyncpa [#allocation8], 0 }
   0xd   :  { %32 = vsyncpa [#allocation11], 0 }
   0xe   :  { %33 = vsyncpa [#allocation14], 0 }
   0xf   :  { %34 = vsyncpa [#allocation17], 0 }
  0x10   :  { %35 = vsyncpa [#allocation20], 0 }
  0x11   :  { %36 = vsyncpa [#allocation23], 0 }
  0x12   :  { %37 = vsyncpa [#allocation26], 0  ;;  %s4203_s5 = smov 0  }
  0x13 LB: > { %s4045_s22 = smov [#allocation4]   ;;  %s4209_s26 = sadd.s32 4294967295, %s4043_s5   ;;  %s4043_s5 = sphi %s4203_s5, %s43_s5  }
  0x14   : > { %s618_s23 = sshll.u32 %s4045_s22, 4  ;;  %p2962_p0 = scmp.ge.s32.totalorder %s4043_s5, 1  ;;  %s619_s23 = int_to_ptr.vmem [resolvable:$true] %s618_s23 }
  0x15   : > { %p588_p1 = scmp.lt.s32.totalorder %s4043_s5, 3  ;;  %p4739_p2 = scmp.eq.s32.totalorder %s4209_s26, 0 }
  0x16   : > { %s4046_s28 = smov [#allocation7]   ;;  %s4047_s2 = smov [#allocation10]  }
  0x17   : > { %p4214_p3 = pnand %p2962_p0, %p588_p1  ;;  %s640_s6 = sshll.u32 %s4046_s28, 4  ;;  %s4220_s6 = int_to_ptr.vmem [resolvable:$true] %s640_s6 }
  0x18   : > { %s664_s29 = sshll.u32 %s4047_s2, 4  ;;  %s4048_s7 = smov [#allocation13]   ;;  %s4228_s29 = int_to_ptr.vmem [resolvable:$true] %s664_s29 }
  0x19   : > { %s4750_s27 = scalar_select %p4214_p3, 1, 0 }
  0x1a   : > { %p3382_p4 = pneg %p4214_p3  ;;  %s688_s30 = sshll.u32 %s4048_s7, 4  ;;  %s4230_s30 = int_to_ptr.vmem [resolvable:$true] %s688_s30 }
  0x1b   : > { %s3570_s25 = scalar_lea.vmem %s619_s23, 16  ;;  %s3577_s8 = scalar_lea.vmem %s619_s23, 32 }
  0x1c   : > { %p4224_p5 = pnand %p4739_p2, %p3382_p4  ;;  %p3571_p7 = scmp.ne.s32.totalorder %s619_s23, %s3570_s25 }
  0x1d   : > { %p3578_p10 = scmp.lt.s32.totalorder %s619_s23, %s619_s23  ;;  %p3579_p11 = scmp.lt.s32.totalorder %s3577_s8, %s3570_s25 }
  0x1e   : > { %p4234_p6 = pneg %p4224_p5 }
  0x1f   : > { %p3580_p12 = por %p3579_p11, %p3578_p10 }
  0x20   : > { %p3573_p8 = pnand %p3571_p7, %p4234_p6 }
  0x22   : > { %p3574_p9 = pneg %p3573_p8 }
  0x24   : > { %p3581_p13 = pnand %p3580_p12, %p3574_p9 }
  0x26   : > { %3584 = shalt.err (!%p3581_p13)
}
  0x27   : > { %s4753_s22 = sld [smem:[#allocation42_spill]]  ;;  %s3596_s28 = scalar_lea.vmem %s4220_s6, 16 }
  0x28   : > { %p3597_p0 = scmp.ne.s32.totalorder %s4220_s6, %s3596_s28  ;;  %s3603_s2 = scalar_lea.vmem %s4220_s6, 32 }
  0x29   : > { %p3604_p7 = scmp.lt.s32.totalorder %s4220_s6, %s4220_s6  ;;  %p3605_p8 = scmp.lt.s32.totalorder %s3603_s2, %s3596_s28 }
  0x2a   : > { %p3599_p1 = pnand %p3597_p0, %p4234_p6 }
  0x2b   : > { %p3606_p9 = por %p3605_p8, %p3604_p7 }
  0x2c   : > { %p3600_p4 = pneg %p3599_p1 }
  0x2d   : > { %3388 = dma.hbm_to_vmem [thread:$0]  (!%p4224_p5), %s4753_s22, 16, %s619_s23, [#allocation5]  }
  0x2e   : > { %p3607_p10 = pnand %p3606_p9, %p3600_p4 }
  0x30   : > { %3610 = shalt.err (!%p3607_p10)
}
  0x31   : > { %s4754_s8 = sld [smem:[#allocation44_spill]]  ;;  %s3622_s23 = scalar_lea.vmem %s4228_s29, 16 }
  0x32   : > { %p3623_p11 = scmp.ne.s32.totalorder %s4228_s29, %s3622_s23  ;;  %s3629_s4 = scalar_lea.vmem %s4228_s29, 32 }
  0x33   : > { %p3630_p0 = scmp.lt.s32.totalorder %s4228_s29, %s4228_s29  ;;  %p3631_p1 = scmp.lt.s32.totalorder %s3629_s4, %s3622_s23 }
  0x34   : > { %p3625_p12 = pnand %p3623_p11, %p4234_p6 }
  0x35   : > { %p3632_p4 = por %p3631_p1, %p3630_p0 }
  0x36   : > { %p3626_p13 = pneg %p3625_p12 }
  0x37   : > { %3394 = dma.hbm_to_vmem [thread:$0]  (!%p4224_p5), %s4754_s8, 16, %s4220_s6, [#allocation8]  }
  0x38   : > { %p3633_p7 = pnand %p3632_p4, %p3626_p13 }
  0x3a   : > { %3636 = shalt.err (!%p3633_p7)
}
  0x3b   : > { %3400 = dma.hbm_to_vmem [thread:$0]  (!%p4224_p5), %s4721_s9, 16, %s4228_s29, [#allocation11]  }
  0x3c   : > { %s3648_s6 = scalar_lea.vmem %s4230_s30, 16  ;;  %s3655_s28 = scalar_lea.vmem %s4230_s30, 32 }
  0x3d   : > { %p3649_p8 = scmp.ne.s32.totalorder %s4230_s30, %s3648_s6  ;;  %p3656_p11 = scmp.lt.s32.totalorder %s4230_s30, %s4230_s30 }
  0x3e   : > { %p3657_p12 = scmp.lt.s32.totalorder %s3655_s28, %s3648_s6 }
  0x3f   : > { %p3651_p9 = pnand %p3649_p8, %p4234_p6 }
  0x40   : > { %p3658_p13 = por %p3657_p12, %p3656_p11 }
  0x41   : > { %p3652_p10 = pneg %p3651_p9 }
  0x43   : > { %p3659_p0 = pnand %p3658_p13, %p3652_p10 }
  0x45   : > { %3662 = shalt.err (!%p3659_p0)
}
  0x46   : > { %3406 = dma.hbm_to_vmem [thread:$0]  (!%p4224_p5), %s4723_s11, 16, %s4230_s30, [#allocation14]  }
  0x47   : > { %s4049_s29 = smov [#allocation16]   ;;  %s4050_s8 = smov [#allocation19]  }
  0x48   : > { %s712_s25 = sshll.u32 %s4049_s29, 4  ;;  %s734_s23 = sshll.u32 %s4050_s8, 4  ;;  %s713_s25 = int_to_ptr.vmem [resolvable:$true] %s712_s25  ;;  %s735_s23 = int_to_ptr.vmem [resolvable:$true] %s734_s23 }
  0x49   : > { %s3674_s4 = scalar_lea.vmem %s713_s25, 16  ;;  %s3681_s1 = scalar_lea.vmem %s713_s25, 32 }
  0x4a   : > { %p3675_p1 = scmp.ne.s32.totalorder %s713_s25, %s3674_s4  ;;  %p3682_p8 = scmp.lt.s32.totalorder %s713_s25, %s713_s25 }
  0x4b   : > { %p3683_p9 = scmp.lt.s32.totalorder %s3681_s1, %s3674_s4 }
  0x4c   : > { %p3677_p4 = pnand %p3675_p1, %p4234_p6 }
  0x4d   : > { %p3684_p10 = por %p3683_p9, %p3682_p8 }
  0x4e   : > { %p3678_p7 = pneg %p3677_p4 }
  0x50   : > { %p3685_p11 = pnand %p3684_p10, %p3678_p7 }
  0x52   : > { %3688 = shalt.err (!%p3685_p11)
}
  0x53   : > { %3412 = dma.hbm_to_vmem [thread:$0]  (!%p4224_p5), %s4725_s13, 16, %s713_s25, [#allocation17]  }
  0x54   : > { %s3700_s6 = scalar_lea.vmem %s735_s23, 16  ;;  %s3707_s28 = scalar_lea.vmem %s735_s23, 32 }
  0x55   : > { %p3701_p12 = scmp.ne.s32.totalorder %s735_s23, %s3700_s6  ;;  %p3708_p1 = scmp.lt.s32.totalorder %s735_s23, %s735_s23 }
  0x56   : > { %p3709_p4 = scmp.lt.s32.totalorder %s3707_s28, %s3700_s6 }
  0x57   : > { %p3703_p13 = pnand %p3701_p12, %p4234_p6 }
  0x58   : > { %p3710_p2 = por %p3709_p4, %p3708_p1 }
  0x59   : > { %p3704_p0 = pneg %p3703_p13 }
  0x5b   : > { %p3711_p8 = pnand %p3710_p2, %p3704_p0 }
  0x5d   : > { %3714 = shalt.err (!%p3711_p8)
}
  0x5e   : > { %3418 = dma.hbm_to_vmem [thread:$0]  (!%p4224_p5), %s4727_s15, 16, %s735_s23, [#allocation20]  }
  0x5f   : > { %s4051_s29 = smov [#allocation22]   ;;  %s4052_s8 = smov [#allocation25]  }
  0x60   : > { %s758_s25 = sshll.u32 %s4051_s29, 4  ;;  %s783_s4 = sshll.u32 %s4052_s8, 4  ;;  %s759_s25 = int_to_ptr.vmem [resolvable:$true] %s758_s25  ;;  %s784_s4 = int_to_ptr.vmem [resolvable:$true] %s783_s4 }
  0x61   : > { %s3726_s1 = scalar_lea.vmem %s759_s25, 16  ;;  %s3733_s22 = scalar_lea.vmem %s759_s25, 32 }
  0x62   : > { %p3727_p7 = scmp.ne.s32.totalorder %s759_s25, %s3726_s1  ;;  %p3734_p2 = scmp.lt.s32.totalorder %s759_s25, %s759_s25 }
  0x63   : > { %p3735_p11 = scmp.lt.s32.totalorder %s3733_s22, %s3726_s1 }
  0x64   : > { %p3729_p9 = pnand %p3727_p7, %p4234_p6 }
  0x65   : > { %p3736_p12 = por %p3735_p11, %p3734_p2 }
  0x66   : > { %p3730_p10 = pneg %p3729_p9 }
  0x68   : > { %p3737_p13 = pnand %p3736_p12, %p3730_p10 }
  0x6a   : > { %3740 = shalt.err (!%p3737_p13)
}
  0x6b   : > { %3424 = dma.hbm_to_vmem [thread:$0]  (!%p4224_p5), %s4729_s17, 16, %s759_s25, [#allocation23]  }
  0x6c   : > { %s3752_s6 = scalar_lea.vmem %s784_s4, 16  ;;  %s3759_s28 = scalar_lea.vmem %s784_s4, 32 }
  0x6d   : > { %p3753_p0 = scmp.ne.s32.totalorder %s784_s4, %s3752_s6  ;;  %p3760_p8 = scmp.lt.s32.totalorder %s784_s4, %s784_s4 }
  0x6e   : > { %p3761_p7 = scmp.lt.s32.totalorder %s3759_s28, %s3752_s6 }
  0x6f   : > { %p3755_p1 = pnand %p3753_p0, %p4234_p6 }
  0x70   : > { %p3762_p9 = por %p3761_p7, %p3760_p8 }
  0x71   : > { %p3756_p4 = pneg %p3755_p1 }
  0x73   : > { %p3763_p2 = pnand %p3762_p9, %p3756_p4 }
  0x75   : > { %3766 = shalt.err (!%p3763_p2)
}
  0x76   : > { %3430 = dma.hbm_to_vmem [thread:$0]  (!%p4224_p5), %s4732_s20, 16, %s784_s4, [#allocation26]  }
  0x77   : > { %s4053_s29 = smov [#allocation2]   ;;  %s4054_s8 = smov [#allocation6]  }
  0x78   : > { %s604_s25 = sshll.u32 %s4053_s29, 4  ;;  %s629_s1 = sshll.u32 %s4054_s8, 4  ;;  %s605_s25 = int_to_ptr.vmem [resolvable:$true] %s604_s25  ;;  %s630_s1 = int_to_ptr.vmem [resolvable:$true] %s629_s1 }
  0x79   : > { %s3778_s22 = scalar_lea.vmem %s605_s25, 16  ;;  %s3785_s30 = scalar_lea.vmem %s605_s25, 32 }
  0x7a   : > { %p3779_p10 = scmp.ne.s32.totalorder %s605_s25, %s3778_s22  ;;  %p3786_p13 = scmp.lt.s32.totalorder %s605_s25, %s605_s25 }
  0x7b   : > { %p3787_p0 = scmp.lt.s32.totalorder %s3785_s30, %s3778_s22 }
  0x7c   : > { %p3781_p11 = pnand %p3779_p10, %p4234_p6 }
  0x7d   : > { %p3788_p1 = por %p3787_p0, %p3786_p13 }
  0x7e   : > { %p3782_p12 = pneg %p3781_p11 }
  0x80   : > { %p3789_p4 = pnand %p3788_p1, %p3782_p12 }
  0x82   : > { %3792 = shalt.err (!%p3789_p4)
}
  0x83   : > { %s4755_s6 = sld [smem:[#allocation40_spill]]  ;;  %s3804_s28 = scalar_lea.vmem %s630_s1, 16 }
  0x84   : > { %p3805_p8 = scmp.ne.s32.totalorder %s630_s1, %s3804_s28  ;;  %s3811_s2 = scalar_lea.vmem %s630_s1, 32 }
  0x85   : > { %p3812_p2 = scmp.lt.s32.totalorder %s630_s1, %s630_s1  ;;  %p3813_p10 = scmp.lt.s32.totalorder %s3811_s2, %s3804_s28 }
  0x86   : > { %p3807_p7 = pnand %p3805_p8, %p4234_p6 }
  0x87   : > { %p3814_p11 = por %p3813_p10, %p3812_p2 }
  0x88   : > { %p3808_p9 = pneg %p3807_p7 }
  0x89   : > { %3385 = dma.hbm_to_vmem [thread:$0]  (!%p4224_p5), %s4755_s6, 16, %s605_s25, [#allocation3]  }
  0x8a   : > { %p3815_p13 = pnand %p3814_p11, %p3808_p9 }
  0x8c   : > { %3818 = shalt.err (!%p3815_p13)
}
  0x8d   : > { %s4756_s8 = sld [smem:[#allocation43_spill]]  ;;  %s4055_s25 = smov [#allocation9]  }
  0x8e   : > { %s650_s22 = sshll.u32 %s4055_s25, 4  ;;  %s651_s22 = int_to_ptr.vmem [resolvable:$true] %s650_s22 }
  0x8f   : > { %s3830_s30 = scalar_lea.vmem %s651_s22, 256  ;;  %p3838_p4 = scmp.lt.s32.totalorder %s651_s22, %s651_s22 }
  0x90   : > { %p3831_p12 = scmp.ne.s32.totalorder %s651_s22, %s3830_s30  ;;  %p3839_p8 = scmp.lt.s32.totalorder %s3830_s30, %s3830_s30 }
  0x92   : > { %p3833_p0 = pnand %p3831_p12, %p4234_p6  ;;  %p3840_p7 = por %p3839_p8, %p3838_p4 }
  0x93   : > { %3391 = dma.hbm_to_vmem [thread:$0]  (!%p4224_p5), %s4756_s8, 16, %s630_s1, [#allocation5]  }
  0x94   : > { %p3834_p1 = pneg %p3833_p0 }
  0x96   : > { %p3841_p9 = pnand %p3840_p7, %p3834_p1 }
  0x98   : > { %3844 = shalt.err (!%p3841_p9)
}
  0x99   : > { %s4056_s23 = smov 64   ;;  %s4057_s4 = smov 4  }
  0x9a   : > { %s4757_s28 = sld [smem:[#allocation45_spill]]  ;;  %s4058_s2 = smov [#allocation12]  }
  0x9b   : > { %s674_s7 = sshll.u32 %s4058_s2, 4  ;;  %s4059_s29 = smov [#allocation15]   ;;  %s675_s7 = int_to_ptr.vmem [resolvable:$true] %s674_s7 }
  0x9c   : > { %s698_s8 = sshll.u32 %s4059_s29, 4  ;;  %s3856_s25 = scalar_lea.vmem %s675_s7, 256  ;;  %s699_s8 = int_to_ptr.vmem [resolvable:$true] %s698_s8 }
  0x9d   : > { %p3857_p2 = scmp.ne.s32.totalorder %s675_s7, %s3856_s25  ;;  %p3864_p13 = scmp.lt.s32.totalorder %s675_s7, %s675_s7 }
  0x9e   : > { %p3865_p12 = scmp.lt.s32.totalorder %s3856_s25, %s3856_s25 }
  0x9f   : > { %p3859_p10 = pnand %p3857_p2, %p4234_p6 }
  0xa0   : > { %3397 = dma.hbm_to_vmem [thread:$0]  (!%p4224_p5), %s4757_s28, 256, %s651_s22, [#allocation8], %s4056_s23, %s4056_s23, %s4057_s4  }
  0xa1   : > { %p3860_p11 = pneg %p3859_p10  ;;  %p3866_p0 = por %p3865_p12, %p3864_p13 }
  0xa3   : > { %p3867_p1 = pnand %p3866_p0, %p3860_p11 }
  0xa5   : > { %3870 = shalt.err (!%p3867_p1)
}
  0xa6   : > { %3403 = dma.hbm_to_vmem [thread:$0]  (!%p4224_p5), %s4722_s10, 256, %s675_s7, [#allocation11], %s4056_s23, %s4056_s23, %s4057_s4  }
  0xa7   : > { %s3882_s1 = scalar_lea.vmem %s699_s8, 256  ;;  %p3890_p9 = scmp.lt.s32.totalorder %s699_s8, %s699_s8 }
  0xa8   : > { %p3883_p4 = scmp.ne.s32.totalorder %s699_s8, %s3882_s1  ;;  %p3891_p2 = scmp.lt.s32.totalorder %s3882_s1, %s3882_s1 }
  0xaa   : > { %p3885_p8 = pnand %p3883_p4, %p4234_p6  ;;  %p3892_p10 = por %p3891_p2, %p3890_p9 }
  0xac   : > { %p3886_p7 = pneg %p3885_p8 }
  0xae   : > { %p3893_p11 = pnand %p3892_p10, %p3886_p7 }
  0xb0   : > { %3896 = shalt.err (!%p3893_p11)
}
  0xb1   : > { %3409 = dma.hbm_to_vmem [thread:$0]  (!%p4224_p5), %s4724_s12, 256, %s699_s8, [#allocation14], %s4056_s23, %s4056_s23, %s4057_s4  }
  0xb2   : > { %s4060_s2 = smov [#allocation18]   ;;  %s4061_s29 = smov [#allocation21]  }
  0xb3   : > { %s723_s7 = sshll.u32 %s4060_s2, 4  ;;  %s744_s25 = sshll.u32 %s4061_s29, 4  ;;  %s724_s7 = int_to_ptr.vmem [resolvable:$true] %s723_s7  ;;  %s745_s25 = int_to_ptr.vmem [resolvable:$true] %s744_s25 }
  0xb4   : > { %s3908_s22 = scalar_lea.vmem %s724_s7, 16  ;;  %s3915_s30 = scalar_lea.vmem %s724_s7, 32 }
  0xb5   : > { %p3909_p13 = scmp.ne.s32.totalorder %s724_s7, %s3908_s22  ;;  %p3916_p1 = scmp.lt.s32.totalorder %s724_s7, %s724_s7 }
  0xb6   : > { %p3917_p4 = scmp.lt.s32.totalorder %s3915_s30, %s3908_s22 }
  0xb7   : > { %p3911_p12 = pnand %p3909_p13, %p4234_p6 }
  0xb8   : > { %p3918_p8 = por %p3917_p4, %p3916_p1 }
  0xb9   : > { %p3912_p0 = pneg %p3911_p12 }
  0xbb   : > { %p3919_p7 = pnand %p3918_p8, %p3912_p0 }
  0xbd   : > { %3922 = shalt.err (!%p3919_p7)
}
  0xbe   : > { %3415 = dma.hbm_to_vmem [thread:$0]  (!%p4224_p5), %s4726_s14, 16, %s724_s7, [#allocation17]  }
  0xbf   : > { %s3934_s6 = scalar_lea.vmem %s745_s25, 256  ;;  %p3942_p11 = scmp.lt.s32.totalorder %s745_s25, %s745_s25 }
  0xc0   : > { %p3935_p9 = scmp.ne.s32.totalorder %s745_s25, %s3934_s6  ;;  %p3943_p13 = scmp.lt.s32.totalorder %s3934_s6, %s3934_s6 }
  0xc2   : > { %p3937_p2 = pnand %p3935_p9, %p4234_p6  ;;  %p3944_p12 = por %p3943_p13, %p3942_p11 }
  0xc4   : > { %p3938_p10 = pneg %p3937_p2 }
  0xc6   : > { %p3945_p3 = pnand %p3944_p12, %p3938_p10 }
  0xc8   : > { %3948 = shalt.err (!%p3945_p3)
}
  0xc9   : > { %3421 = dma.hbm_to_vmem [thread:$0]  (!%p4224_p5), %s4728_s16, 256, %s745_s25, [#allocation20], %s4056_s23, %s4056_s23, %s4057_s4  }
  0xca   : > { %s4062_s7 = smov [#allocation24]   ;;  %s4063_s22 = smov [#allocation27]  }
  0xcb   : > { %s772_s29 = sshll.u32 %s4062_s7, 4  ;;  %s794_s30 = sshll.u32 %s4063_s22, 4  ;;  %s773_s29 = int_to_ptr.vmem [resolvable:$true] %s772_s29  ;;  %s795_s30 = int_to_ptr.vmem [resolvable:$true] %s794_s30 }
  0xcc   : > { %s3960_s8 = scalar_lea.vmem %s773_s29, 16  ;;  %s3967_s1 = scalar_lea.vmem %s773_s29, 32 }
  0xcd   : > { %p3961_p0 = scmp.ne.s32.totalorder %s773_s29, %s3960_s8  ;;  %p3968_p4 = scmp.lt.s32.totalorder %s773_s29, %s773_s29 }
  0xce   : > { %p3969_p8 = scmp.lt.s32.totalorder %s3967_s1, %s3960_s8 }
  0xcf   : > { %p3963_p3 = pnand %p3961_p0, %p4234_p6 }
  0xd0   : > { %p3970_p7 = por %p3969_p8, %p3968_p4 }
  0xd1   : > { %p3964_p1 = pneg %p3963_p3 }
  0xd3   : > { %p3971_p9 = pnand %p3970_p7, %p3964_p1 }
  0xd5   : > { %3974 = shalt.err (!%p3971_p9)
}
  0xd6   : > { %3427 = dma.hbm_to_vmem [thread:$0]  (!%p4224_p5), %s4731_s19, 16, %s773_s29, [#allocation23]  }
  0xd7   : > { %s3986_s25 = scalar_lea.vmem %s795_s30, 16  ;;  %s3993_s6 = scalar_lea.vmem %s795_s30, 32 }
  0xd8   : > { %p3987_p2 = scmp.ne.s32.totalorder %s795_s30, %s3986_s25  ;;  %p3994_p13 = scmp.lt.s32.totalorder %s795_s30, %s795_s30 }
  0xd9   : > { %p3995_p12 = scmp.lt.s32.totalorder %s3993_s6, %s3986_s25 }
  0xda   : > { %p3989_p10 = pnand %p3987_p2, %p4234_p6 }
  0xdb   : > { %p3996_p0 = por %p3995_p12, %p3994_p13 }
  0xdc   : > { %p3990_p11 = pneg %p3989_p10 }
  0xde   : > { %p3997_p3 = pnand %p3996_p0, %p3990_p11 }
  0xe0   : > { %4000 = shalt.err (!%p3997_p3)
}
  0xe1   : > { %3433 = dma.hbm_to_vmem [thread:$0]  (!%p4224_p5), %s4733_s21, 16, %s795_s30, [#allocation26]  }
  0xe2   : > { %p4758_p1 = scmp.ne.s32.totalorder %s4750_s27, 0 }
  0xe3   : > { %p4759_p4 = scmp.eq.s32.totalorder (!%p4758_p1), %s4209_s26, 0 }
  0xe4   : > { %827 = sbr.rel (%p4758_p1) target bundleno = 6509 (0x196d), region = 116 }
  0xe9   : > { %4006 = dma.done.wait (%p4759_p4), [#allocation3], 16   ;;  %p4760_p6 = pmov %p4759_p4 }
  0xea   : > { %p4761_p8 = pmov %p4759_p4 }
  0xeb   : > { %4008 = vsyncadd (%p4760_p6), [#allocation3], 4294967280 }
  0xec   : > { %4010 = dma.done.wait (%p4761_p8), [#allocation5], 32   ;;  %p4762_p7 = pmov %p4759_p4 }
  0xed   : > { %p4763_p9 = pmov %p4759_p4 }
  0xee   : > { %4012 = vsyncadd (%p4762_p7), [#allocation5], 4294967264 }
  0xef   : > { %4014 = dma.done.wait (%p4763_p9), [#allocation8], 272   ;;  %p4764_p5 = pmov %p4759_p4 }
  0xf0   : > { %p4765_p2 = pmov %p4759_p4 }
  0xf1   : > { %4016 = vsyncadd (%p4764_p5), [#allocation8], 4294967024 }
  0xf2   : > { %4018 = dma.done.wait (%p4765_p2), [#allocation11], 272   ;;  %p4766_p10 = pmov %p4765_p2 }
  0xf3   : > { %p4767_p11 = pmov %p4765_p2 }
  0xf4   : > { %4020 = vsyncadd (%p4766_p10), [#allocation11], 4294967024 }
  0xf5   : > { %4022 = dma.done.wait (%p4767_p11), [#allocation14], 272   ;;  %p4768_p13 = pmov %p4765_p2 }
  0xf6   : > { %p4769_p12 = pmov %p4765_p2 }
  0xf7   : > { %4024 = vsyncadd (%p4768_p13), [#allocation14], 4294967024 }
  0xf8   : > { %4026 = dma.done.wait (%p4769_p12), [#allocation17], 32   ;;  %p4770_p0 = pmov %p4765_p2 }
  0xfa   : > { %4028 = vsyncadd (%p4770_p0), [#allocation17], 4294967264  ;;  %p4771_p3 = pmov %p4770_p0 }
  0xfb   : > { %p4772_p1 = pmov %p4770_p0 }
  0xfc   : > { %4030 = dma.done.wait (%p4771_p3), [#allocation20], 272  }
  0xfd   : > { %4032 = vsyncadd (%p4772_p1), [#allocation20], 4294967024  ;;  %p4773_p4 = pmov %p4770_p0 }
  0xfe   : > { %p4774_p6 = pmov %p4770_p0 }
  0xff   : > { %4034 = dma.done.wait (%p4773_p4), [#allocation23], 32  }
 0x100   : > { %4036 = vsyncadd (%p4774_p6), [#allocation23], 4294967264  ;;  %p4775_p8 = pmov %p4770_p0 }
 0x101   : > { %p4776_p7 = pmov %p4770_p0 }
 0x102   : > { %4038 = dma.done.wait (%p4775_p8), [#allocation26], 32  }
 0x103   : > { %4040 = vsyncadd (%p4776_p7), [#allocation26], 4294967264  ;;  %p959_p9 = scmp.lt.s32.totalorder %s4209_s26, 1  ;;  %v4064_v0 = vmov 0.0   ;;  %vm4065_vm0 = vmmov 0   ;;  %s4777_s7 = sld [smem:[#allocation37_spill]]  ;;  %v974_v17 = vlaneseq }
 0x104   : > { %3126 = vmatprep.subr.bf16.mxu1 %v4064_v0  ;;  %3130 = vmatprep.mubr.msk.bf16.mxu1 %vm4065_vm0, %v4064_v0  ;;  %s4778_s8 = sld [smem:[#allocation39_spill]]  ;;  %vm1004_vm1 = vcmask 261120   ;;  %v3002_v5 = vld [vmem:[#allocation2] ss:$0 sm:$0xff]  ;;  %s4067_s4 = smov 96   ;;  %vm1053_vm2 = vcmask 64512  }
 0x105   : > { %s4782_s26 = smov (!%p959_p9, %s4209_s26), 1  ;;  %3140 = vmatprep.subr.bf16.mxu0 %v4064_v0  ;;  %3142 = vmatprep.mubr.msk.bf16.mxu0 %vm4065_vm0, %v4064_v0  ;;  %s4068_s25 = smov 88   ;;  %v975_v18 = vshrl.u32 %v974_v17, 7  ;;  %v977_v19 = vand.u32 127, %v974_v17  ;;  %v4069_v21 = vmov -1e+09  }
 0x106   : > { %s4433_s27 = sshll.u32 %s4782_s26, 3  ;;  %s4066_s26 = smov 120   ;;  %vm1119_vm4 = vcmask 1043456   ;;  %vm2648_vm5 = vcmask 523264  }
 0x107   : > { %vm978_vm3 = vcmp.ge.s32.totalorder %v975_v18, %v977_v19  ;;  %s4070_s6 = smov 64   ;;  %s4071_s28 = smov 56  }
 0x108   : > { %v4473_v22 = vsel %vm978_vm3, 0.0, %v4069_v21  ;;  %s4072_s2 = smov 112   ;;  %s4073_s0 = smov 80  }
 0x109   : > { %s962_s29 = scalar_lea.vmem %s4777_s7, %s4433_s27  ;;  %s4074_s1 = smov 72  }
 0x10a   : > { %v3509_v1 = vld [vmem:[%s4778_s8 + $0x8] sm:$0xff]   ;;  %v3510_v2 = vld [vmem:[%s4778_s8] sm:$0xff]   ;;  %s4075_s23 = smov 104   ;;  %s4077_s7 = smov 40  }
 0x10b   : > { %3127 = vmatpush3.bf16.msra.mxu1 %v3509_v1  ;;  %v4445_v3 = vld [vmem:[%s962_s29] sm:$0xff]  ;;  %s4779_s29 = sld [smem:[#allocation41_spill]] }
 0x10c   : > { %3128 = vmatprep.subr.bf16.mxu1 %v4064_v0  ;;  %v984_v4 = vpack.c.bf16 %v4445_v3, %v4445_v3  ;;  %s4780_s3 = sld [smem:[#allocation38_spill]] }
 0x10f   : > { %3129 = vmatpush3.bf16.msra.mxu1 %v3510_v2 }
 0x110   : > { %3134 = vmatprep.subr.bf16.mxu1 %v4064_v0 }
 0x111   : > { %v1164_v58 = vld [vmem:[%s4779_s29] sm:$0xf]  ;;  %v3010_v60 = vld [vmem:[%s4779_s29 + $0x4] sm:$0xf] }
 0x112   : > { %3131 = vmatmul.mubr.msk.bf16.vlgmr.msra.gmra.mxu1 %vm1004_vm1, %v984_v4  ;;  %v1330_v59 = vsel %vm1119_vm4, %v1164_v58, 0  ;;  %v1284_v61 = vsel %vm1119_vm4, %v3010_v60, 0 }
 0x113   : > { %3136 = vmatprep.mubr.msk.bf16.mxu1 %vm4065_vm0, %v4064_v0 }
 0x1d2   : > { %v1042_v6 = vpop.f32.mrf.mxu1 }
 0x1d3   : > { %v1043_v7 = vadd.f32 %v3002_v5, %v1042_v6 }
 0x1d4   : > { %v3132_v8 = vpop.f32.mrf.mxu1 }
 0x1d5   : > { %v4454_v9 = vpack.c.bf16 %v1043_v7, %v1043_v7 }
 0x1d6   : > { %v1045_v10 = vpop.f32.mrf.mxu1 }
 0x1d7   : > { %1165 = vrot.lane.b32.xlu1 %v4454_v9, %s4066_s26  ;;  %1051 = vrot.lane.b32.xlu0 %v4454_v9, %s4067_s4 }
 0x1d8   : > { %v3133_v11 = vpop.f32.mrf.mxu1 }
 0x1db   : > { %1167 = vrot.lane.b32.xlu0 %v4454_v9, %s4068_s25 }
 0x249   : > { %v1052_v12 = vpop.permute.xlu0 %1051  ;;  %v1166_v16 = vpop.permute.xlu1 %1165 }
 0x24a   : > { %v1058_v13 = vsel %vm1053_vm2, %v1052_v12, 0 }
 0x24b   : > { %3135 = vmatpush3.bf16.xpose.msra.mxu1 %v1058_v13 }
 0x24c   : > { %3146 = vmatprep.subr.bf16.mxu1 %v4064_v0 }
 0x24d   : > { %v1168_v14 = vpop.permute.xlu0 %1167 }
 0x24e   : > { %v1173_v15 = vsel %vm1053_vm2, %v1168_v14, 0 }
 0x252   : > { %3137 = vmatmul.mubr.msk.bf16.vlgmr.msra.gmra.mxu1 %vm1053_vm2, %v4454_v9 }
 0x253   : > { %3147 = vmatpush3.bf16.xpose.msra.mxu1 %v1173_v15  ;;  %3148 = vmatprep.mubr.msk.bf16.mxu1 %vm4065_vm0, %v4064_v0 }
 0x254   : > { %3158 = vmatprep.subr.bf16.mxu1 %v4064_v0 }
 0x25a   : > { %3149 = vmatmul.mubr.msk.bf16.vlgmr.msra.gmra.mxu1 %vm1053_vm2, %v1166_v16 }
 0x25b   : > { %3160 = vmatprep.mubr.msk.bf16.mxu1 %vm4065_vm0, %v4064_v0  ;;  %3159 = vmatpush3.bf16.msra.mxu1 %v1284_v61 }
 0x25c   : > { %3170 = vmatprep.subr.bf16.mxu1 %v4064_v0 }
 0x312   : > { %v1094_v20 = vpop.f32.mrf.mxu1 }
 0x313   : > { %v1100_v23 = vmul.f32 0.35355338, %v1094_v20 }
 0x314   : > { %v3138_v24 = vpop.f32.mrf.mxu1 }
 0x315   : > { %v1101_v25 = vadd.f32 %v1100_v23, %v4473_v22 }
 0x316   : > { %v1097_v26 = vpop.f32.mrf.mxu1 }
 0x317   : > { %v1102_v27 = vsel %vm1053_vm2, %v1101_v25, -inf }
 0x318   : > { %1103 = vmax.xlane.f32.xlu1 %v1102_v27  ;;  %v3139_v28 = vpop.f32.mrf.mxu1 }
 0x31a   : > { %v1209_v29 = vpop.f32.mrf.mxu1 }
 0x31b   : > { %v1215_v30 = vmul.f32 0.35355338, %v1209_v29 }
 0x31c   : > { %v3150_v31 = vpop.f32.mrf.mxu1 }
 0x31d   : > { %v1216_v32 = vadd.f32 %v1215_v30, %v4473_v22 }
 0x31e   : > { %v1212_v33 = vpop.f32.mrf.mxu1 }
 0x31f   : > { %v1217_v34 = vsel %vm1053_vm2, %v1216_v32, -inf }
 0x320   : > { %1218 = vmax.xlane.f32.xlu0 %v1217_v34  ;;  %v3151_v35 = vpop.f32.mrf.mxu1 }
 0x3a1   : > { %v1104_v36 = vpop.xlane.xlu1 %1103 }
 0x3a2   : > { %v1105_v37 = vsub.f32 %v1101_v25, %v1104_v36 }
 0x3a4   : > { %v1106_v38 = vmul.f32 1.442695, %v1105_v37 }
 0x3a6   : > { %3521 = vpow2.f32 %v1106_v38 }
 0x3a9   : > { %v1219_v39 = vpop.xlane.xlu0 %1218 }
 0x3aa   : > { %v1220_v40 = vsub.f32 %v1216_v32, %v1219_v39 }
 0x3ac   : > { %v1221_v41 = vmul.f32 1.442695, %v1220_v40 }
 0x3ae   : > { %3523 = vpow2.f32 %v1221_v41 }
 0x3b3   : > { %v3522_v42 = vpop.eup %3521 }
 0x3b4   : > { %v1108_v43 = vsel %vm1053_vm2, %v3522_v42, 0.0 }
 0x3b5   : > { %1109 = vadd.xlane.f32.xlu0 %v1108_v43 }
 0x3bb   : > { %v3524_v44 = vpop.eup %3523 }
 0x3bc   : > { %v1223_v45 = vsel %vm1053_vm2, %v3524_v44, 0.0 }
 0x3bd   : > { %1224 = vadd.xlane.f32.xlu1 %v1223_v45  ;;  %v3015_v45 = vld [vmem:[%s4779_s29 + $0x8] sm:$0xf] }
 0x3cb   : > { %1114 = vrot.lane.b32.xlu0 %v4454_v9, %s4070_s6  ;;  %s4076_s6 = smov 48  }
 0x3ce   : > { %1229 = vrot.lane.b32.xlu1 %v4454_v9, %s4071_s28  ;;  %s970_s28 = scalar_lea.vmem %s4736_s24, %s4433_s27 }
 0x3cf   : > { %1372 = vrot.lane.b32.xlu0 %v4454_v9, %s4072_s2 }
 0x3d2   : > { %1374 = vrot.lane.b32.xlu1 %v4454_v9, %s4073_s0 }
 0x43e   : > { %v1110_v46 = vpop.xlane.xlu0 %1109 }
 0x43f   : > { %3525 = vrcp.f32 %v1110_v46  ;;  %v1491_v46 = vsel %vm1119_vm4, %v3015_v45, 0  ;;  %v3023_v45 = vld [vmem:[#allocation7] ss:$0 sm:$0xff] }
 0x442   : > { %v1115_v47 = vpop.permute.xlu0 %1114 }
 0x443   : > { %v1121_v48 = vsel %vm1119_vm4, %v1115_v47, 0 }
 0x444   : > { %3141 = vmatpush3.bf16.msra.mxu0 %v1121_v48 }
 0x445   : > { %3152 = vmatprep.subr.bf16.mxu0 %v4064_v0 }
 0x446   : > { %v1225_v49 = vpop.xlane.xlu1 %1224  ;;  %v1373_v13 = vpop.permute.xlu0 %1372 }
 0x447   : > { %3527 = vrcp.f32 %v1225_v49 }
 0x44a   : > { %v1230_v52 = vpop.permute.xlu1 %1229 }
 0x44b   : > { %v1235_v54 = vsel %vm1119_vm4, %v1230_v52, 0 }
 0x44c   : > { %v3526_v50 = vpop.eup %3525 }
 0x44d   : > { %v1112_v51 = vmul.f32 %v3526_v50, %v3522_v42 }
 0x44e   : > { %v1375_v5 = vpop.permute.xlu1 %1374 }
 0x44f   : > { %v1113_v53 = vpack.c.bf16 %v1112_v51, %v1112_v51  ;;  %v1380_v10 = vsel %vm1053_vm2, %v1375_v5, 0 }
 0x451   : > { %3143 = vmatmul.mubr.msk.bf16.vlgmr.msra.gmra.mxu0 %vm1053_vm2, %v1113_v53 }
 0x452   : > { %3153 = vmatpush3.bf16.msra.mxu0 %v1235_v54  ;;  %3154 = vmatprep.mubr.msk.bf16.mxu0 %vm4065_vm0, %v4064_v0 }
 0x453   : > { %3164 = vmatprep.subr.bf16.mxu0 %v4064_v0 }
 0x454   : > { %v3528_v55 = vpop.eup %3527 }
 0x455   : > { %v1227_v56 = vmul.f32 %v3528_v55, %v3524_v44 }
 0x457   : > { %v1228_v57 = vpack.c.bf16 %v1227_v56, %v1227_v56 }
 0x459   : > { %3155 = vmatmul.mubr.msk.bf16.vlgmr.msra.gmra.mxu0 %vm1053_vm2, %v1228_v57 }
 0x45a   : > { %3166 = vmatprep.mubr.msk.bf16.mxu0 %vm4065_vm0, %v4064_v0  ;;  %3165 = vmatpush3.bf16.msra.mxu0 %v1330_v59 }
 0x45b   : > { %3176 = vmatprep.subr.bf16.mxu0 %v4064_v0 }
 0x511   : > { %v1157_v62 = vpop.f32.mrf.mxu0 }
 0x512   : > { %v1163_v63 = vpack.c.bf16 %v1157_v62, %v1157_v62 }
 0x513   : > { %v3144_v1 = vpop.f32.mrf.mxu0 }
 0x514   : > { %3167 = vmatmul.mubr.msk.bf16.vlgmr.msra.gmra.mxu0 %vm1053_vm2, %v1163_v63 }
 0x515   : > { %v1160_v2 = vpop.f32.mrf.mxu0  ;;  %3178 = vmatprep.mubr.msk.bf16.mxu0 %vm4065_vm0, %v4064_v0 }
 0x517   : > { %v3145_v4 = vpop.f32.mrf.mxu0 }
 0x519   : > { %v1271_v6 = vpop.f32.mrf.mxu0 }
 0x51a   : > { %v1277_v7 = vpack.c.bf16 %v1271_v6, %v1271_v6 }
 0x51b   : > { %v3156_v8 = vpop.f32.mrf.mxu0 }
 0x51c   : > { %3161 = vmatmul.mubr.msk.bf16.vlgmr.msra.gmra.mxu1 %vm1053_vm2, %v1277_v7 }
 0x51d   : > { %3171 = vmatpush3.bf16.xpose.msra.mxu1 %v1380_v10  ;;  %v1274_v11 = vpop.f32.mrf.mxu0  ;;  %3172 = vmatprep.mubr.msk.bf16.mxu1 %vm4065_vm0, %v4064_v0 }
 0x51e   : > { %3182 = vmatprep.subr.bf16.mxu1 %v4064_v0 }
 0x51f   : > { %v3157_v12 = vpop.f32.mrf.mxu0 }
 0x524   : > { %3173 = vmatmul.mubr.msk.bf16.vlgmr.msra.gmra.mxu1 %vm1053_vm2, %v1373_v13 }
 0x525   : > { %3184 = vmatprep.mubr.msk.bf16.mxu1 %vm4065_vm0, %v4064_v0  ;;  %3183 = vmatpush3.bf16.msra.mxu1 %v1491_v46 }
 0x526   : > { %3194 = vmatprep.subr.bf16.mxu1 %v4064_v0 }
 0x5d4   : > { %v1366_v14 = vpop.f32.mrf.mxu0 }
 0x5d6   : > { %v3168_v15 = vpop.f32.mrf.mxu0 }
 0x5d8   : > { %v1369_v16 = vpop.f32.mrf.mxu0 }
 0x5da   : > { %v3169_v17 = vpop.f32.mrf.mxu0 }
 0x5dc   : > { %v1320_v18 = vpop.f32.mrf.mxu1 }
 0x5dd   : > { %v4518_v19 = vadd.f32 %v1366_v14, %v1320_v18 }
 0x5de   : > { %v3162_v20 = vpop.f32.mrf.mxu1 }
 0x5e0   : > { %v1323_v21 = vpop.f32.mrf.mxu1 }
 0x5e2   : > { %v3163_v23 = vpop.f32.mrf.mxu1 }
 0x5e4   : > { %v1416_v24 = vpop.f32.mrf.mxu1 }
 0x5e5   : > { %v1422_v25 = vmul.f32 0.35355338, %v1416_v24 }
 0x5e6   : > { %v3174_v26 = vpop.f32.mrf.mxu1 }
 0x5e7   : > { %v1423_v27 = vadd.f32 %v1422_v25, %v4473_v22 }
 0x5e8   : > { %v1419_v28 = vpop.f32.mrf.mxu1 }
 0x5e9   : > { %v1424_v29 = vsel %vm1053_vm2, %v1423_v27, -inf }
 0x5ea   : > { %1425 = vmax.xlane.f32.xlu1 %v1424_v29  ;;  %v3175_v30 = vpop.f32.mrf.mxu1 }
 0x5fb   : > { %1536 = vrot.lane.b32.xlu1 %v4454_v9, %s4074_s1 }
 0x5ff   : > { %1534 = vrot.lane.b32.xlu1 %v4454_v9, %s4075_s23 }
 0x673   : > { %v1426_v31 = vpop.xlane.xlu1 %1425 }
 0x674   : > { %v1427_v32 = vsub.f32 %v1423_v27, %v1426_v31 }
 0x676   : > { %v1428_v33 = vmul.f32 1.442695, %v1427_v32 }
 0x677   : > { %v1537_v41 = vpop.permute.xlu1 %1536 }
 0x678   : > { %3529 = vpow2.f32 %v1428_v33  ;;  %v1542_v43 = vsel %vm1053_vm2, %v1537_v41, 0 }
 0x67b   : > { %v1535_v44 = vpop.permute.xlu1 %1534 }
 0x685   : > { %v3530_v34 = vpop.eup %3529 }
 0x686   : > { %v1430_v35 = vsel %vm1053_vm2, %v3530_v34, 0.0 }
 0x687   : > { %1431 = vadd.xlane.f32.xlu0 %v1430_v35  ;;  %v3512_v35 = vld [vmem:[#allocation12] sm:$0xff]  }
 0x69d   : > { %1436 = vrot.lane.b32.xlu0 %v4454_v9, %s4076_s6 }
 0x710   : > { %v1432_v36 = vpop.xlane.xlu0 %1431 }
 0x711   : > { %3531 = vrcp.f32 %v1432_v36 }
 0x714   : > { %v1437_v37 = vpop.permute.xlu0 %1436 }
 0x715   : > { %v1442_v38 = vsel %vm1119_vm4, %v1437_v37, 0  ;;  %v3513_v37 = vld [vmem:[#allocation9 + $0x8] sm:$0xff]  }
 0x716   : > { %3177 = vmatpush3.bf16.msra.mxu0 %v1442_v38  ;;  %v3514_v38 = vld [vmem:[#allocation9] sm:$0xff]  }
 0x717   : > { %3188 = vmatprep.subr.bf16.mxu0 %v4064_v0 }
 0x71e   : > { %v3532_v39 = vpop.eup %3531 }
 0x71f   : > { %v1434_v40 = vmul.f32 %v3532_v39, %v3530_v34  ;;  %v3511_v34 = vld [vmem:[#allocation12 + $0x8] sm:$0xff]  }
 0x721   : > { %v1435_v42 = vpack.c.bf16 %v1434_v40, %v1434_v40 }
 0x723   : > { %3179 = vmatmul.mubr.msk.bf16.vlgmr.msra.gmra.mxu0 %vm1053_vm2, %v1435_v42 }
 0x724   : > { %3189 = vmatpush3.bf16.xpose.msra.mxu0 %v1542_v43  ;;  %3190 = vmatprep.mubr.msk.bf16.mxu0 %vm4065_vm0, %v4064_v0  ;;  %v3022_v43 = vld [vmem:[#allocation6] ss:$0 sm:$0xff] }
 0x725   : > { %3200 = vmatprep.subr.bf16.mxu0 %v4064_v0 }
 0x72b   : > { %3191 = vmatmul.mubr.msk.bf16.vlgmr.msra.gmra.mxu0 %vm1053_vm2, %v1535_v44 }
 0x72c   : > { %3202 = vmatprep.mubr.msk.bf16.mxu0 %vm4065_vm0, %v4064_v0 }
 0x7e3   : > { %v1478_v47 = vpop.f32.mrf.mxu0 }
 0x7e4   : > { %v1484_v48 = vpack.c.bf16 %v1478_v47, %v1478_v47 }
 0x7e5   : > { %v3180_v49 = vpop.f32.mrf.mxu0 }
 0x7e6   : > { %3185 = vmatmul.mubr.msk.bf16.vlgmr.msra.gmra.mxu1 %vm1053_vm2, %v1484_v48  ;;  %v3028_v49 = vld [vmem:[#allocation13] ss:$0 sm:$0xff] }
 0x7e7   : > { %v1481_v50 = vpop.f32.mrf.mxu0  ;;  %3196 = vmatprep.mubr.msk.bf16.mxu1 %vm4065_vm0, %v4064_v0 }
 0x7e9   : > { %v3181_v51 = vpop.f32.mrf.mxu0 }
 0x7eb   : > { %v1578_v52 = vpop.f32.mrf.mxu0 }
 0x7ec   : > { %v1584_v53 = vmul.f32 0.35355338, %v1578_v52 }
 0x7ed   : > { %v3192_v54 = vpop.f32.mrf.mxu0 }
 0x7ee   : > { %v1585_v55 = vadd.f32 %v1584_v53, %v4473_v22 }
 0x7ef   : > { %v1581_v56 = vpop.f32.mrf.mxu0 }
 0x7f0   : > { %v1586_v57 = vsel %vm1053_vm2, %v1585_v55, -inf }
 0x7f1   : > { %1587 = vmax.xlane.f32.xlu0 %v1586_v57  ;;  %v3193_v58 = vpop.f32.mrf.mxu0  ;;  %v3024_v57 = vld [vmem:[#allocation10] ss:$0 sm:$0xff] }
 0x807   : > { %1598 = vrot.lane.b32.xlu0 %v4454_v9, %s4077_s7  ;;  %v3019_v9 = vld [vmem:[%s4779_s29 + $0xc] sm:$0xf]  ;;  %s966_s7 = scalar_lea.vmem %s4780_s3, %s4433_s27 }
 0x808   : > { %v1653_v7 = vsel %vm1119_vm4, %v3019_v9, 0 }
 0x809   : > { %3201 = vmatpush3.bf16.msra.mxu0 %v1653_v7 }
 0x80a   : > { %3214 = vmatprep.subr.bf16.mxu0 %v4064_v0 }
 0x87a   : > { %v1588_v59 = vpop.xlane.xlu0 %1587 }
 0x87b   : > { %v1589_v60 = vsub.f32 %v1585_v55, %v1588_v59 }
 0x87d   : > { %v1590_v61 = vmul.f32 1.442695, %v1589_v60 }
 0x87e   : > { %v1599_v62 = vpop.permute.xlu0 %1598 }
 0x87f   : > { %3533 = vpow2.f32 %v1590_v61  ;;  %v1604_v63 = vsel %vm1119_vm4, %v1599_v62, 0 }
 0x880   : > { %3195 = vmatpush3.bf16.msra.mxu1 %v1604_v63 }
 0x881   : > { %3206 = vmatprep.subr.bf16.mxu1 %v4064_v0 }
 0x88c   : > { %v3534_v1 = vpop.eup %3533 }
 0x88d   : > { %v1592_v22 = vsel %vm1053_vm2, %v3534_v1, 0.0 }
 0x88e   : > { %1593 = vadd.xlane.f32.xlu1 %v1592_v22 }
 0x8a6   : > { %v1527_v2 = vpop.f32.mrf.mxu1 }
 0x8a7   : > { %v1533_v4 = vadd.f32 %v1527_v2, %v4518_v19  ;;  %v3021_v19 = vld [vmem:[#allocation4] ss:$0 sm:$0xff] }
 0x8a8   : > { %v3186_v5 = vpop.f32.mrf.mxu1 }
 0x8aa   : > { %v1530_v6 = vpop.f32.mrf.mxu1 }
 0x8ac   : > { %v3187_v8 = vpop.f32.mrf.mxu1 }
 0x917   : > { %v1594_v10 = vpop.xlane.xlu1 %1593 }
 0x918   : > { %3535 = vrcp.f32 %v1594_v10 }
 0x925   : > { %v3536_v11 = vpop.eup %3535 }
 0x926   : > { %v1596_v12 = vmul.f32 %v3536_v11, %v3534_v1 }
 0x928   : > { %v1597_v13 = vpack.c.bf16 %v1596_v12, %v1596_v12 }
 0x92a   : > { %3197 = vmatmul.mubr.msk.bf16.vlgmr.msra.gmra.mxu1 %vm1053_vm2, %v1597_v13 }
 0x92b   : > { %3210 = vmatprep.mubr.msk.bf16.mxu1 %vm4065_vm0, %v4064_v0  ;;  %3207 = vmatpush3.bf16.msra.mxu1 %v3513_v37 }
 0x92c   : > { %3208 = vmatprep.subr.bf16.mxu1 %v4064_v0 }
 0x92f   : > { %3209 = vmatpush3.bf16.msra.mxu1 %v3514_v38  ;;  %v1980_v38 = vld [vmem:[#allocation15] sm:$0xf] }
 0x930   : > { %3222 = vmatprep.subr.bf16.mxu1 %v4064_v0 }
 0x9ea   : > { %v1640_v14 = vpop.f32.mrf.mxu1 }
 0x9eb   : > { %v1646_v15 = vpack.c.bf16 %v1640_v14, %v1640_v14 }
 0x9ec   : > { %v3198_v16 = vpop.f32.mrf.mxu1 }
 0x9ed   : > { %3203 = vmatmul.mubr.msk.bf16.vlgmr.msra.gmra.mxu0 %vm1053_vm2, %v1646_v15 }
 0x9ee   : > { %v1643_v17 = vpop.f32.mrf.mxu1  ;;  %3218 = vmatprep.mubr.msk.bf16.mxu0 %vm4065_vm0, %v4064_v0  ;;  %3215 = vmatpush3.bf16.msra.mxu0 %v3511_v34 }
 0x9ef   : > { %3216 = vmatprep.subr.bf16.mxu0 %v4064_v0 }
 0x9f0   : > { %v3199_v18 = vpop.f32.mrf.mxu1 }
 0x9f2   : > { %3217 = vmatpush3.bf16.msra.mxu0 %v3512_v35 }
 0x9f3   : > { %3228 = vmatprep.subr.bf16.mxu0 %v4064_v0 }
 0xaad   : > { %v1689_v20 = vpop.f32.mrf.mxu0 }
 0xaae   : > { %v1695_v21 = vadd.f32 %v1689_v20, %v1533_v4 }
 0xaaf   : > { %v3204_v23 = vpop.f32.mrf.mxu0 }
 0xab0   : > { %v1702_v24 = vadd.f32 %v3021_v19, %v1695_v21 }
 0xab1   : > { %v1692_v25 = vpop.f32.mrf.mxu0 }
 0xab2   : > { %v1703_v26 = vadd.f32 %v1702_v24, %v4445_v3  ;;  %v973_v3 = vld [vmem:[%s966_s7] sm:$0xff] }
 0xab3   : > { %v3205_v27 = vpop.f32.mrf.mxu0  ;;  %v1805_v36 = vpack.c.bf16 %v973_v3, %v973_v3 }
 0xab4   : > { %v1706_v28 = vsel %vm1004_vm1, %v1703_v26, 0.0 }
 0xab5   : > { %1707 = vadd.xlane.f32.xlu1 %v1706_v28  ;;  %3219 = vmatmul.mubr.msk.bf16.vlgmr.msra.gmra.mxu0 %vm1004_vm1, %v1805_v36 }
 0xab6   : > { %3230 = vmatprep.mubr.msk.bf16.mxu0 %vm4065_vm0, %v4064_v0 }
 0xb3e   : > { %v1708_v29 = vpop.xlane.xlu1 %1707 }
 0xb3f   : > { %v1710_v30 = vmul.f32 0.03125, %v1708_v29 }
 0xb41   : > { %v1711_v31 = vsub.f32 %v1703_v26, %v1710_v30 }
 0xb43   : > { %v1712_v32 = vmul.f32 %v1711_v31, %v1711_v31 }
 0xb45   : > { %v1713_v33 = vsel %vm1004_vm1, %v1712_v32, 0.0 }
 0xb46   : > { %1714 = vadd.xlane.f32.xlu1 %v1713_v33 }
 0xb75   : > { %v1862_v50 = vpop.f32.mrf.mxu0 }
 0xb76   : > { %v1863_v51 = vadd.f32 %v3028_v49, %v1862_v50 }
 0xb77   : > { %v3220_v52 = vpop.f32.mrf.mxu0 }
 0xb78   : > { %v4585_v53 = vpack.c.bf16 %v1863_v51, %v1863_v51 }
 0xb79   : > { %v1865_v54 = vpop.f32.mrf.mxu0 }
 0xb7a   : > { %1984 = vrot.lane.b32.xlu1 %v4585_v53, %s4066_s26  ;;  %v1875_v55 = vsel %vm1053_vm2, %v4585_v53, 0 }
 0xb7b   : > { %v3221_v56 = vpop.f32.mrf.mxu0 }
 0xbcf   : > { %v1715_v39 = vpop.xlane.xlu1 %1714 }
 0xbd0   : > { %v1716_v40 = vmul.f32 0.03125, %v1715_v39  ;;  %v2146_v39 = vsel %vm1119_vm4, %v1980_v38, 0 }
 0xbd2   : > { %v1717_v41 = vadd.f32 1e-05, %v1716_v40  ;;  %v2095_v40 = vld [vmem:[#allocation15 + $0x4] sm:$0xf] }
 0xbd4   : > { %3537 = vrsqrt.f32 %v1717_v41  ;;  %v2100_v41 = vsel %vm1119_vm4, %v2095_v40, 0 }
 0xbe1   : > { %v3538_v42 = vpop.eup %3537 }
 0xbe2   : > { %v1719_v44 = vmul.f32 %v3538_v42, %v1711_v31 }
 0xbe4   : > { %v1726_v46 = vmul.f32 %v3022_v43, %v1719_v44 }
 0xbe6   : > { %v4578_v47 = vadd.f32 %v3023_v45, %v1726_v46 }
 0xbe8   : > { %v1738_v48 = vpack.c.bf16 %v4578_v47, %v4578_v47 }
 0xbea   : > { %3211 = vmatmul.mubr.msk.bf16.vlgmr.msra.gmra.mxu1 %vm1004_vm1, %v1738_v48 }
 0xbeb   : > { %3224 = vmatprep.mubr.msk.bf16.mxu1 %vm4065_vm0, %v4064_v0  ;;  %3223 = vmatpush3.bf16.xpose.msra.mxu1 %v1875_v55 }
 0xbec   : > { %3234 = vmatprep.subr.bf16.mxu1 %v4064_v0  ;;  %v1985_v59 = vpop.permute.xlu1 %1984 }
 0xbed   : > { %v1990_v63 = vsel %vm1053_vm2, %v1985_v59, 0 }
 0xcaa   : > { %v1795_v58 = vpop.f32.mrf.mxu1 }
 0xcab   : > { %v1796_v60 = vadd.f32 %v3024_v57, %v1795_v58 }
 0xcac   : > { %v3212_v61 = vpop.f32.mrf.mxu1 }
 0xcad   : > { %v4592_v62 = vpack.c.bf16 %v1796_v60, %v1796_v60 }
 0xcae   : > { %v1798_v1 = vpop.f32.mrf.mxu1 }
 0xcaf   : > { %1982 = vrot.lane.b32.xlu0 %v4592_v62, %s4066_s26  ;;  %3225 = vmatmul.mubr.msk.bf16.vlgmr.msra.gmra.mxu1 %vm1053_vm2, %v4592_v62 }
 0xcb0   : > { %v3213_v22 = vpop.f32.mrf.mxu1  ;;  %3235 = vmatpush3.bf16.xpose.msra.mxu1 %v1990_v63  ;;  %3236 = vmatprep.mubr.msk.bf16.mxu1 %vm4065_vm0, %v4064_v0 }
 0xcb1   : > { %3246 = vmatprep.subr.bf16.mxu1 %v4064_v0 }
 0xd21   : > { %v1983_v2 = vpop.permute.xlu0 %1982 }
 0xd22   : > { %3237 = vmatmul.mubr.msk.bf16.vlgmr.msra.gmra.mxu1 %vm1053_vm2, %v1983_v2 }
 0xd23   : > { %3248 = vmatprep.mubr.msk.bf16.mxu1 %vm4065_vm0, %v4064_v0  ;;  %3247 = vmatpush3.bf16.msra.mxu1 %v2100_v41 }
 0xd24   : > { %3258 = vmatprep.subr.bf16.mxu1 %v4064_v0 }
 0xd6f   : > { %v1911_v4 = vpop.f32.mrf.mxu1 }
 0xd70   : > { %v1917_v5 = vmul.f32 0.35355338, %v1911_v4 }
 0xd71   : > { %v3226_v6 = vpop.f32.mrf.mxu1 }
 0xd72   : > { %v1918_v9 = vsel %vm1053_vm2, %v1917_v5, -inf }
 0xd73   : > { %1919 = vmax.xlane.f32.xlu0 %v1918_v9  ;;  %v1914_v7 = vpop.f32.mrf.mxu1 }
 0xd75   : > { %v3227_v8 = vpop.f32.mrf.mxu1 }
 0xde2   : > { %v2026_v10 = vpop.f32.mrf.mxu1 }
 0xde3   : > { %v2032_v11 = vmul.f32 0.35355338, %v2026_v10 }
 0xde4   : > { %v3238_v12 = vpop.f32.mrf.mxu1 }
 0xde5   : > { %v2033_v13 = vsel %vm1053_vm2, %v2032_v11, -inf }
 0xde6   : > { %2034 = vmax.xlane.f32.xlu1 %v2033_v13  ;;  %v2029_v14 = vpop.f32.mrf.mxu1 }
 0xde8   : > { %v3239_v15 = vpop.f32.mrf.mxu1 }
 0xdf7   : > { %2045 = vrot.lane.b32.xlu1 %v4585_v53, %s4068_s25 }
 0xdfb   : > { %2190 = vrot.lane.b32.xlu1 %v4585_v53, %s4072_s2 }
 0xdfc   : > { %v1920_v16 = vpop.xlane.xlu0 %1919 }
 0xdfd   : > { %v1921_v17 = vsub.f32 %v1917_v5, %v1920_v16 }
 0xdff   : > { %v1922_v18 = vmul.f32 1.442695, %v1921_v17 }
 0xe01   : > { %3539 = vpow2.f32 %v1922_v18 }
 0xe0e   : > { %v3540_v19 = vpop.eup %3539 }
 0xe0f   : > { %v1924_v20 = vsel %vm1053_vm2, %v3540_v19, 0.0 }
 0xe10   : > { %1925 = vadd.xlane.f32.xlu0 %v1924_v20 }
 0xe6f   : > { %v2035_v21 = vpop.xlane.xlu1 %2034 }
 0xe70   : > { %v2036_v23 = vsub.f32 %v2032_v11, %v2035_v21 }
 0xe72   : > { %v2037_v24 = vmul.f32 1.442695, %v2036_v23 }
 0xe73   : > { %v2046_v33 = vpop.permute.xlu1 %2045 }
 0xe74   : > { %3541 = vpow2.f32 %v2037_v24  ;;  %v2051_v35 = vsel %vm1119_vm4, %v2046_v33, 0  ;;  %v2301_v24 = vld [vmem:[#allocation15 + $0x8] sm:$0xf] }
 0xe77   : > { %v2191_v48 = vpop.permute.xlu1 %2190 }
 0xe78   : > { %v2196_v52 = vsel %vm1053_vm2, %v2191_v48, 0 }
 0xe81   : > { %v3542_v25 = vpop.eup %3541 }
 0xe82   : > { %v2039_v26 = vsel %vm1053_vm2, %v3542_v25, 0.0 }
 0xe83   : > { %2040 = vadd.xlane.f32.xlu0 %v2039_v26 }
 0xe99   : > { %1931 = vrot.lane.b32.xlu0 %v4585_v53, %s4067_s4  ;;  %v1926_v27 = vpop.xlane.xlu0 %1925 }
 0xe9a   : > { %3543 = vrcp.f32 %v1926_v27 }
 0xe9d   : > { %2188 = vrot.lane.b32.xlu0 %v4592_v62, %s4072_s2 }
 0xea7   : > { %v3544_v28 = vpop.eup %3543 }
 0xea8   : > { %v1928_v30 = vmul.f32 %v3544_v28, %v3540_v19 }
 0xeaa   : > { %v1929_v34 = vpack.c.bf16 %v1928_v30, %v1928_v30 }
 0xf0c   : > { %v2041_v29 = vpop.xlane.xlu0 %2040 }
 0xf0d   : > { %3545 = vrcp.f32 %v2041_v29 }
 0xf10   : > { %v1932_v31 = vpop.permute.xlu0 %1931 }
 0xf11   : > { %v1937_v32 = vsel %vm1119_vm4, %v1932_v31, 0 }
 0xf12   : > { %3229 = vmatpush3.bf16.msra.mxu0 %v1937_v32 }
 0xf13   : > { %3240 = vmatprep.subr.bf16.mxu0 %v4064_v0 }
 0xf14   : > { %v2189_v56 = vpop.permute.xlu0 %2188 }
 0xf15   : > { %3231 = vmatmul.mubr.msk.bf16.vlgmr.msra.gmra.mxu0 %vm1053_vm2, %v1929_v34 }
 0xf16   : > { %3241 = vmatpush3.bf16.msra.mxu0 %v2051_v35  ;;  %3242 = vmatprep.mubr.msk.bf16.mxu0 %vm4065_vm0, %v4064_v0 }
 0xf17   : > { %3252 = vmatprep.subr.bf16.mxu0 %v4064_v0 }
 0xf1a   : > { %v3546_v3 = vpop.eup %3545 }
 0xf1b   : > { %v2043_v36 = vmul.f32 %v3546_v3, %v3542_v25  ;;  %v2306_v25 = vsel %vm1119_vm4, %v2301_v24, 0 }
 0xf1d   : > { %v2044_v37 = vpack.c.bf16 %v2043_v36, %v2043_v36 }
 0xf1f   : > { %3243 = vmatmul.mubr.msk.bf16.vlgmr.msra.gmra.mxu0 %vm1053_vm2, %v2044_v37 }
 0xf20   : > { %3254 = vmatprep.mubr.msk.bf16.mxu0 %vm4065_vm0, %v4064_v0  ;;  %3253 = vmatpush3.bf16.msra.mxu0 %v2146_v39 }
 0xf21   : > { %3264 = vmatprep.subr.bf16.mxu0 %v4064_v0 }
 0xfd5   : > { %v1973_v42 = vpop.f32.mrf.mxu0 }
 0xfd6   : > { %v1979_v43 = vpack.c.bf16 %v1973_v42, %v1973_v42 }
 0xfd7   : > { %v3232_v44 = vpop.f32.mrf.mxu0 }
 0xfd8   : > { %3255 = vmatmul.mubr.msk.bf16.vlgmr.msra.gmra.mxu0 %vm1053_vm2, %v1979_v43 }
 0xfd9   : > { %v1976_v45 = vpop.f32.mrf.mxu0  ;;  %3266 = vmatprep.mubr.msk.bf16.mxu0 %vm4065_vm0, %v4064_v0 }
 0xfdb   : > { %v3233_v46 = vpop.f32.mrf.mxu0 }
 0xfdc   : > { %v2462_v46 = vld [vmem:[#allocation15 + $0xc] sm:$0xf] }
 0xfdf   : > { %v2087_v49 = vpop.f32.mrf.mxu0 }
 0xfe0   : > { %v2093_v50 = vpack.c.bf16 %v2087_v49, %v2087_v49 }
 0xfe1   : > { %v3244_v51 = vpop.f32.mrf.mxu0 }
 0xfe2   : > { %3249 = vmatmul.mubr.msk.bf16.vlgmr.msra.gmra.mxu1 %vm1053_vm2, %v2093_v50 }
 0xfe3   : > { %3259 = vmatpush3.bf16.xpose.msra.mxu1 %v2196_v52  ;;  %v2090_v54 = vpop.f32.mrf.mxu0  ;;  %3260 = vmatprep.mubr.msk.bf16.mxu1 %vm4065_vm0, %v4064_v0 }
 0xfe4   : > { %3270 = vmatprep.subr.bf16.mxu1 %v4064_v0 }
 0xfe5   : > { %v3245_v55 = vpop.f32.mrf.mxu0 }
 0xfea   : > { %3261 = vmatmul.mubr.msk.bf16.vlgmr.msra.gmra.mxu1 %vm1053_vm2, %v2189_v56 }
 0xfeb   : > { %3272 = vmatprep.mubr.msk.bf16.mxu1 %vm4065_vm0, %v4064_v0  ;;  %3271 = vmatpush3.bf16.msra.mxu1 %v2306_v25  ;;  %v3519_v25 = vld [vmem:[%s4730_s18 + $0x8] sm:$0xff]  }
 0xfec   : > { %3282 = vmatprep.subr.bf16.mxu1 %v4064_v0 }
0x1098   : > { %v2182_v57 = vpop.f32.mrf.mxu0 }
0x109a   : > { %v3256_v58 = vpop.f32.mrf.mxu0 }
0x109c   : > { %v2185_v59 = vpop.f32.mrf.mxu0 }
0x109e   : > { %v3257_v60 = vpop.f32.mrf.mxu0 }
0x109f   : > { %v3044_v60 = vld [vmem:[#allocation16] ss:$0 sm:$0xff] }
0x10a2   : > { %v2136_v61 = vpop.f32.mrf.mxu1 }
0x10a3   : > { %v4642_v63 = vadd.f32 %v2182_v57, %v2136_v61 }
0x10a4   : > { %v3250_v1 = vpop.f32.mrf.mxu1 }
0x10a6   : > { %v2139_v22 = vpop.f32.mrf.mxu1 }
0x10a8   : > { %v3251_v2 = vpop.f32.mrf.mxu1 }
0x10aa   : > { %v2232_v4 = vpop.f32.mrf.mxu1 }
0x10ab   : > { %v2238_v5 = vmul.f32 0.35355338, %v2232_v4 }
0x10ac   : > { %v3262_v6 = vpop.f32.mrf.mxu1 }
0x10ad   : > { %v2239_v9 = vsel %vm1053_vm2, %v2238_v5, -inf }
0x10ae   : > { %2240 = vmax.xlane.f32.xlu1 %v2239_v9  ;;  %v2235_v7 = vpop.f32.mrf.mxu1 }
0x10b0   : > { %v3263_v8 = vpop.f32.mrf.mxu1 }
0x10bf   : > { %2351 = vrot.lane.b32.xlu1 %v4585_v53, %s4075_s23 }
0x10c3   : > { %2349 = vrot.lane.b32.xlu1 %v4592_v62, %s4075_s23 }
0x1137   : > { %v2241_v10 = vpop.xlane.xlu1 %2240 }
0x1138   : > { %v2242_v11 = vsub.f32 %v2238_v5, %v2241_v10 }
0x113a   : > { %v2243_v12 = vmul.f32 1.442695, %v2242_v11 }
0x113b   : > { %v2352_v19 = vpop.permute.xlu1 %2351 }
0x113c   : > { %3547 = vpow2.f32 %v2243_v12  ;;  %v2357_v21 = vsel %vm1053_vm2, %v2352_v19, 0  ;;  %v3515_v12 = vld [vmem:[#allocation21 + $0x8] sm:$0xff]  }
0x113f   : > { %v2350_v23 = vpop.permute.xlu1 %2349 }
0x1149   : > { %v3548_v13 = vpop.eup %3547 }
0x114a   : > { %v2245_v14 = vsel %vm1053_vm2, %v3548_v13, 0.0 }
0x114b   : > { %2246 = vadd.xlane.f32.xlu0 %v2245_v14  ;;  %v3518_v14 = vld [vmem:[%s4730_s18 + $0x10] sm:$0xff]  }
0x1161   : > { %2251 = vrot.lane.b32.xlu0 %v4585_v53, %s4073_s0 }
0x11d4   : > { %v2247_v15 = vpop.xlane.xlu0 %2246 }
0x11d5   : > { %3549 = vrcp.f32 %v2247_v15 }
0x11d8   : > { %v2252_v16 = vpop.permute.xlu0 %2251 }
0x11d9   : > { %v2257_v17 = vsel %vm1119_vm4, %v2252_v16, 0 }
0x11da   : > { %3265 = vmatpush3.bf16.msra.mxu0 %v2257_v17 }
0x11db   : > { %3276 = vmatprep.subr.bf16.mxu0 %v4064_v0 }
0x11e2   : > { %v3550_v62 = vpop.eup %3549 }
0x11e3   : > { %v2249_v18 = vmul.f32 %v3550_v62, %v3548_v13  ;;  %v3516_v13 = vld [vmem:[#allocation21] sm:$0xff]  }
0x11e5   : > { %v2250_v20 = vpack.c.bf16 %v2249_v18, %v2249_v18  ;;  %v3045_v18 = vld [vmem:[#allocation18] ss:$0 sm:$0xff] }
0x11e7   : > { %3267 = vmatmul.mubr.msk.bf16.vlgmr.msra.gmra.mxu0 %vm1053_vm2, %v2250_v20  ;;  %v3046_v20 = vld [vmem:[#allocation19] ss:$0 sm:$0xff] }
0x11e8   : > { %3277 = vmatpush3.bf16.xpose.msra.mxu0 %v2357_v21  ;;  %3278 = vmatprep.mubr.msk.bf16.mxu0 %vm4065_vm0, %v4064_v0 }
0x11e9   : > { %3288 = vmatprep.subr.bf16.mxu0 %v4064_v0 }
0x11ef   : > { %3279 = vmatmul.mubr.msk.bf16.vlgmr.msra.gmra.mxu0 %vm1053_vm2, %v2350_v23 }
0x11f0   : > { %3290 = vmatprep.mubr.msk.bf16.mxu0 %vm4065_vm0, %v4064_v0 }
0x12a7   : > { %v2293_v26 = vpop.f32.mrf.mxu0 }
0x12a8   : > { %v2299_v27 = vpack.c.bf16 %v2293_v26, %v2293_v26  ;;  %v3520_v26 = vld [vmem:[%s4730_s18] sm:$0xff]  }
0x12a9   : > { %v3268_v28 = vpop.f32.mrf.mxu0 }
0x12aa   : > { %3273 = vmatmul.mubr.msk.bf16.vlgmr.msra.gmra.mxu1 %vm1053_vm2, %v2299_v27  ;;  %v3047_v27 = vld [vmem:[#allocation22] ss:$0 sm:$0xff] }
0x12ab   : > { %v2296_v29 = vpop.f32.mrf.mxu0  ;;  %3284 = vmatprep.mubr.msk.bf16.mxu1 %vm4065_vm0, %v4064_v0 }
0x12ad   : > { %v3269_v30 = vpop.f32.mrf.mxu0 }
0x12af   : > { %v2393_v31 = vpop.f32.mrf.mxu0 }
0x12b0   : > { %v2399_v32 = vmul.f32 0.35355338, %v2393_v31 }
0x12b1   : > { %v3280_v33 = vpop.f32.mrf.mxu0 }
0x12b2   : > { %v2400_v34 = vsel %vm1053_vm2, %v2399_v32, -inf }
0x12b3   : > { %2401 = vmax.xlane.f32.xlu0 %v2400_v34  ;;  %v2396_v35 = vpop.f32.mrf.mxu0 }
0x12b5   : > { %v3281_v3 = vpop.f32.mrf.mxu0 }
0x12b6   : > { %v3056_v3 = vld [vmem:[#allocation24] ss:$0 sm:$0xff] }
0x12c9   : > { %2412 = vrot.lane.b32.xlu0 %v4585_v53, %s4074_s1  ;;  %v2467_v53 = vsel %vm1119_vm4, %v2462_v46, 0 }
0x12ca   : > { %3289 = vmatpush3.bf16.msra.mxu0 %v2467_v53 }
0x12cb   : > { %3302 = vmatprep.subr.bf16.mxu0 %v4064_v0 }
0x133c   : > { %v2402_v36 = vpop.xlane.xlu0 %2401 }
0x133d   : > { %v2403_v37 = vsub.f32 %v2399_v32, %v2402_v36 }
0x133f   : > { %v2404_v38 = vmul.f32 1.442695, %v2403_v37 }
0x1340   : > { %v2413_v39 = vpop.permute.xlu0 %2412 }
0x1341   : > { %3551 = vpow2.f32 %v2404_v38  ;;  %v2418_v40 = vsel %vm1119_vm4, %v2413_v39, 0 }
0x1342   : > { %3283 = vmatpush3.bf16.msra.mxu1 %v2418_v40 }
0x1343   : > { %3294 = vmatprep.subr.bf16.mxu1 %v4064_v0 }
0x134e   : > { %v3552_v41 = vpop.eup %3551 }
0x134f   : > { %v2406_v42 = vsel %vm1053_vm2, %v3552_v41, 0.0 }
0x1350   : > { %2407 = vadd.xlane.f32.xlu1 %v2406_v42 }
0x136a   : > { %v2342_v43 = vpop.f32.mrf.mxu1 }
0x136b   : > { %v2348_v44 = vadd.f32 %v2342_v43, %v4642_v63 }
0x136c   : > { %v3274_v45 = vpop.f32.mrf.mxu1 }
0x136e   : > { %v2345_v48 = vpop.f32.mrf.mxu1 }
0x1370   : > { %v3275_v49 = vpop.f32.mrf.mxu1 }
0x13d9   : > { %v2408_v50 = vpop.xlane.xlu1 %2407 }
0x13da   : > { %3553 = vrcp.f32 %v2408_v50  ;;  %v3057_v50 = vld [vmem:[#allocation25] ss:$0 sm:$0xff] }
0x13e7   : > { %v3554_v51 = vpop.eup %3553 }
0x13e8   : > { %v2410_v52 = vmul.f32 %v3554_v51, %v3552_v41 }
0x13ea   : > { %v2411_v54 = vpack.c.bf16 %v2410_v52, %v2410_v52  ;;  %v3058_v52 = vld [vmem:[#allocation27] ss:$0 sm:$0xff] }
0x13ec   : > { %3285 = vmatmul.mubr.msk.bf16.vlgmr.msra.gmra.mxu1 %vm1053_vm2, %v2411_v54 }
0x13ed   : > { %3298 = vmatprep.mubr.msk.bf16.mxu1 %vm4065_vm0, %v4064_v0  ;;  %3295 = vmatpush3.bf16.msra.mxu1 %v3515_v12 }
0x13ee   : > { %3296 = vmatprep.subr.bf16.mxu1 %v4064_v0 }
0x13f1   : > { %3297 = vmatpush3.bf16.msra.mxu1 %v3516_v13 }
0x14ac   : > { %v2454_v55 = vpop.f32.mrf.mxu1 }
0x14ad   : > { %v2460_v56 = vpack.c.bf16 %v2454_v55, %v2454_v55 }
0x14ae   : > { %v3286_v57 = vpop.f32.mrf.mxu1 }
0x14af   : > { %3291 = vmatmul.mubr.msk.bf16.vlgmr.msra.gmra.mxu0 %vm1053_vm2, %v2460_v56 }
0x14b0   : > { %v2457_v58 = vpop.f32.mrf.mxu1  ;;  %3310 = vmatprep.mubr.msk.bf16.mxu0 %vm4065_vm0, %v4064_v0 }
0x14b2   : > { %v3287_v59 = vpop.f32.mrf.mxu1 }
0x156f   : > { %v2503_v61 = vpop.f32.mrf.mxu0 }
0x1570   : > { %v2509_v63 = vadd.f32 %v2503_v61, %v2348_v44 }
0x1571   : > { %v3292_v1 = vpop.f32.mrf.mxu0 }
0x1572   : > { %v2516_v22 = vadd.f32 %v3044_v60, %v2509_v63 }
0x1573   : > { %v2506_v2 = vpop.f32.mrf.mxu0 }
0x1574   : > { %v2517_v4 = vadd.f32 %v2516_v22, %v4578_v47  ;;  %v3517_v47 = vld [vmem:[%s4730_s18 + $0x18] sm:$0xff]  }
0x1575   : > { %v3293_v5 = vpop.f32.mrf.mxu0  ;;  %3303 = vmatpush3.bf16.msra.mxu0 %v3517_v47 }
0x1576   : > { %v2520_v6 = vsel %vm1004_vm1, %v2517_v4, 0.0  ;;  %3304 = vmatprep.subr.bf16.mxu0 %v4064_v0 }
0x1577   : > { %2521 = vadd.xlane.f32.xlu1 %v2520_v6 }
0x1579   : > { %3305 = vmatpush3.bf16.msra.mxu0 %v3518_v14 }
0x157a   : > { %3306 = vmatprep.subr.bf16.mxu0 %v4064_v0 }
0x157d   : > { %3307 = vmatpush3.bf16.msra.mxu0 %v3519_v25 }
0x157e   : > { %3308 = vmatprep.subr.bf16.mxu0 %v4064_v0 }
0x1581   : > { %3309 = vmatpush3.bf16.msra.mxu0 %v3520_v26 }
0x1600   : > { %v2522_v9 = vpop.xlane.xlu1 %2521 }
0x1601   : > { %v2523_v7 = vmul.f32 0.03125, %v2522_v9 }
0x1603   : > { %v2524_v8 = vsub.f32 %v2517_v4, %v2523_v7 }
0x1605   : > { %v2525_v10 = vmul.f32 %v2524_v8, %v2524_v8 }
0x1607   : > { %v2526_v11 = vsel %vm1004_vm1, %v2525_v10, 0.0 }
0x1608   : > { %2527 = vadd.xlane.f32.xlu1 %v2526_v11 }
0x1691   : > { %v2528_v15 = vpop.xlane.xlu1 %2527 }
0x1692   : > { %v2529_v16 = vmul.f32 0.03125, %v2528_v15 }
0x1694   : > { %v2530_v17 = vadd.f32 1e-05, %v2529_v16 }
0x1696   : > { %3555 = vrsqrt.f32 %v2530_v17 }
0x16a3   : > { %v3556_v62 = vpop.eup %3555 }
0x16a4   : > { %v2532_v19 = vmul.f32 %v3556_v62, %v2524_v8 }
0x16a6   : > { %v2539_v21 = vmul.f32 %v3045_v18, %v2532_v19 }
0x16a8   : > { %v2546_v23 = vadd.f32 %v3046_v20, %v2539_v21 }
0x16aa   : > { %v2551_v24 = vpack.c.bf16 %v2546_v23, %v2546_v23 }
0x16ac   : > { %3299 = vmatmul.mubr.msk.bf16.vlgmr.msra.gmra.mxu1 %vm1004_vm1, %v2551_v24 }
0x176c   : > { %v2608_v28 = vpop.f32.mrf.mxu1 }
0x176d   : > { %v2609_v29 = vadd.f32 %v3047_v27, %v2608_v28 }
0x176e   : > { %v3300_v30 = vpop.f32.mrf.mxu1 }
0x176f   : > { %v2614_v31 = vmax.f32 %v2609_v29, 0.0 }
0x1770   : > { %v2611_v32 = vpop.f32.mrf.mxu1 }
0x1771   : > { %v2623_v33 = vpack.c.bf16 %v2614_v31, %v2614_v31 }
0x1772   : > { %v3301_v34 = vpop.f32.mrf.mxu1 }
0x1773   : > { %3311 = vmatmul.mubr.msk.bf16.vlgmr.msra.gmra.mxu0 %vm2648_vm5, %v2623_v33 }
0x1833   : > { %v2686_v35 = vpop.f32.mrf.mxu0 }
0x1834   : > { %v2692_v36 = vadd.f32 %v2686_v35, %v2546_v23 }
0x1835   : > { %v3312_v37 = vpop.f32.mrf.mxu0 }
0x1836   : > { %v2700_v0 = vadd.f32 %v3056_v3, %v2692_v36 }
0x1837   : > { %v2689_v38 = vpop.f32.mrf.mxu0 }
0x1838   : > { %v2703_v39 = vsel %vm1004_vm1, %v2700_v0, 0.0 }
0x1839   : > { %2704 = vadd.xlane.f32.xlu1 %v2703_v39  ;;  %v3313_v40 = vpop.f32.mrf.mxu0 }
0x18c2   : > { %v2705_v41 = vpop.xlane.xlu1 %2704 }
0x18c3   : > { %v2706_v42 = vmul.f32 0.03125, %v2705_v41 }
0x18c5   : > { %v2707_v43 = vsub.f32 %v2700_v0, %v2706_v42 }
0x18c7   : > { %v2708_v44 = vmul.f32 %v2707_v43, %v2707_v43 }
0x18c9   : > { %v2709_v45 = vsel %vm1004_vm1, %v2708_v44, 0.0 }
0x18ca   : > { %2710 = vadd.xlane.f32.xlu1 %v2709_v45 }
0x1953   : > { %v2711_v46 = vpop.xlane.xlu1 %2710 }
0x1954   : > { %v2712_v53 = vmul.f32 0.03125, %v2711_v46 }
0x1956   : > { %v2713_v48 = vadd.f32 1e-05, %v2712_v53 }
0x1958   : > { %3557 = vrsqrt.f32 %v2713_v48 }
0x1965   : > { %v3558_v49 = vpop.eup %3557 }
0x1966   : > { %v2715_v51 = vmul.f32 %v3558_v49, %v2707_v43 }
0x1968   : > { %v2722_v54 = vmul.f32 %v3057_v50, %v2715_v51 }
0x196a   : > { %v2729_v55 = vadd.f32 %v3058_v52, %v2722_v54 }
0x196c   : > { %2730 = vst.msk [vmem:[%s970_s28] sm:$0xff] %vm1004_vm1, %v2729_v55 }
0x196d PF: > { %s43_s5 = sadd.s32 1, %s4043_s5  }
0x196e   : > { %p40_p5 = scmp.ge.s32.totalorder %s43_s5, 4  }
0x1970   :  { %42 = sbr.rel (!%p40_p5) target bundleno = 19 (0x13), region = 224 }
0x1975   :  { %2750 = vsyncpa [#allocation3], 1 }
0x1976   :  { %2752 = vsyncpa [#allocation3 + $0x1], 1 }
0x1977   :  { %2753 = vsyncpa [#allocation5], 1 }
0x1978   :  { %2754 = vsyncpa [#allocation8], 1 }
0x1979   :  { %2755 = vsyncpa [#allocation11], 1 }
0x197a   :  { %2756 = vsyncpa [#allocation14], 1 }
0x197b   :  { %2757 = vsyncpa [#allocation17], 1 }
0x197c   :  { %2758 = vsyncpa [#allocation20], 1 }
0x197d   :  { %2759 = vsyncpa [#allocation23], 1 }
0x197e   :  { %2760 = vsyncpa [#allocation26], 1 }

// kernel: _lambda_.3
= control target key start
LH: loop header
LB: loop body
LE: loop exit
PB: predicated region body
PF: predicated region fallthrough
CT: control target
= control target key end

     0   :  { %s3699_s0 = inlined_call_operand.vmem [shape: f32[2,8,32], index: 0, kind: input, shape index: {}]   ;;  %s3700_s1 = inlined_call_operand.vmem [shape: f32[2,8,32], index: 1, kind: input, shape index: {}]   ;;  %s3701_s2 = inlined_call_operand.vmem [shape: bf16[32,96], index: 2, kind: input, shape index: {}]   ;;  %s3702_s3 = inlined_call_operand.vmem [shape: f32[1,96], index: 3, kind: input, shape index: {}]   ;;  %s3703_s4 = inlined_call_operand.vmem [shape: bf16[4,8,32], index: 4, kind: input, shape index: {}]   ;;  %s3704_s5 = inlined_call_operand.vmem [shape: f32[1,32], index: 5, kind: input, shape index: {}]   ;;  %s3705_s6 = inlined_call_operand.vmem [shape: f32[1,32], index: 6, kind: input, shape index: {}]   ;;  %s3706_s7 = inlined_call_operand.vmem [shape: f32[1,32], index: 7, kind: input, shape index: {}]   ;;  %s3707_s8 = inlined_call_operand.vmem [shape: bf16[32,32], index: 8, kind: input, shape index: {}]   ;;  %s3708_s9 = inlined_call_operand.vmem [shape: f32[1,32], index: 9, kind: input, shape index: {}]   ;;  %s3709_s10 = inlined_call_operand.vmem [shape: bf16[32,64], index: 10, kind: input, shape index: {}]   ;;  %s3710_s11 = inlined_call_operand.vmem [shape: f32[1,64], index: 11, kind: input, shape index: {}]   ;;  %s3711_s12 = inlined_call_operand.vmem [shape: bf16[4,8,32], index: 12, kind: input, shape index: {}]   ;;  %s3712_s13 = inlined_call_operand.vmem [shape: f32[1,32], index: 13, kind: input, shape index: {}]   ;;  %s3713_s14 = inlined_call_operand.vmem [shape: f32[1,32], index: 14, kind: input, shape index: {}]   ;;  %s3714_s15 = inlined_call_operand.vmem [shape: f32[1,32], index: 15, kind: input, shape index: {}]   ;;  %s3715_s16 = inlined_call_operand.vmem [shape: bf16[32,64], index: 16, kind: input, shape index: {}]   ;;  %s3716_s17 = inlined_call_operand.vmem [shape: f32[1,64], index: 17, kind: input, shape index: {}]   ;;  %s3717_s18 = inlined_call_operand.vmem [shape: bf16[64,32], index: 18, kind: input, shape index: {}]   ;;  %s3718_s19 = inlined_call_operand.vmem [shape: f32[1,32], index: 19, kind: input, shape index: {}]   ;;  %s3719_s20 = inlined_call_operand.vmem [shape: f32[1,32], index: 20, kind: input, shape index: {}]   ;;  %s3720_s21 = inlined_call_operand.vmem [shape: f32[1,32], index: 21, kind: input, shape index: {}]   ;;  %s3721_s22 = inlined_call_operand.vmem [shape: f32[1,32], index: 22, kind: input, shape index: {}]   ;;  %s3722_s23 = inlined_call_operand.vmem [shape: f32[1,32], index: 23, kind: input, shape index: {}]   ;;  %s3723_s24 = inlined_call_operand.hbm [shape: f32[2,8,32], index: 24, kind: output, shape index: {}]  }
   0x1   :  { %3744 = sst [smem:[#allocation9_spill]] %s3699_s0 }
   0x2   :  { %3745 = sst [smem:[#allocation10_spill]] %s3700_s1 }
   0x3   :  { %3746 = sst [smem:[#allocation11_spill]] %s3701_s2 }
   0x4   :  { %3747 = sst [smem:[#allocation12_spill]] %s3702_s3 }
   0x5   :  { %3748 = sst [smem:[#allocation13_spill]] %s3703_s4 }
   0x6   :  { %3749 = sst [smem:[#allocation14_spill]] %s3704_s5 }
   0x7   :  { %3750 = sst [smem:[#allocation15_spill]] %s3705_s6 }
   0x8   :  { %3751 = sst [smem:[#allocation16_spill]] %s3706_s7 }
   0x9   :  { %3752 = sst [smem:[#allocation17_spill]] %s3707_s8 }
   0xa   :  { %3753 = sst [smem:[#allocation18_spill]] %s3708_s9 }
   0xb   :  { %3754 = sst [smem:[#allocation19_spill]] %s3709_s10 }
   0xc   :  { %3755 = sst [smem:[#allocation20_spill]] %s3710_s11 }
   0xd   :  { %29 = vsyncpa [#allocation3], 0 }
   0xe   :  { %31 = vsyncpa [#allocation3 + $0x1], 0  ;;  %s3257_s5 = smov 0   ;;  %s3259_s26 = smov 0  }
   0xf   :  { %s3261_s27 = smov 0   ;;  %s3263_s28 = smov 0  }
  0x10 LB: > { %3756 = sst [smem:[#allocation5_spill]] %s3111_s27  ;;  %s3278_s6 = sadd.s32 4294967295, %s3115_s28   ;;  %s3115_s28 = sphi %s3263_s28, %s3782_s28   ;;  %s3111_s27 = sphi %s3261_s27, %s3784_s27   ;;  %s3107_s26 = sphi %s3259_s26, %s3786_s26   ;;  %s3103_s5 = sphi %s3257_s5, %s3785_s5  }
  0x11   : > { %s2624_s2 = sadd.s32 4294967294, %s3115_s28   ;;  %s3282_s29 = sadd.s32 1, %s3115_s28  }
  0x12   : > { %3757 = sst [smem:[#allocation6_spill]] %s3282_s29  ;;  %s558_s0 = sadd.s32 1, %s3111_s27 }
  0x13   : > { %s555_s7 = ssub.s32 %s3115_s28, %s3282_s29  ;;  %p568_p0 = scmp.ne.s32.totalorder %s3111_s27, %s3107_s26 }
  0x14   : > { %p556_p1 = scmp.eq.s32.totalorder %s555_s7, 0  ;;  %p569_p2 = scmp.eq.s32.totalorder %s3278_s6, 1 }
  0x15   : > { %p574_p3 = scmp.ne.s32.totalorder %s3107_s26, %s3103_s5  ;;  %p575_p4 = scmp.eq.s32.totalorder %s2624_s2, 1 }
  0x16   : > { %s3293_s30 = scalar_select %p556_p1, %s3111_s27, %s558_s0  }
  0x17   : > { %p3295_p5 = por %p569_p2, %p568_p0  ;;  %p3299_p6 = por %p575_p4, %p574_p3 }
  0x18   : > { %3758 = sst [smem:[#allocation7_spill]] %s3293_s30  ;;  %p2627_p7 = scmp.ge.s32.totalorder %s3115_s28, 1 }
  0x19   : > { %s3760_s25 = scalar_select %p3299_p6, 1, 0 }
  0x1a   : > { %p673_p8 = scmp.lt.s32.totalorder %s3115_s28, 3 }
  0x1b   : > { %3761 = sst [smem:[#allocation8_spill]] %s3760_s25 }
  0x1c   : > { %p674_p9 = pnand %p2627_p7, %p673_p8 }
  0x1d   : > { %s3762_s1 = sld [smem:[#allocation11_spill]] (!%p674_p9)  ;;  %p742_p10 = scmp.lt.s32.totalorder (!%p674_p9), %s3278_s6, 1 }
  0x1e   : > { %677 = sbr.rel (%p674_p9) target bundleno = 6599 (0x19c7), region = 116  ;;  %s3763_s0 = sld [smem:[#allocation9_spill]] (!%p674_p9) }
  0x1f   : > { %s3764_s29 = sld [smem:[#allocation12_spill]] (!%p674_p9)  ;;  %s3732_s4 = smov (!%p674_p9), 96  }
  0x20   : > { %s3738_s2 = smov (!%p674_p9), 88   ;;  %s3123_s27 = smov (!%p674_p9), 64  }
  0x21   : > { %s3733_s30 = smov (!%p674_p9), 112   ;;  %s3768_s10 = sld [smem:[#allocation19_spill]] (!%p674_p9) }
  0x22   : > { %s3772_s11 = sld [smem:[#allocation20_spill]] (!%p674_p9)  ;;  %s3778_s25 = smov (!%p674_p9), 104  }
  0x23   : > { %v3003_v0 = vld [vmem:[%s3762_s1 + $0x8] sm:$0xff]   ;;  %v3117_v1 = vmov 0.0   ;;  %v3004_v2 = vld [vmem:[%s3762_s1] sm:$0xff]   ;;  %vm3118_vm0 = vmmov 0   ;;  %s3320_s7 = scalar_select %p742_p10, %s3278_s6, 1  ;;  %vm783_vm1 = vcmask 261120   ;;  %v753_v17 = vlaneseq }
  0x24   : > { %2762 = vmatprep.subr.bf16.mxu1 %v3117_v1  ;;  %2776 = vmatprep.subr.bf16.mxu0 %v3117_v1  ;;  %vm832_vm2 = vcmask 64512   ;;  %v3122_v21 = vmov -1e+09   ;;  %vm898_vm4 = vcmask 1043456   ;;  %s3774_s9 = sld [smem:[#allocation18_spill]]  ;;  %vm2427_vm5 = vcmask 523264  }
  0x25   : > { %2763 = vmatpush3.bf16.msra.mxu1 %v3003_v0  ;;  %2766 = vmatprep.mubr.msk.bf16.mxu1 %vm3118_vm0, %v3117_v1  ;;  %s2629_s8 = sshll.u32 %s3320_s7, 3  ;;  %v2631_v5 = vld [vmem:[%s3764_s29] ss:$0 sm:$0xff]  ;;  %v754_v18 = vshrl.u32 %v753_v17, 7  ;;  %v756_v19 = vand.u32 127, %v753_v17  ;;  %s3124_s29 = smov 56  }
  0x26   : > { %2764 = vmatprep.subr.bf16.mxu1 %v3117_v1  ;;  %2778 = vmatprep.mubr.msk.bf16.mxu0 %vm3118_vm0, %v3117_v1  ;;  %s745_s1 = scalar_lea.vmem %s3763_s0, %s2629_s8  ;;  %s3731_s0 = smov 80  }
  0x27   : > { %v3329_v3 = vld [vmem:[%s745_s1] sm:$0xff]  ;;  %s3739_s1 = smov 120   ;;  %vm757_vm3 = vcmp.ge.s32.totalorder %v754_v18, %v756_v19  ;;  %s3771_s7 = sld [smem:[#allocation16_spill]] }
  0x28   : > { %v763_v4 = vpack.c.bf16 %v3329_v3, %v3329_v3  ;;  %v3358_v22 = vsel %vm757_vm3, 0.0, %v3122_v21 }
  0x29   : > { %2765 = vmatpush3.bf16.msra.mxu1 %v3004_v2 }
  0x2a   : > { %2770 = vmatprep.subr.bf16.mxu1 %v3117_v1 }
  0x2c   : > { %2767 = vmatmul.mubr.msk.bf16.vlgmr.msra.gmra.mxu1 %vm783_vm1, %v763_v4 }
  0x2d   : > { %2772 = vmatprep.mubr.msk.bf16.mxu1 %vm3118_vm0, %v3117_v1 }
  0xec   : > { %v821_v6 = vpop.f32.mrf.mxu1 }
  0xed   : > { %v822_v7 = vadd.f32 %v2631_v5, %v821_v6 }
  0xee   : > { %v2768_v8 = vpop.f32.mrf.mxu1 }
  0xef   : > { %v3339_v9 = vpack.c.bf16 %v822_v7, %v822_v7 }
  0xf0   : > { %v824_v10 = vpop.f32.mrf.mxu1 }
  0xf1   : > { %944 = vrot.lane.b32.xlu1 %v3339_v9, %s3739_s1  ;;  %830 = vrot.lane.b32.xlu0 %v3339_v9, %s3732_s4  ;;  %s3735_s4 = smov 72   ;;  %s3769_s1 = sld [smem:[#allocation17_spill]] }
  0xf2   : > { %v2769_v11 = vpop.f32.mrf.mxu1 }
  0xf5   : > { %946 = vrot.lane.b32.xlu0 %v3339_v9, %s3738_s2 }
 0x163   : > { %v831_v12 = vpop.permute.xlu0 %830  ;;  %v945_v16 = vpop.permute.xlu1 %944 }
 0x164   : > { %v837_v13 = vsel %vm832_vm2, %v831_v12, 0 }
 0x165   : > { %2771 = vmatpush3.bf16.xpose.msra.mxu1 %v837_v13 }
 0x166   : > { %2782 = vmatprep.subr.bf16.mxu1 %v3117_v1 }
 0x167   : > { %v947_v14 = vpop.permute.xlu0 %946 }
 0x168   : > { %v952_v15 = vsel %vm832_vm2, %v947_v14, 0 }
 0x16c   : > { %2773 = vmatmul.mubr.msk.bf16.vlgmr.msra.gmra.mxu1 %vm832_vm2, %v3339_v9 }
 0x16d   : > { %2783 = vmatpush3.bf16.xpose.msra.mxu1 %v952_v15  ;;  %2784 = vmatprep.mubr.msk.bf16.mxu1 %vm3118_vm0, %v3117_v1 }
 0x16e   : > { %2794 = vmatprep.subr.bf16.mxu1 %v3117_v1 }
 0x174   : > { %2785 = vmatmul.mubr.msk.bf16.vlgmr.msra.gmra.mxu1 %vm832_vm2, %v945_v16 }
 0x175   : > { %2796 = vmatprep.mubr.msk.bf16.mxu1 %vm3118_vm0, %v3117_v1 }
 0x22c   : > { %v873_v20 = vpop.f32.mrf.mxu1 }
 0x22d   : > { %v879_v23 = vmul.f32 0.35355338, %v873_v20 }
 0x22e   : > { %v2774_v24 = vpop.f32.mrf.mxu1 }
 0x22f   : > { %v880_v25 = vadd.f32 %v879_v23, %v3358_v22 }
 0x230   : > { %v876_v26 = vpop.f32.mrf.mxu1 }
 0x231   : > { %v881_v27 = vsel %vm832_vm2, %v880_v25, -inf }
 0x232   : > { %882 = vmax.xlane.f32.xlu1 %v881_v27  ;;  %v2775_v28 = vpop.f32.mrf.mxu1 }
 0x234   : > { %v988_v29 = vpop.f32.mrf.mxu1 }
 0x235   : > { %v994_v30 = vmul.f32 0.35355338, %v988_v29 }
 0x236   : > { %v2786_v31 = vpop.f32.mrf.mxu1 }
 0x237   : > { %v995_v32 = vadd.f32 %v994_v30, %v3358_v22 }
 0x238   : > { %v991_v33 = vpop.f32.mrf.mxu1 }
 0x239   : > { %v996_v34 = vsel %vm832_vm2, %v995_v32, -inf }
 0x23a   : > { %997 = vmax.xlane.f32.xlu0 %v996_v34  ;;  %v2787_v35 = vpop.f32.mrf.mxu1 }
 0x2bb   : > { %v883_v36 = vpop.xlane.xlu1 %882 }
 0x2bc   : > { %v884_v37 = vsub.f32 %v880_v25, %v883_v36 }
 0x2be   : > { %v885_v38 = vmul.f32 1.442695, %v884_v37 }
 0x2c0   : > { %3015 = vpow2.f32 %v885_v38 }
 0x2c3   : > { %v998_v39 = vpop.xlane.xlu0 %997 }
 0x2c4   : > { %v999_v40 = vsub.f32 %v995_v32, %v998_v39 }
 0x2c6   : > { %v1000_v41 = vmul.f32 1.442695, %v999_v40 }
 0x2c8   : > { %3017 = vpow2.f32 %v1000_v41 }
 0x2cd   : > { %v3016_v42 = vpop.eup %3015 }
 0x2ce   : > { %v887_v43 = vsel %vm832_vm2, %v3016_v42, 0.0 }
 0x2cf   : > { %888 = vadd.xlane.f32.xlu0 %v887_v43 }
 0x2d5   : > { %v3018_v44 = vpop.eup %3017 }
 0x2d6   : > { %v1002_v45 = vsel %vm832_vm2, %v3018_v44, 0.0 }
 0x2d7   : > { %1003 = vadd.xlane.f32.xlu1 %v1002_v45 }
 0x2e5   : > { %893 = vrot.lane.b32.xlu0 %v3339_v9, %s3123_s27  ;;  %s3129_s27 = smov 48  }
 0x2e8   : > { %1008 = vrot.lane.b32.xlu1 %v3339_v9, %s3124_s29  ;;  %s3130_s29 = smov 40  }
 0x2e9   : > { %1151 = vrot.lane.b32.xlu0 %v3339_v9, %s3733_s30  ;;  %s3736_s30 = smov 104  }
 0x2ec   : > { %1153 = vrot.lane.b32.xlu1 %v3339_v9, %s3731_s0  ;;  %s3765_s0 = sld [smem:[#allocation13_spill]] }
 0x2f2   : > { %v943_v58 = vld [vmem:[%s3765_s0] sm:$0xf]  ;;  %v2639_v60 = vld [vmem:[%s3765_s0 + $0x4] sm:$0xf]  ;;  %v2644_v45 = vld [vmem:[%s3765_s0 + $0x8] sm:$0xf] }
 0x2f3   : > { %v1109_v59 = vsel %vm898_vm4, %v943_v58, 0  ;;  %v1063_v61 = vsel %vm898_vm4, %v2639_v60, 0 }
 0x2f4   : > { %2795 = vmatpush3.bf16.msra.mxu1 %v1063_v61 }
 0x2f5   : > { %2806 = vmatprep.subr.bf16.mxu1 %v3117_v1 }
 0x358   : > { %v889_v46 = vpop.xlane.xlu0 %888 }
 0x359   : > { %3019 = vrcp.f32 %v889_v46  ;;  %v1270_v46 = vsel %vm898_vm4, %v2644_v45, 0  ;;  %v2652_v45 = vld [vmem:[%s3771_s7] ss:$0 sm:$0xff] }
 0x35c   : > { %v894_v47 = vpop.permute.xlu0 %893 }
 0x35d   : > { %v900_v48 = vsel %vm898_vm4, %v894_v47, 0 }
 0x35e   : > { %2777 = vmatpush3.bf16.msra.mxu0 %v900_v48 }
 0x35f   : > { %2788 = vmatprep.subr.bf16.mxu0 %v3117_v1 }
 0x360   : > { %v1004_v49 = vpop.xlane.xlu1 %1003  ;;  %v1152_v13 = vpop.permute.xlu0 %1151 }
 0x361   : > { %3021 = vrcp.f32 %v1004_v49 }
 0x364   : > { %v1009_v52 = vpop.permute.xlu1 %1008 }
 0x365   : > { %v1014_v54 = vsel %vm898_vm4, %v1009_v52, 0 }
 0x366   : > { %v3020_v50 = vpop.eup %3019 }
 0x367   : > { %v891_v51 = vmul.f32 %v3020_v50, %v3016_v42 }
 0x368   : > { %v1154_v5 = vpop.permute.xlu1 %1153 }
 0x369   : > { %v892_v53 = vpack.c.bf16 %v891_v51, %v891_v51  ;;  %v1159_v10 = vsel %vm832_vm2, %v1154_v5, 0 }
 0x36b   : > { %2779 = vmatmul.mubr.msk.bf16.vlgmr.msra.gmra.mxu0 %vm832_vm2, %v892_v53 }
 0x36c   : > { %2789 = vmatpush3.bf16.msra.mxu0 %v1014_v54  ;;  %2790 = vmatprep.mubr.msk.bf16.mxu0 %vm3118_vm0, %v3117_v1 }
 0x36d   : > { %2800 = vmatprep.subr.bf16.mxu0 %v3117_v1 }
 0x36e   : > { %v3022_v55 = vpop.eup %3021 }
 0x36f   : > { %v1006_v56 = vmul.f32 %v3022_v55, %v3018_v44 }
 0x371   : > { %v1007_v57 = vpack.c.bf16 %v1006_v56, %v1006_v56 }
 0x373   : > { %2791 = vmatmul.mubr.msk.bf16.vlgmr.msra.gmra.mxu0 %vm832_vm2, %v1007_v57 }
 0x374   : > { %2802 = vmatprep.mubr.msk.bf16.mxu0 %vm3118_vm0, %v3117_v1  ;;  %2801 = vmatpush3.bf16.msra.mxu0 %v1109_v59 }
 0x375   : > { %2812 = vmatprep.subr.bf16.mxu0 %v3117_v1 }
 0x42b   : > { %v936_v62 = vpop.f32.mrf.mxu0 }
 0x42c   : > { %v942_v63 = vpack.c.bf16 %v936_v62, %v936_v62 }
 0x42d   : > { %v2780_v0 = vpop.f32.mrf.mxu0 }
 0x42e   : > { %2803 = vmatmul.mubr.msk.bf16.vlgmr.msra.gmra.mxu0 %vm832_vm2, %v942_v63 }
 0x42f   : > { %v939_v2 = vpop.f32.mrf.mxu0  ;;  %2814 = vmatprep.mubr.msk.bf16.mxu0 %vm3118_vm0, %v3117_v1 }
 0x431   : > { %v2781_v4 = vpop.f32.mrf.mxu0 }
 0x433   : > { %v1050_v6 = vpop.f32.mrf.mxu0 }
 0x434   : > { %v1056_v7 = vpack.c.bf16 %v1050_v6, %v1050_v6 }
 0x435   : > { %v2792_v8 = vpop.f32.mrf.mxu0 }
 0x436   : > { %2797 = vmatmul.mubr.msk.bf16.vlgmr.msra.gmra.mxu1 %vm832_vm2, %v1056_v7 }
 0x437   : > { %2807 = vmatpush3.bf16.xpose.msra.mxu1 %v1159_v10  ;;  %v1053_v11 = vpop.f32.mrf.mxu0  ;;  %2808 = vmatprep.mubr.msk.bf16.mxu1 %vm3118_vm0, %v3117_v1 }
 0x438   : > { %2818 = vmatprep.subr.bf16.mxu1 %v3117_v1 }
 0x439   : > { %v2793_v12 = vpop.f32.mrf.mxu0 }
 0x43e   : > { %2809 = vmatmul.mubr.msk.bf16.vlgmr.msra.gmra.mxu1 %vm832_vm2, %v1152_v13 }
 0x43f   : > { %2820 = vmatprep.mubr.msk.bf16.mxu1 %vm3118_vm0, %v3117_v1  ;;  %2819 = vmatpush3.bf16.msra.mxu1 %v1270_v46 }
 0x440   : > { %2830 = vmatprep.subr.bf16.mxu1 %v3117_v1 }
 0x4ee   : > { %v1145_v14 = vpop.f32.mrf.mxu0 }
 0x4f0   : > { %v2804_v15 = vpop.f32.mrf.mxu0 }
 0x4f2   : > { %v1148_v16 = vpop.f32.mrf.mxu0 }
 0x4f4   : > { %v2805_v17 = vpop.f32.mrf.mxu0 }
 0x4f6   : > { %v1099_v18 = vpop.f32.mrf.mxu1 }
 0x4f7   : > { %v3403_v19 = vadd.f32 %v1145_v14, %v1099_v18 }
 0x4f8   : > { %v2798_v20 = vpop.f32.mrf.mxu1 }
 0x4fa   : > { %v1102_v21 = vpop.f32.mrf.mxu1 }
 0x4fc   : > { %v2799_v23 = vpop.f32.mrf.mxu1 }
 0x4fe   : > { %v1195_v24 = vpop.f32.mrf.mxu1 }
 0x4ff   : > { %v1201_v25 = vmul.f32 0.35355338, %v1195_v24 }
 0x500   : > { %v2810_v26 = vpop.f32.mrf.mxu1 }
 0x501   : > { %v1202_v27 = vadd.f32 %v1201_v25, %v3358_v22 }
 0x502   : > { %v1198_v28 = vpop.f32.mrf.mxu1 }
 0x503   : > { %v1203_v29 = vsel %vm832_vm2, %v1202_v27, -inf }
 0x504   : > { %1204 = vmax.xlane.f32.xlu1 %v1203_v29  ;;  %v2811_v30 = vpop.f32.mrf.mxu1 }
 0x515   : > { %1315 = vrot.lane.b32.xlu1 %v3339_v9, %s3735_s4  ;;  %s3766_s4 = sld [smem:[#allocation14_spill]] }
 0x519   : > { %1313 = vrot.lane.b32.xlu1 %v3339_v9, %s3736_s30 }
 0x58d   : > { %v1205_v31 = vpop.xlane.xlu1 %1204 }
 0x58e   : > { %v1206_v32 = vsub.f32 %v1202_v27, %v1205_v31 }
 0x590   : > { %v1207_v33 = vmul.f32 1.442695, %v1206_v32 }
 0x591   : > { %v1316_v41 = vpop.permute.xlu1 %1315 }
 0x592   : > { %3023 = vpow2.f32 %v1207_v33  ;;  %v1321_v43 = vsel %vm832_vm2, %v1316_v41, 0 }
 0x595   : > { %v1314_v44 = vpop.permute.xlu1 %1313 }
 0x59f   : > { %v3024_v34 = vpop.eup %3023 }
 0x5a0   : > { %v1209_v35 = vsel %vm832_vm2, %v3024_v34, 0.0 }
 0x5a1   : > { %1210 = vadd.xlane.f32.xlu0 %v1209_v35  ;;  %v3006_v35 = vld [vmem:[%s3768_s10] sm:$0xff]  }
 0x5b7   : > { %1215 = vrot.lane.b32.xlu0 %v3339_v9, %s3129_s27  ;;  %s3776_s27 = smov 112  }
 0x62a   : > { %v1211_v36 = vpop.xlane.xlu0 %1210 }
 0x62b   : > { %3025 = vrcp.f32 %v1211_v36 }
 0x62e   : > { %v1216_v37 = vpop.permute.xlu0 %1215 }
 0x62f   : > { %v1221_v38 = vsel %vm898_vm4, %v1216_v37, 0  ;;  %v3007_v37 = vld [vmem:[%s3769_s1 + $0x8] sm:$0xff]  }
 0x630   : > { %2813 = vmatpush3.bf16.msra.mxu0 %v1221_v38  ;;  %v3008_v38 = vld [vmem:[%s3769_s1] sm:$0xff]  }
 0x631   : > { %2824 = vmatprep.subr.bf16.mxu0 %v3117_v1 }
 0x638   : > { %v3026_v39 = vpop.eup %3025 }
 0x639   : > { %v1213_v40 = vmul.f32 %v3026_v39, %v3024_v34 }
 0x63b   : > { %v1214_v42 = vpack.c.bf16 %v1213_v40, %v1213_v40 }
 0x63d   : > { %2815 = vmatmul.mubr.msk.bf16.vlgmr.msra.gmra.mxu0 %vm832_vm2, %v1214_v42 }
 0x63e   : > { %2825 = vmatpush3.bf16.xpose.msra.mxu0 %v1321_v43  ;;  %2826 = vmatprep.mubr.msk.bf16.mxu0 %vm3118_vm0, %v3117_v1 }
 0x63f   : > { %2836 = vmatprep.subr.bf16.mxu0 %v3117_v1 }
 0x645   : > { %2827 = vmatmul.mubr.msk.bf16.vlgmr.msra.gmra.mxu0 %vm832_vm2, %v1314_v44 }
 0x646   : > { %2838 = vmatprep.mubr.msk.bf16.mxu0 %vm3118_vm0, %v3117_v1 }
 0x6fd   : > { %v1257_v47 = vpop.f32.mrf.mxu0 }
 0x6fe   : > { %v1263_v48 = vpack.c.bf16 %v1257_v47, %v1257_v47 }
 0x6ff   : > { %v2816_v49 = vpop.f32.mrf.mxu0 }
 0x700   : > { %2821 = vmatmul.mubr.msk.bf16.vlgmr.msra.gmra.mxu1 %vm832_vm2, %v1263_v48  ;;  %v2657_v49 = vld [vmem:[%s3772_s11] ss:$0 sm:$0xff] }
 0x701   : > { %v1260_v50 = vpop.f32.mrf.mxu0  ;;  %2832 = vmatprep.mubr.msk.bf16.mxu1 %vm3118_vm0, %v3117_v1 }
 0x703   : > { %v2817_v51 = vpop.f32.mrf.mxu0 }
 0x705   : > { %v1357_v52 = vpop.f32.mrf.mxu0 }
 0x706   : > { %v1363_v53 = vmul.f32 0.35355338, %v1357_v52 }
 0x707   : > { %v2828_v54 = vpop.f32.mrf.mxu0 }
 0x708   : > { %v1364_v55 = vadd.f32 %v1363_v53, %v3358_v22 }
 0x709   : > { %v1360_v56 = vpop.f32.mrf.mxu0 }
 0x70a   : > { %v1365_v57 = vsel %vm832_vm2, %v1364_v55, -inf }
 0x70b   : > { %1366 = vmax.xlane.f32.xlu0 %v1365_v57  ;;  %v2829_v58 = vpop.f32.mrf.mxu0  ;;  %v2653_v57 = vld [vmem:[%s3774_s9] ss:$0 sm:$0xff] }
 0x721   : > { %1377 = vrot.lane.b32.xlu0 %v3339_v9, %s3130_s29  ;;  %v2648_v9 = vld [vmem:[%s3765_s0 + $0xc] sm:$0xf]  ;;  %s3767_s29 = sld [smem:[#allocation10_spill]]  ;;  %s3779_s0 = smov 80  }
 0x722   : > { %v1432_v7 = vsel %vm898_vm4, %v2648_v9, 0 }
 0x723   : > { %2837 = vmatpush3.bf16.msra.mxu0 %v1432_v7 }
 0x724   : > { %2850 = vmatprep.subr.bf16.mxu0 %v3117_v1 }
 0x727   : > { %s749_s30 = scalar_lea.vmem %s3767_s29, %s2629_s8  ;;  %s3777_s29 = smov 96  }
 0x728   : > { %v752_v34 = vld [vmem:[%s749_s30] sm:$0xff]  ;;  %s3773_s30 = smov 120   ;;  %s739_s8 = sand.u32 1, %s3107_s26  }
 0x729   : > { %v1584_v36 = vpack.c.bf16 %v752_v34, %v752_v34  ;;  %s2628_s2 = sshll.u32 %s739_s8, 3  ;;  %s2540_s11 = scalar_lea.sflag [#allocation3], %s739_s8 }
 0x794   : > { %v1367_v59 = vpop.xlane.xlu0 %1366 }
 0x795   : > { %v1368_v60 = vsub.f32 %v1364_v55, %v1367_v59 }
 0x797   : > { %v1369_v61 = vmul.f32 1.442695, %v1368_v60 }
 0x798   : > { %v1378_v62 = vpop.permute.xlu0 %1377 }
 0x799   : > { %3027 = vpow2.f32 %v1369_v61  ;;  %v1383_v63 = vsel %vm898_vm4, %v1378_v62, 0 }
 0x79a   : > { %2831 = vmatpush3.bf16.msra.mxu1 %v1383_v63 }
 0x79b   : > { %2842 = vmatprep.subr.bf16.mxu1 %v3117_v1 }
 0x7a6   : > { %v3028_v0 = vpop.eup %3027 }
 0x7a7   : > { %v1371_v22 = vsel %vm832_vm2, %v3028_v0, 0.0 }
 0x7a8   : > { %1372 = vadd.xlane.f32.xlu1 %v1371_v22 }
 0x7c0   : > { %v1306_v2 = vpop.f32.mrf.mxu1 }
 0x7c1   : > { %v1312_v4 = vadd.f32 %v1306_v2, %v3403_v19  ;;  %v2650_v19 = vld [vmem:[%s3766_s4] ss:$0 sm:$0xff]  ;;  %s3770_s4 = sld [smem:[#allocation15_spill]] }
 0x7c2   : > { %v2822_v5 = vpop.f32.mrf.mxu1 }
 0x7c4   : > { %v1309_v6 = vpop.f32.mrf.mxu1 }
 0x7c6   : > { %v2823_v8 = vpop.f32.mrf.mxu1 }
 0x7c7   : > { %v2651_v43 = vld [vmem:[%s3770_s4] ss:$0 sm:$0xff]  ;;  %s3775_s4 = smov 88  }
 0x831   : > { %v1373_v10 = vpop.xlane.xlu1 %1372 }
 0x832   : > { %3029 = vrcp.f32 %v1373_v10 }
 0x83f   : > { %v3030_v11 = vpop.eup %3029 }
 0x840   : > { %v1375_v12 = vmul.f32 %v3030_v11, %v3028_v0 }
 0x842   : > { %v1376_v13 = vpack.c.bf16 %v1375_v12, %v1375_v12 }
 0x844   : > { %2833 = vmatmul.mubr.msk.bf16.vlgmr.msra.gmra.mxu1 %vm832_vm2, %v1376_v13 }
 0x845   : > { %2846 = vmatprep.mubr.msk.bf16.mxu1 %vm3118_vm0, %v3117_v1  ;;  %2843 = vmatpush3.bf16.msra.mxu1 %v3007_v37 }
 0x846   : > { %2844 = vmatprep.subr.bf16.mxu1 %v3117_v1 }
 0x849   : > { %2845 = vmatpush3.bf16.msra.mxu1 %v3008_v38  ;;  %v1759_v38 = vld [vmem:[%s3711_s12] sm:$0xf] }
 0x84a   : > { %2858 = vmatprep.subr.bf16.mxu1 %v3117_v1 }
 0x904   : > { %v1419_v14 = vpop.f32.mrf.mxu1 }
 0x905   : > { %v1425_v15 = vpack.c.bf16 %v1419_v14, %v1419_v14 }
 0x906   : > { %v2834_v16 = vpop.f32.mrf.mxu1 }
 0x907   : > { %2839 = vmatmul.mubr.msk.bf16.vlgmr.msra.gmra.mxu0 %vm832_vm2, %v1425_v15 }
 0x908   : > { %v1422_v17 = vpop.f32.mrf.mxu1  ;;  %2854 = vmatprep.mubr.msk.bf16.mxu0 %vm3118_vm0, %v3117_v1 }
 0x90a   : > { %v2835_v18 = vpop.f32.mrf.mxu1 }
 0x9c7   : > { %v1468_v20 = vpop.f32.mrf.mxu0 }
 0x9c8   : > { %v1474_v21 = vadd.f32 %v1468_v20, %v1312_v4 }
 0x9c9   : > { %v2840_v23 = vpop.f32.mrf.mxu0 }
 0x9ca   : > { %v1481_v24 = vadd.f32 %v2650_v19, %v1474_v21 }
 0x9cb   : > { %v1471_v25 = vpop.f32.mrf.mxu0 }
 0x9cc   : > { %v1482_v26 = vadd.f32 %v1481_v24, %v3329_v3  ;;  %v3005_v3 = vld [vmem:[%s3768_s10 + $0x8] sm:$0xff]  }
 0x9cd   : > { %v2841_v27 = vpop.f32.mrf.mxu0  ;;  %2851 = vmatpush3.bf16.msra.mxu0 %v3005_v3 }
 0x9ce   : > { %v1485_v28 = vsel %vm783_vm1, %v1482_v26, 0.0  ;;  %2852 = vmatprep.subr.bf16.mxu0 %v3117_v1 }
 0x9cf   : > { %1486 = vadd.xlane.f32.xlu1 %v1485_v28 }
 0x9d1   : > { %2853 = vmatpush3.bf16.msra.mxu0 %v3006_v35 }
 0x9d2   : > { %2864 = vmatprep.subr.bf16.mxu0 %v3117_v1 }
 0x9d4   : > { %2855 = vmatmul.mubr.msk.bf16.vlgmr.msra.gmra.mxu0 %vm783_vm1, %v1584_v36 }
 0x9d5   : > { %2866 = vmatprep.mubr.msk.bf16.mxu0 %vm3118_vm0, %v3117_v1 }
 0xa58   : > { %v1487_v29 = vpop.xlane.xlu1 %1486 }
 0xa59   : > { %v1489_v30 = vmul.f32 0.03125, %v1487_v29 }
 0xa5b   : > { %v1490_v31 = vsub.f32 %v1482_v26, %v1489_v30 }
 0xa5d   : > { %v1491_v32 = vmul.f32 %v1490_v31, %v1490_v31 }
 0xa5f   : > { %v1492_v33 = vsel %vm783_vm1, %v1491_v32, 0.0 }
 0xa60   : > { %1493 = vadd.xlane.f32.xlu1 %v1492_v33 }
 0xa94   : > { %v1641_v50 = vpop.f32.mrf.mxu0 }
 0xa95   : > { %v1642_v51 = vadd.f32 %v2657_v49, %v1641_v50 }
 0xa96   : > { %v2856_v52 = vpop.f32.mrf.mxu0 }
 0xa97   : > { %v3495_v53 = vpack.c.bf16 %v1642_v51, %v1642_v51 }
 0xa98   : > { %v1644_v54 = vpop.f32.mrf.mxu0 }
 0xa99   : > { %1763 = vrot.lane.b32.xlu1 %v3495_v53, %s3773_s30  ;;  %v1654_v55 = vsel %vm832_vm2, %v3495_v53, 0 }
 0xa9a   : > { %v2857_v56 = vpop.f32.mrf.mxu0 }
 0xae9   : > { %v1494_v39 = vpop.xlane.xlu1 %1493 }
 0xaea   : > { %v1495_v40 = vmul.f32 0.03125, %v1494_v39  ;;  %v1925_v39 = vsel %vm898_vm4, %v1759_v38, 0 }
 0xaec   : > { %v1496_v41 = vadd.f32 1e-05, %v1495_v40  ;;  %v2665_v40 = vld [vmem:[%s3711_s12 + $0x4] sm:$0xf] }
 0xaee   : > { %3031 = vrsqrt.f32 %v1496_v41  ;;  %v1879_v41 = vsel %vm898_vm4, %v2665_v40, 0 }
 0xafb   : > { %v3032_v42 = vpop.eup %3031 }
 0xafc   : > { %v1498_v44 = vmul.f32 %v3032_v42, %v1490_v31 }
 0xafe   : > { %v1505_v46 = vmul.f32 %v2651_v43, %v1498_v44 }
 0xb00   : > { %v3485_v47 = vadd.f32 %v2652_v45, %v1505_v46 }
 0xb02   : > { %v1517_v48 = vpack.c.bf16 %v3485_v47, %v3485_v47 }
 0xb04   : > { %2847 = vmatmul.mubr.msk.bf16.vlgmr.msra.gmra.mxu1 %vm783_vm1, %v1517_v48 }
 0xb05   : > { %2860 = vmatprep.mubr.msk.bf16.mxu1 %vm3118_vm0, %v3117_v1  ;;  %2859 = vmatpush3.bf16.xpose.msra.mxu1 %v1654_v55 }
 0xb06   : > { %2870 = vmatprep.subr.bf16.mxu1 %v3117_v1 }
 0xb0b   : > { %v1764_v59 = vpop.permute.xlu1 %1763 }
 0xb0c   : > { %v1769_v63 = vsel %vm832_vm2, %v1764_v59, 0 }
 0xbc4   : > { %v1574_v58 = vpop.f32.mrf.mxu1 }
 0xbc5   : > { %v1575_v60 = vadd.f32 %v2653_v57, %v1574_v58 }
 0xbc6   : > { %v2848_v61 = vpop.f32.mrf.mxu1 }
 0xbc7   : > { %v3505_v62 = vpack.c.bf16 %v1575_v60, %v1575_v60 }
 0xbc8   : > { %v1577_v0 = vpop.f32.mrf.mxu1 }
 0xbc9   : > { %1761 = vrot.lane.b32.xlu0 %v3505_v62, %s3773_s30  ;;  %2861 = vmatmul.mubr.msk.bf16.vlgmr.msra.gmra.mxu1 %vm832_vm2, %v3505_v62 }
 0xbca   : > { %v2849_v22 = vpop.f32.mrf.mxu1  ;;  %2871 = vmatpush3.bf16.xpose.msra.mxu1 %v1769_v63  ;;  %2872 = vmatprep.mubr.msk.bf16.mxu1 %vm3118_vm0, %v3117_v1 }
 0xbcb   : > { %2882 = vmatprep.subr.bf16.mxu1 %v3117_v1 }
 0xc3b   : > { %v1762_v2 = vpop.permute.xlu0 %1761 }
 0xc3c   : > { %2873 = vmatmul.mubr.msk.bf16.vlgmr.msra.gmra.mxu1 %vm832_vm2, %v1762_v2 }
 0xc3d   : > { %2884 = vmatprep.mubr.msk.bf16.mxu1 %vm3118_vm0, %v3117_v1  ;;  %2883 = vmatpush3.bf16.msra.mxu1 %v1879_v41 }
 0xc3e   : > { %2894 = vmatprep.subr.bf16.mxu1 %v3117_v1 }
 0xc89   : > { %v1690_v4 = vpop.f32.mrf.mxu1 }
 0xc8a   : > { %v1696_v5 = vmul.f32 0.35355338, %v1690_v4 }
 0xc8b   : > { %v2862_v6 = vpop.f32.mrf.mxu1 }
 0xc8c   : > { %v1697_v9 = vsel %vm832_vm2, %v1696_v5, -inf }
 0xc8d   : > { %1698 = vmax.xlane.f32.xlu0 %v1697_v9  ;;  %v1693_v7 = vpop.f32.mrf.mxu1 }
 0xc8f   : > { %v2863_v8 = vpop.f32.mrf.mxu1 }
 0xcfc   : > { %v1805_v10 = vpop.f32.mrf.mxu1 }
 0xcfd   : > { %v1811_v11 = vmul.f32 0.35355338, %v1805_v10 }
 0xcfe   : > { %v2874_v12 = vpop.f32.mrf.mxu1 }
 0xcff   : > { %v1812_v13 = vsel %vm832_vm2, %v1811_v11, -inf }
 0xd00   : > { %1813 = vmax.xlane.f32.xlu1 %v1812_v13  ;;  %v1808_v14 = vpop.f32.mrf.mxu1 }
 0xd02   : > { %v2875_v15 = vpop.f32.mrf.mxu1 }
 0xd11   : > { %1824 = vrot.lane.b32.xlu1 %v3495_v53, %s3775_s4 }
 0xd15   : > { %1969 = vrot.lane.b32.xlu1 %v3495_v53, %s3776_s27 }
 0xd16   : > { %v1699_v16 = vpop.xlane.xlu0 %1698 }
 0xd17   : > { %v1700_v17 = vsub.f32 %v1696_v5, %v1699_v16 }
 0xd19   : > { %v1701_v18 = vmul.f32 1.442695, %v1700_v17 }
 0xd1b   : > { %3033 = vpow2.f32 %v1701_v18 }
 0xd28   : > { %v3034_v19 = vpop.eup %3033 }
 0xd29   : > { %v1703_v20 = vsel %vm832_vm2, %v3034_v19, 0.0 }
 0xd2a   : > { %1704 = vadd.xlane.f32.xlu0 %v1703_v20 }
 0xd89   : > { %v1814_v21 = vpop.xlane.xlu1 %1813 }
 0xd8a   : > { %v1815_v23 = vsub.f32 %v1811_v11, %v1814_v21 }
 0xd8c   : > { %v1816_v24 = vmul.f32 1.442695, %v1815_v23 }
 0xd8d   : > { %v1825_v33 = vpop.permute.xlu1 %1824 }
 0xd8e   : > { %3035 = vpow2.f32 %v1816_v24  ;;  %v1830_v34 = vsel %vm898_vm4, %v1825_v33, 0  ;;  %v2670_v24 = vld [vmem:[%s3711_s12 + $0x8] sm:$0xf] }
 0xd91   : > { %v1970_v48 = vpop.permute.xlu1 %1969 }
 0xd92   : > { %v1975_v52 = vsel %vm832_vm2, %v1970_v48, 0 }
 0xd9b   : > { %v3036_v25 = vpop.eup %3035 }
 0xd9c   : > { %v1818_v26 = vsel %vm832_vm2, %v3036_v25, 0.0 }
 0xd9d   : > { %1819 = vadd.xlane.f32.xlu0 %v1818_v26 }
 0xdb3   : > { %1710 = vrot.lane.b32.xlu0 %v3495_v53, %s3777_s29  ;;  %v1705_v27 = vpop.xlane.xlu0 %1704  ;;  %s3780_s29 = smov 72  }
 0xdb4   : > { %3037 = vrcp.f32 %v1705_v27 }
 0xdb7   : > { %1967 = vrot.lane.b32.xlu0 %v3505_v62, %s3776_s27  ;;  %s2694_s27 = sshll.u32 %s3278_s6, 7 }
 0xdb8   : > { %s2551_s10 = scalar_lea.hbm %s3723_s24, %s2694_s27 }
 0xdc1   : > { %v3038_v28 = vpop.eup %3037 }
 0xdc2   : > { %v1707_v30 = vmul.f32 %v3038_v28, %v3034_v19 }
 0xdc4   : > { %v1708_v3 = vpack.c.bf16 %v1707_v30, %v1707_v30 }
 0xe26   : > { %v1820_v29 = vpop.xlane.xlu0 %1819 }
 0xe27   : > { %3039 = vrcp.f32 %v1820_v29 }
 0xe2a   : > { %v1711_v31 = vpop.permute.xlu0 %1710 }
 0xe2b   : > { %v1716_v32 = vsel %vm898_vm4, %v1711_v31, 0 }
 0xe2c   : > { %2865 = vmatpush3.bf16.msra.mxu0 %v1716_v32 }
 0xe2d   : > { %2876 = vmatprep.subr.bf16.mxu0 %v3117_v1 }
 0xe2e   : > { %v1968_v56 = vpop.permute.xlu0 %1967 }
 0xe2f   : > { %2867 = vmatmul.mubr.msk.bf16.vlgmr.msra.gmra.mxu0 %vm832_vm2, %v1708_v3 }
 0xe30   : > { %2877 = vmatpush3.bf16.msra.mxu0 %v1830_v34  ;;  %2878 = vmatprep.mubr.msk.bf16.mxu0 %vm3118_vm0, %v3117_v1 }
 0xe31   : > { %2888 = vmatprep.subr.bf16.mxu0 %v3117_v1 }
 0xe34   : > { %v3040_v35 = vpop.eup %3039 }
 0xe35   : > { %v1822_v36 = vmul.f32 %v3040_v35, %v3036_v25  ;;  %v2085_v25 = vsel %vm898_vm4, %v2670_v24, 0 }
 0xe37   : > { %v1823_v37 = vpack.c.bf16 %v1822_v36, %v1822_v36 }
 0xe39   : > { %2879 = vmatmul.mubr.msk.bf16.vlgmr.msra.gmra.mxu0 %vm832_vm2, %v1823_v37 }
 0xe3a   : > { %2890 = vmatprep.mubr.msk.bf16.mxu0 %vm3118_vm0, %v3117_v1  ;;  %2889 = vmatpush3.bf16.msra.mxu0 %v1925_v39 }
 0xe3b   : > { %2900 = vmatprep.subr.bf16.mxu0 %v3117_v1 }
 0xeef   : > { %v1752_v42 = vpop.f32.mrf.mxu0 }
 0xef0   : > { %v1758_v43 = vpack.c.bf16 %v1752_v42, %v1752_v42 }
 0xef1   : > { %v2868_v44 = vpop.f32.mrf.mxu0 }
 0xef2   : > { %2891 = vmatmul.mubr.msk.bf16.vlgmr.msra.gmra.mxu0 %vm832_vm2, %v1758_v43 }
 0xef3   : > { %v1755_v45 = vpop.f32.mrf.mxu0  ;;  %2902 = vmatprep.mubr.msk.bf16.mxu0 %vm3118_vm0, %v3117_v1 }
 0xef5   : > { %v2869_v46 = vpop.f32.mrf.mxu0 }
 0xef9   : > { %v1866_v49 = vpop.f32.mrf.mxu0 }
 0xefa   : > { %v1872_v50 = vpack.c.bf16 %v1866_v49, %v1866_v49 }
 0xefb   : > { %v2880_v51 = vpop.f32.mrf.mxu0 }
 0xefc   : > { %2885 = vmatmul.mubr.msk.bf16.vlgmr.msra.gmra.mxu1 %vm832_vm2, %v1872_v50 }
 0xefd   : > { %2895 = vmatpush3.bf16.xpose.msra.mxu1 %v1975_v52  ;;  %v1869_v54 = vpop.f32.mrf.mxu0  ;;  %2896 = vmatprep.mubr.msk.bf16.mxu1 %vm3118_vm0, %v3117_v1 }
 0xefe   : > { %2906 = vmatprep.subr.bf16.mxu1 %v3117_v1 }
 0xeff   : > { %v2881_v55 = vpop.f32.mrf.mxu0 }
 0xf04   : > { %2897 = vmatmul.mubr.msk.bf16.vlgmr.msra.gmra.mxu1 %vm832_vm2, %v1968_v56 }
 0xf05   : > { %2908 = vmatprep.mubr.msk.bf16.mxu1 %vm3118_vm0, %v3117_v1  ;;  %2907 = vmatpush3.bf16.msra.mxu1 %v2085_v25  ;;  %v3013_v25 = vld [vmem:[%s3717_s18 + $0x8] sm:$0xff]  }
 0xf06   : > { %2918 = vmatprep.subr.bf16.mxu1 %v3117_v1 }
 0xfb2   : > { %v1961_v57 = vpop.f32.mrf.mxu0 }
 0xfb4   : > { %v2892_v58 = vpop.f32.mrf.mxu0 }
 0xfb6   : > { %v1964_v59 = vpop.f32.mrf.mxu0 }
 0xfb8   : > { %v2893_v60 = vpop.f32.mrf.mxu0 }
 0xfb9   : > { %v2676_v60 = vld [vmem:[%s3712_s13] ss:$0 sm:$0xff] }
 0xfbc   : > { %v1915_v61 = vpop.f32.mrf.mxu1 }
 0xfbd   : > { %v3561_v63 = vadd.f32 %v1961_v57, %v1915_v61 }
 0xfbe   : > { %v2886_v0 = vpop.f32.mrf.mxu1 }
 0xfc0   : > { %v1918_v22 = vpop.f32.mrf.mxu1 }
 0xfc2   : > { %v2887_v2 = vpop.f32.mrf.mxu1 }
 0xfc4   : > { %v2011_v4 = vpop.f32.mrf.mxu1 }
 0xfc5   : > { %v2017_v5 = vmul.f32 0.35355338, %v2011_v4 }
 0xfc6   : > { %v2898_v6 = vpop.f32.mrf.mxu1 }
 0xfc7   : > { %v2018_v9 = vsel %vm832_vm2, %v2017_v5, -inf }
 0xfc8   : > { %2019 = vmax.xlane.f32.xlu1 %v2018_v9  ;;  %v2014_v7 = vpop.f32.mrf.mxu1 }
 0xfca   : > { %v2899_v8 = vpop.f32.mrf.mxu1 }
 0xfd9   : > { %2130 = vrot.lane.b32.xlu1 %v3495_v53, %s3778_s25 }
 0xfdd   : > { %2128 = vrot.lane.b32.xlu1 %v3505_v62, %s3778_s25  ;;  %s3131_s25 = smov [#allocation2]  }
0x1051   : > { %v2020_v10 = vpop.xlane.xlu1 %2019 }
0x1052   : > { %v2021_v11 = vsub.f32 %v2017_v5, %v2020_v10 }
0x1054   : > { %v2022_v12 = vmul.f32 1.442695, %v2021_v11 }
0x1055   : > { %v2131_v19 = vpop.permute.xlu1 %2130 }
0x1056   : > { %3041 = vpow2.f32 %v2022_v12  ;;  %v2136_v21 = vsel %vm832_vm2, %v2131_v19, 0  ;;  %v3009_v12 = vld [vmem:[%s3715_s16 + $0x8] sm:$0xff]  }
0x1059   : > { %v2129_v23 = vpop.permute.xlu1 %2128 }
0x1063   : > { %v3042_v13 = vpop.eup %3041 }
0x1064   : > { %v2024_v14 = vsel %vm832_vm2, %v3042_v13, 0.0 }
0x1065   : > { %2025 = vadd.xlane.f32.xlu0 %v2024_v14  ;;  %v3012_v14 = vld [vmem:[%s3717_s18 + $0x10] sm:$0xff]  }
0x107b   : > { %2030 = vrot.lane.b32.xlu0 %v3495_v53, %s3779_s0  ;;  %s3059_s0 = sshll.u32 %s3131_s25, 4  ;;  %s3060_s0 = int_to_ptr.vmem [resolvable:$false] %s3059_s0 }
0x107c   : > { %s3061_s6 = scalar_lea.vmem %s3060_s0, 256 }
0x10ee   : > { %v2026_v15 = vpop.xlane.xlu0 %2025 }
0x10ef   : > { %3043 = vrcp.f32 %v2026_v15 }
0x10f2   : > { %v2031_v16 = vpop.permute.xlu0 %2030 }
0x10f3   : > { %v2036_v17 = vsel %vm898_vm4, %v2031_v16, 0 }
0x10f4   : > { %2901 = vmatpush3.bf16.msra.mxu0 %v2036_v17 }
0x10f5   : > { %2912 = vmatprep.subr.bf16.mxu0 %v3117_v1 }
0x10fc   : > { %v3044_v62 = vpop.eup %3043 }
0x10fd   : > { %v2028_v18 = vmul.f32 %v3044_v62, %v3042_v13  ;;  %v3011_v13 = vld [vmem:[%s3717_s18 + $0x18] sm:$0xff]  }
0x10ff   : > { %v2029_v20 = vpack.c.bf16 %v2028_v18, %v2028_v18  ;;  %v2677_v18 = vld [vmem:[%s3713_s14] ss:$0 sm:$0xff] }
0x1101   : > { %2903 = vmatmul.mubr.msk.bf16.vlgmr.msra.gmra.mxu0 %vm832_vm2, %v2029_v20  ;;  %v2678_v20 = vld [vmem:[%s3714_s15] ss:$0 sm:$0xff] }
0x1102   : > { %2913 = vmatpush3.bf16.xpose.msra.mxu0 %v2136_v21  ;;  %2914 = vmatprep.mubr.msk.bf16.mxu0 %vm3118_vm0, %v3117_v1 }
0x1103   : > { %2924 = vmatprep.subr.bf16.mxu0 %v3117_v1 }
0x1109   : > { %2915 = vmatmul.mubr.msk.bf16.vlgmr.msra.gmra.mxu0 %vm832_vm2, %v2129_v23 }
0x110a   : > { %2926 = vmatprep.mubr.msk.bf16.mxu0 %vm3118_vm0, %v3117_v1 }
0x11c1   : > { %v2072_v26 = vpop.f32.mrf.mxu0 }
0x11c2   : > { %v2078_v27 = vpack.c.bf16 %v2072_v26, %v2072_v26  ;;  %v3014_v26 = vld [vmem:[%s3717_s18] sm:$0xff]  }
0x11c3   : > { %v2904_v28 = vpop.f32.mrf.mxu0 }
0x11c4   : > { %2909 = vmatmul.mubr.msk.bf16.vlgmr.msra.gmra.mxu1 %vm832_vm2, %v2078_v27  ;;  %v2679_v27 = vld [vmem:[%s3716_s17] ss:$0 sm:$0xff] }
0x11c5   : > { %v2075_v29 = vpop.f32.mrf.mxu0  ;;  %2920 = vmatprep.mubr.msk.bf16.mxu1 %vm3118_vm0, %v3117_v1 }
0x11c7   : > { %v2905_v30 = vpop.f32.mrf.mxu0 }
0x11c9   : > { %v2172_v31 = vpop.f32.mrf.mxu0 }
0x11ca   : > { %v2178_v32 = vmul.f32 0.35355338, %v2172_v31 }
0x11cb   : > { %v2916_v33 = vpop.f32.mrf.mxu0 }
0x11cc   : > { %v2179_v3 = vsel %vm832_vm2, %v2178_v32, -inf }
0x11cd   : > { %2180 = vmax.xlane.f32.xlu0 %v2179_v3  ;;  %v2175_v34 = vpop.f32.mrf.mxu0 }
0x11cf   : > { %v2917_v35 = vpop.f32.mrf.mxu0 }
0x11e3   : > { %2191 = vrot.lane.b32.xlu0 %v3495_v53, %s3780_s29  ;;  %v2674_v53 = vld [vmem:[%s3711_s12 + $0xc] sm:$0xf]  ;;  %s741_s29 = scalar_lea.vmem [#allocation2], %s2628_s2 }
0x11e4   : > { %v2246_v46 = vsel %vm898_vm4, %v2674_v53, 0  ;;  %s2553_s7 = sshll.u32 %s741_s29, 4  ;;  %s2554_s7 = int_to_ptr.vmem [resolvable:$true] %s2553_s7 }
0x11e5   : > { %2925 = vmatpush3.bf16.msra.mxu0 %v2246_v46  ;;  %s3055_s30 = scalar_lea.vmem %s2554_s7, 128  ;;  %p3062_p0 = scmp.lt.s32.totalorder %s2554_s7, %s3060_s0 }
0x11e6   : > { %2938 = vmatprep.subr.bf16.mxu0 %v3117_v1  ;;  %p3056_p11 = scmp.ne.s32.totalorder %s2554_s7, %s3055_s30  ;;  %p3063_p1 = scmp.lt.s32.totalorder %s3061_s6, %s3055_s30 }
0x11e8   : > { %p3057_p12 = pnand %p3056_p11, %p3295_p5  ;;  %p3064_p2 = por %p3063_p1, %p3062_p0 }
0x11ea   : > { %p3058_p13 = pneg %p3057_p12 }
0x11ec   : > { %p3065_p3 = pnand %p3064_p2, %p3058_p13 }
0x1256   : > { %v2181_v36 = vpop.xlane.xlu0 %2180 }
0x1257   : > { %v2182_v37 = vsub.f32 %v2178_v32, %v2181_v36 }
0x1259   : > { %v2183_v38 = vmul.f32 1.442695, %v2182_v37 }
0x125a   : > { %v2192_v39 = vpop.permute.xlu0 %2191 }
0x125b   : > { %3045 = vpow2.f32 %v2183_v38  ;;  %v2197_v40 = vsel %vm898_vm4, %v2192_v39, 0 }
0x125c   : > { %2919 = vmatpush3.bf16.msra.mxu1 %v2197_v40 }
0x125d   : > { %2930 = vmatprep.subr.bf16.mxu1 %v3117_v1 }
0x1268   : > { %v3046_v41 = vpop.eup %3045 }
0x1269   : > { %v2185_v42 = vsel %vm832_vm2, %v3046_v41, 0.0 }
0x126a   : > { %2186 = vadd.xlane.f32.xlu1 %v2185_v42 }
0x1284   : > { %v2121_v43 = vpop.f32.mrf.mxu1 }
0x1285   : > { %v2127_v44 = vadd.f32 %v2121_v43, %v3561_v63 }
0x1286   : > { %v2910_v45 = vpop.f32.mrf.mxu1 }
0x1288   : > { %v2124_v48 = vpop.f32.mrf.mxu1 }
0x128a   : > { %v2911_v49 = vpop.f32.mrf.mxu1 }
0x12f3   : > { %v2187_v50 = vpop.xlane.xlu1 %2186 }
0x12f4   : > { %3047 = vrcp.f32 %v2187_v50  ;;  %v2689_v50 = vld [vmem:[%s3719_s20] ss:$0 sm:$0xff] }
0x1301   : > { %v3048_v51 = vpop.eup %3047 }
0x1302   : > { %v2189_v52 = vmul.f32 %v3048_v51, %v3046_v41 }
0x1304   : > { %v2190_v54 = vpack.c.bf16 %v2189_v52, %v2189_v52  ;;  %v2690_v52 = vld [vmem:[%s3720_s21] ss:$0 sm:$0xff] }
0x1306   : > { %2921 = vmatmul.mubr.msk.bf16.vlgmr.msra.gmra.mxu1 %vm832_vm2, %v2190_v54 }
0x1307   : > { %2934 = vmatprep.mubr.msk.bf16.mxu1 %vm3118_vm0, %v3117_v1  ;;  %2931 = vmatpush3.bf16.msra.mxu1 %v3009_v12 }
0x1308   : > { %2932 = vmatprep.subr.bf16.mxu1 %v3117_v1 }
0x13c6   : > { %v2233_v55 = vpop.f32.mrf.mxu1 }
0x13c7   : > { %v2239_v56 = vpack.c.bf16 %v2233_v55, %v2233_v55 }
0x13c8   : > { %v2922_v57 = vpop.f32.mrf.mxu1 }
0x13c9   : > { %2927 = vmatmul.mubr.msk.bf16.vlgmr.msra.gmra.mxu0 %vm832_vm2, %v2239_v56 }
0x13ca   : > { %v2236_v58 = vpop.f32.mrf.mxu1  ;;  %2946 = vmatprep.mubr.msk.bf16.mxu0 %vm3118_vm0, %v3117_v1  ;;  %2939 = vmatpush3.bf16.msra.mxu0 %v3011_v13 }
0x13cb   : > { %2940 = vmatprep.subr.bf16.mxu0 %v3117_v1 }
0x13cc   : > { %v2923_v59 = vpop.f32.mrf.mxu1 }
0x13ce   : > { %2941 = vmatpush3.bf16.msra.mxu0 %v3012_v14 }
0x13cf   : > { %2942 = vmatprep.subr.bf16.mxu0 %v3117_v1 }
0x13d2   : > { %2943 = vmatpush3.bf16.msra.mxu0 %v3013_v25 }
0x13d3   : > { %2944 = vmatprep.subr.bf16.mxu0 %v3117_v1  ;;  %v2688_v1 = vld [vmem:[%s3718_s19] ss:$0 sm:$0xff] }
0x13d6   : > { %2945 = vmatpush3.bf16.msra.mxu0 %v3014_v26 }
0x1489   : > { %v2282_v61 = vpop.f32.mrf.mxu0 }
0x148a   : > { %v2288_v63 = vadd.f32 %v2282_v61, %v2127_v44 }
0x148b   : > { %v2928_v0 = vpop.f32.mrf.mxu0 }
0x148c   : > { %v2295_v22 = vadd.f32 %v2676_v60, %v2288_v63 }
0x148d   : > { %v2285_v2 = vpop.f32.mrf.mxu0 }
0x148e   : > { %v2296_v4 = vadd.f32 %v2295_v22, %v3485_v47  ;;  %v3010_v47 = vld [vmem:[%s3715_s16] sm:$0xff]  }
0x148f   : > { %v2929_v5 = vpop.f32.mrf.mxu0  ;;  %2933 = vmatpush3.bf16.msra.mxu1 %v3010_v47 }
0x1490   : > { %v2299_v6 = vsel %vm783_vm1, %v2296_v4, 0.0 }
0x1491   : > { %2300 = vadd.xlane.f32.xlu1 %v2299_v6  ;;  %v2692_v6 = vld [vmem:[%s3722_s23] ss:$0 sm:$0xff] }
0x151a   : > { %v2301_v9 = vpop.xlane.xlu1 %2300 }
0x151b   : > { %v2302_v7 = vmul.f32 0.03125, %v2301_v9 }
0x151d   : > { %v2303_v8 = vsub.f32 %v2296_v4, %v2302_v7  ;;  %v2691_v4 = vld [vmem:[%s3721_s22] ss:$0 sm:$0xff] }
0x151f   : > { %v2304_v10 = vmul.f32 %v2303_v8, %v2303_v8 }
0x1521   : > { %v2305_v11 = vsel %vm783_vm1, %v2304_v10, 0.0 }
0x1522   : > { %2306 = vadd.xlane.f32.xlu1 %v2305_v11 }
0x15ab   : > { %v2307_v15 = vpop.xlane.xlu1 %2306 }
0x15ac   : > { %v2308_v16 = vmul.f32 0.03125, %v2307_v15 }
0x15ae   : > { %v2309_v17 = vadd.f32 1e-05, %v2308_v16 }
0x15b0   : > { %3049 = vrsqrt.f32 %v2309_v17 }
0x15bd   : > { %v3050_v62 = vpop.eup %3049 }
0x15be   : > { %v2311_v19 = vmul.f32 %v3050_v62, %v2303_v8 }
0x15c0   : > { %v2318_v21 = vmul.f32 %v2677_v18, %v2311_v19 }
0x15c2   : > { %v2325_v23 = vadd.f32 %v2678_v20, %v2318_v21 }
0x15c4   : > { %v2330_v24 = vpack.c.bf16 %v2325_v23, %v2325_v23 }
0x15c6   : > { %2935 = vmatmul.mubr.msk.bf16.vlgmr.msra.gmra.mxu1 %vm783_vm1, %v2330_v24 }
0x1686   : > { %v2387_v28 = vpop.f32.mrf.mxu1 }
0x1687   : > { %v2388_v29 = vadd.f32 %v2679_v27, %v2387_v28 }
0x1688   : > { %v2936_v30 = vpop.f32.mrf.mxu1 }
0x1689   : > { %v2393_v31 = vmax.f32 %v2388_v29, 0.0 }
0x168a   : > { %v2390_v32 = vpop.f32.mrf.mxu1 }
0x168b   : > { %v2402_v33 = vpack.c.bf16 %v2393_v31, %v2393_v31 }
0x168c   : > { %v2937_v3 = vpop.f32.mrf.mxu1 }
0x168d   : > { %2947 = vmatmul.mubr.msk.bf16.vlgmr.msra.gmra.mxu0 %vm2427_vm5, %v2402_v33 }
0x174d   : > { %v2465_v34 = vpop.f32.mrf.mxu0 }
0x174e   : > { %v2471_v35 = vadd.f32 %v2465_v34, %v2325_v23 }
0x174f   : > { %v2948_v36 = vpop.f32.mrf.mxu0 }
0x1750   : > { %v2479_v37 = vadd.f32 %v2688_v1, %v2471_v35 }
0x1751   : > { %v2468_v38 = vpop.f32.mrf.mxu0 }
0x1752   : > { %v2482_v39 = vsel %vm783_vm1, %v2479_v37, 0.0 }
0x1753   : > { %2483 = vadd.xlane.f32.xlu1 %v2482_v39  ;;  %v2949_v40 = vpop.f32.mrf.mxu0 }
0x17dc   : > { %v2484_v41 = vpop.xlane.xlu1 %2483 }
0x17dd   : > { %v2485_v42 = vmul.f32 0.03125, %v2484_v41 }
0x17df   : > { %v2486_v43 = vsub.f32 %v2479_v37, %v2485_v42 }
0x17e1   : > { %v2487_v44 = vmul.f32 %v2486_v43, %v2486_v43 }
0x17e3   : > { %v2488_v45 = vsel %vm783_vm1, %v2487_v44, 0.0 }
0x17e4   : > { %2489 = vadd.xlane.f32.xlu1 %v2488_v45 }
0x186d   : > { %v2490_v53 = vpop.xlane.xlu1 %2489 }
0x186e   : > { %v2491_v46 = vmul.f32 0.03125, %v2490_v53 }
0x1870   : > { %v2492_v48 = vadd.f32 1e-05, %v2491_v46 }
0x1872   : > { %3051 = vrsqrt.f32 %v2492_v48 }
0x187f   : > { %v3052_v49 = vpop.eup %3051 }
0x1880   : > { %v2494_v51 = vmul.f32 %v3052_v49, %v2486_v43 }
0x1882   : > { %v2501_v54 = vmul.f32 %v2689_v50, %v2494_v51 }
0x1884   : > { %v2508_v55 = vadd.f32 %v2690_v52, %v2501_v54 }
0x1886   : > { %v2511_v56 = vsel %vm783_vm1, %v2508_v55, 0.0 }
0x1887   : > { %2512 = vadd.xlane.f32.xlu1 %v2511_v56 }
0x1910   : > { %v2513_v57 = vpop.xlane.xlu1 %2512 }
0x1911   : > { %v2514_v58 = vmul.f32 0.03125, %v2513_v57 }
0x1913   : > { %v2515_v59 = vsub.f32 %v2508_v55, %v2514_v58 }
0x1915   : > { %v2516_v60 = vmul.f32 %v2515_v59, %v2515_v59 }
0x1917   : > { %v2517_v61 = vsel %vm783_vm1, %v2516_v60, 0.0 }
0x1918   : > { %2518 = vadd.xlane.f32.xlu0 %v2517_v61 }
0x19a1   : > { %v2519_v63 = vpop.xlane.xlu0 %2518 }
0x19a2   : > { %v2520_v0 = vmul.f32 0.03125, %v2519_v63 }
0x19a4   : > { %v2521_v22 = vadd.f32 1e-05, %v2520_v0 }
0x19a6   : > { %3053 = vrsqrt.f32 %v2521_v22 }
0x19b3   : > { %v3054_v2 = vpop.eup %3053 }
0x19b4   : > { %v2523_v5 = vmul.f32 %v3054_v2, %v2515_v59 }
0x19b6   : > { %v2530_v9 = vmul.f32 %v2691_v4, %v2523_v5 }
0x19b8   : > { %v2537_v7 = vadd.f32 %v2692_v6, %v2530_v9 }
0x19ba   : > { %2538 = vst.msk [vmem:[%s741_s29] sm:$0xff] %vm783_vm1, %v2537_v7 }
0x19bb   : > { %3068 = shalt.err (!%p3065_p3)
}
0x19bc   : > { %s3069_s9 = scalar_lea.hbm %s2551_s10, 128  ;;  %s3073_s2 = scalar_lea.hbm %s3723_s24, 256 }
0x19bd   : > { %p3070_p4 = scmp.ne.s32.totalorder %s2551_s10, %s3069_s9  ;;  %p3074_p9 = scmp.lt.s32.totalorder %s2551_s10, %s3723_s24 }
0x19be   : > { %p3075_p10 = scmp.lt.s32.totalorder %s3073_s2, %s3069_s9 }
0x19bf   : > { %p3071_p7 = pnand %p3070_p4, %p3295_p5 }
0x19c0   : > { %p3076_p11 = por %p3075_p10, %p3074_p9 }
0x19c1   : > { %p3072_p8 = pneg %p3071_p7 }
0x19c3   : > { %p3077_p12 = pnand %p3076_p11, %p3072_p8 }
0x19c5   : > { %3080 = shalt.err (!%p3077_p12)
}
0x19c6   : > { %2950 = dma.vmem_to_hbm [thread:$0]  (%p3295_p5), %s2554_s7, 128, %s2551_s10, %s2540_s11  }
0x19c7 PF: > { %p2956_p13 = scmp.ge.s32.totalorder %s3115_s28, 2  ;;  %s2565_s30 = sand.u32 1, %s3103_s5  }
0x19c8   : > { %s2566_s25 = scalar_lea.sflag [#allocation3], %s2565_s30 }
0x19c9   : > { %p2953_p0 = pnand %p2956_p13, %p3299_p6 }
0x19cb   : > { %p2954_p1 = pneg %p2953_p0 }
0x19cd   : > { %3098 = dma.done.wait (%p2954_p1), %s2566_s25, 128  }
0x19ce   : > { %3100 = vsyncadd (%p2954_p1), %s2566_s25, 4294967168  ;;  %s3782_s28 = sld [smem:[#allocation6_spill]]  ;;  %s3785_s5 = smov %s3107_s26 }
0x19cf   : > { %s3783_s0 = sld [smem:[#allocation5_spill]] }
0x19d0   : > { %s3784_s27 = sld [smem:[#allocation7_spill]] }
0x19d4   : > { %p34_p2 = scmp.ge.s32.totalorder %s3782_s28, 4  }
0x19d5   : > { %s3786_s26 = smov %s3783_s0 }
0x19d6   :  { %36 = sbr.rel (!%p34_p2) target bundleno = 16 (0x10), region = 160 }
0x19db   :  { %2571 = vsyncpa [#allocation3], 1 }
0x19dc   :  { %2573 = vsyncpa [#allocation3 + $0x1], 1 }

</bundles_post_ra>
